<compile_context>
chip_gen: v7x
topology: tpu7x:2x2x1
jax: 0.10.0
libtpu: 0.0.40
codegen_flags: <defaults>
</compile_context>

<pallas_src>
import functools

import jax
import jax.numpy as jnp
from jax.experimental import pallas as pl
from jax.experimental.pallas import tpu as pltpu


def decoder_layer_kernel(x_ref, bias_ref,
                         wqkv_ref, bqkv_ref, wo_ref, bo_ref,
                         ln_g_ref, ln_b_ref,
                         wr_ref, br_ref,
                         w1_ref, b1_ref,
                         w2fr_ref, bffr_ref,
                         out_ref,
                         ctx_ref,
                         *, num_heads, n_ffn_chunks):
    f32, bf16 = jnp.float32, jnp.bfloat16
    BT, S, E = x_ref.shape
    dk = E // num_heads
    M = BT * S                                   # batch folded into matmul M
    Dp = out_ref.shape[-1]

    x2d = x_ref[...].reshape(M, E).astype(f32)   # residual copy (f32)
    xb = x2d.astype(bf16)                        # bf16 MXU input
    bias3 = bias_ref[...][None]                  # (1,S,S) additive mask, hoisted

    # ---- fused Q/K/V projection (scale already folded into wq/bq) ----------
    qkv = jnp.dot(xb, wqkv_ref[...], preferred_element_type=f32) + bqkv_ref[...]
    qb = qkv[:, :E].astype(bf16)
    kb = qkv[:, E:2 * E].astype(bf16)
    vb = qkv[:, 2 * E:].astype(bf16)

    # ---- multi-head self-attention ------------------------------------------
    # Per-head context goes into a VMEM scratch at lane offset h*dk; the output
    # projection is ONE full-K matmul after the loop (no per-head small-K dots).
    for h in range(num_heads):
        sl = slice(h * dk, (h + 1) * dk)
        qh = qb[:, sl].reshape(BT, S, dk)
        kh = kb[:, sl].reshape(BT, S, dk)
        vh = vb[:, sl].reshape(BT, S, dk)

        s = jnp.einsum('bqd,bkd->bqk', qh, kh, preferred_element_type=f32)
        s = s + bias3
        s = s - jnp.max(s, axis=-1, keepdims=True)
        p = jnp.exp(s)
        denom = jnp.sum(p, axis=-1, keepdims=True)
        p = p * pl.reciprocal(denom, approx=True)

        o = jnp.einsum('bqk,bkd->bqd', p.astype(bf16), vh,
                       preferred_element_type=f32)
        ctx_ref[:, sl] = o.reshape(M, dk)        # cut live range; build context

    attn_out = jnp.dot(ctx_ref[...].astype(bf16), wo_ref[...],
                       preferred_element_type=f32) + bo_ref[...]

    # ---- residual + LayerNorm (f32) -----------------------------------------
    resid = x2d + attn_out
    mean = jnp.mean(resid, axis=-1, keepdims=True)
    cent = resid - mean
    var = jnp.mean(cent * cent, axis=-1, keepdims=True)
    normed = cent * jax.lax.rsqrt(var + 1e-5) * ln_g_ref[...] + ln_b_ref[...]
    nb = normed.astype(bf16)

    # ---- residual_reduction (E -> Dp, lane-dense padded) ---------------------
    residual_red = jnp.dot(nb, wr_ref[...],
                           preferred_element_type=f32) + br_ref[...]

    # ---- feed forward (E->4E) + fused feed_forward_reduction (4E->Dp) --------
    H4 = w1_ref.shape[1]
    if n_ffn_chunks == 1:
        h1 = jnp.maximum(jnp.dot(nb, w1_ref[...],
                                 preferred_element_type=f32) + b1_ref[...], 0.0)
        ff_red = jnp.dot(h1.astype(bf16), w2fr_ref[...],
                         preferred_element_type=f32) + bffr_ref[...]
    else:
        ch = H4 // n_ffn_chunks                  # multiple of 128 by construction

        def ffn_body(c, acc):
            start = pl.multiple_of(c * ch, ch)
            h1c = jnp.dot(nb, w1_ref[:, pl.ds(start, ch)],
                          preferred_element_type=f32) + b1_ref[:, pl.ds(start, ch)]
            h1c = jnp.maximum(h1c, 0.0).astype(bf16)
            return acc + jnp.dot(h1c, w2fr_ref[pl.ds(start, ch), :],
                                 preferred_element_type=f32)

        ff_red = jax.lax.fori_loop(0, n_ffn_chunks, ffn_body,
                                   jnp.zeros((M, Dp), f32)) + bffr_ref[...]

    # TODO(synk): dropout (training=True branch) not implemented (eval path only).
    out = residual_red + ff_red
    out_ref[...] = out.reshape(out_ref.shape).astype(out_ref.dtype)


def _pick_block_b(B, S):
    """Fold batch into the matmul M axis (~512 rows per step), but keep >=2
    grid steps when B>1 so v7x's two TensorCores both get work."""
    bt = max(1, min(B, 512 // max(S, 1)))
    if B > 1:
        bt = min(bt, max(1, B // 2))
    while B % bt:
        bt -= 1
    return max(bt, 1)


def _pick_ffn_chunks(H4, max_chunk=1024):
    """Chunk the FFN hidden dim so no (M, 4E) slab is fully live."""
    if H4 <= max_chunk:
        return 1
    for n in range(2, H4 + 1):
        ch = H4 // n
        if H4 % n == 0 and ch % 128 == 0 and ch <= max_chunk:
            return n
    return 1


def _vmem_limit_bytes(BT, S, E, Dp, H4, ffn_chunk, single_buffer):
    """Generation-aware VMEM limit: working-set estimate clamped to device cap."""
    M = BT * S
    wbytes = 2 * (E * 3 * E + E * E + E * Dp + E * H4 + H4 * Dp)   # bf16 weights
    wbytes += 4 * (3 * E + E + 2 * E + Dp + H4 + Dp)               # f32 biases
    if not single_buffer:
        wbytes *= 2
    io = 2 * 4 * (M * E + M * Dp)                                  # dbl-buffered x/out
    act = 4 * M * (3 * E + 2 * E + 2 * Dp + ffn_chunk)             # live slabs
    act += 4 * BT * S * S * 2 + 4 * M * E                          # scores + ctx scratch
    est = wbytes + io + act
    try:
        cap = int(getattr(pltpu.get_tpu_info(), "vmem_capacity_bytes",
                          128 * 1024 * 1024))
    except Exception:
        cap = 64 * 1024 * 1024
    return int(min(0.9 * cap, max(32 * 1024 * 1024, 2 * est)))


def prepare_decoder_params(params, mask, num_heads):
    """One-time weight fusion / padding / casts.  Cache the result across calls
    (this work must not be paid on every forward)."""
    f32, bf16 = jnp.float32, jnp.bfloat16
    E = params["wq"].shape[0]
    D = params["wr"].shape[1]
    H4 = params["w1"].shape[1]
    Dp = ((D + 127) // 128) * 128
    dk = E // num_heads
    scale = 1.0 / (dk ** 0.5)

    def pad_cols(w, n):
        pad = n - w.shape[-1]
        return w if pad == 0 else jnp.pad(w, ((0, 0), (0, pad)))

    # fused QKV (softmax scale folded into the q columns) --------------------
    wqkv = jnp.concatenate([params["wq"] * scale, params["wk"], params["wv"]],
                           axis=1).astype(bf16)
    bqkv = jnp.concatenate([params["bq"] * scale, params["bk"], params["bv"]],
                           axis=1).astype(f32)
    # fold feed_forward_reduction into W2: h1 @ (w2@wfr) + (b2@wfr + bfr) -----
    w2fr = pad_cols(params["w2"] @ params["wfr"], Dp).astype(bf16)
    bffr = pad_cols(params["b2"] @ params["wfr"] + params["bfr"], Dp).astype(f32)

    return {
        "wqkv": wqkv, "bqkv": bqkv,
        "wo": params["wo"].astype(bf16), "bo": params["bo"].astype(f32),
        "ln_g": params["ln_g"].astype(f32), "ln_b": params["ln_b"].astype(f32),
        "wr": pad_cols(params["wr"], Dp).astype(bf16),
        "br": pad_cols(params["br"], Dp).astype(f32),
        "w1": params["w1"].astype(bf16), "b1": params["b1"].astype(f32),
        "w2fr": w2fr, "bffr": bffr,
        "mask_bias": jnp.where(mask > 0, 0.0, -1e30).astype(f32),
        "num_heads": num_heads, "E": E, "D": D, "Dp": Dp, "H4": H4,
    }


def decoder_layer(x, prep):
    B, S, E = x.shape
    assert E == prep["E"]
    Dp, H4 = prep["Dp"], prep["H4"]
    num_heads = prep["num_heads"]
    f32 = jnp.float32

    BT = _pick_block_b(B, S)
    grid = (B // BT,)
    n_ffn_chunks = _pick_ffn_chunks(H4)
    ffn_chunk = H4 // n_ffn_chunks

    args = (x, prep["mask_bias"], prep["wqkv"], prep["bqkv"],
            prep["wo"], prep["bo"], prep["ln_g"], prep["ln_b"],
            prep["wr"], prep["br"], prep["w1"], prep["b1"],
            prep["w2fr"], prep["bffr"])

    def run(single_buffer):
        def fixed(shape):
            idx = lambda b, _n=len(shape): (0,) * _n
            if single_buffer:
                try:
                    # constant blocks: no double-buffering (halves weight VMEM)
                    return pl.BlockSpec(shape, idx, pipeline_mode=pl.Buffered(1))
                except Exception:
                    return pl.BlockSpec(shape, idx)
            return pl.BlockSpec(shape, idx)

        in_specs = [
            pl.BlockSpec((BT, S, E), lambda b: (b, 0, 0)),    # x (batch tile)
            fixed((S, S)),                                    # additive mask bias
            fixed((E, 3 * E)), fixed((1, 3 * E)),             # fused qkv
            fixed((E, E)), fixed((1, E)),                     # wo, bo
            fixed((1, E)), fixed((1, E)),                     # ln gamma, beta
            fixed((E, Dp)), fixed((1, Dp)),                   # residual_reduction
            fixed((E, H4)), fixed((1, H4)),                   # feed_forward W1
            fixed((H4, Dp)), fixed((1, Dp)),                  # fused W2 @ Wfr
        ]
        kernel = functools.partial(decoder_layer_kernel,
                                   num_heads=num_heads,
                                   n_ffn_chunks=n_ffn_chunks)
        f = pl.pallas_call(
            kernel,
            out_shape=jax.ShapeDtypeStruct((B, S, Dp), f32),
            grid_spec=pltpu.PrefetchScalarGridSpec(
                num_scalar_prefetch=0,
                grid=grid,
                in_specs=in_specs,
                out_specs=pl.BlockSpec((BT, S, Dp), lambda b: (b, 0, 0)),
                scratch_shapes=[pltpu.VMEM((BT * S, E), jnp.float32)]),  # ctx
            compiler_params=pltpu.CompilerParams(
                dimension_semantics=("parallel",),
                vmem_limit_bytes=_vmem_limit_bytes(
                    BT, S, E, Dp, H4, ffn_chunk, single_buffer)),
        )
        return jax.block_until_ready(f(*args))

    try:
        out = run(True)
    except Exception:
        out = run(False)   # fallback if this build rejects Buffered(1)
    return out[..., :prep["D"]]


def reference(x, mask, p, num_heads):
    """Plain-JAX f32 reference for correctness checking (same math)."""
    B, S, E = x.shape
    dk = E // num_heads
    q = x @ p["wq"] + p["bq"]
    k = x @ p["wk"] + p["bk"]
    v = x @ p["wv"] + p["bv"]
    q = q.reshape(B, S, num_heads, dk).transpose(0, 2, 1, 3)
    k = k.reshape(B, S, num_heads, dk).transpose(0, 2, 1, 3)
    v = v.reshape(B, S, num_heads, dk).transpose(0, 2, 1, 3)
    scores = jnp.einsum("bhqd,bhkd->bhqk", q, k) / (dk ** 0.5)
    scores = jnp.where(mask[None, None] > 0, scores, -1e30)
    probs = jax.nn.softmax(scores, axis=-1)
    attn = jnp.einsum("bhqk,bhkd->bhqd", probs, v)
    attn = attn.transpose(0, 2, 1, 3).reshape(B, S, E)
    attn = attn @ p["wo"] + p["bo"]
    resid = x + attn
    mean = resid.mean(-1, keepdims=True)
    var = ((resid - mean) ** 2).mean(-1, keepdims=True)
    normed = (resid - mean) * jax.lax.rsqrt(var + 1e-5) * p["ln_g"] + p["ln_b"]
    residual_red = normed @ p["wr"] + p["br"]
    h1 = jnp.maximum(normed @ p["w1"] + p["b1"], 0.0)
    ff = h1 @ p["w2"] + p["b2"]
    ff_red = ff @ p["wfr"] + p["bfr"]
    return residual_red + ff_red


def init_params(key, E, D):
    ks = jax.random.split(key, 12)
    s = 0.02
    return {
        "wq": s * jax.random.normal(ks[0], (E, E), jnp.float32),
        "bq": jnp.zeros((1, E), jnp.float32),
        "wk": s * jax.random.normal(ks[1], (E, E), jnp.float32),
        "bk": jnp.zeros((1, E), jnp.float32),
        "wv": s * jax.random.normal(ks[2], (E, E), jnp.float32),
        "bv": jnp.zeros((1, E), jnp.float32),
        "wo": s * jax.random.normal(ks[3], (E, E), jnp.float32),
        "bo": jnp.zeros((1, E), jnp.float32),
        "ln_g": jnp.ones((1, E), jnp.float32),
        "ln_b": jnp.zeros((1, E), jnp.float32),
        "wr": s * jax.random.normal(ks[4], (E, D), jnp.float32),
        "br": 0.01 * jnp.ones((1, D), jnp.float32),
        "w1": s * jax.random.normal(ks[5], (E, 4 * E), jnp.float32),
        "b1": 0.01 * jnp.ones((1, 4 * E), jnp.float32),
        "w2": s * jax.random.normal(ks[6], (4 * E, E), jnp.float32),
        "b2": 0.01 * jnp.ones((1, E), jnp.float32),
        "wfr": s * jax.random.normal(ks[7], (E, D), jnp.float32),
        "bfr": 0.01 * jnp.ones((1, D), jnp.float32),
    }


if __name__ == "__main__":
    B, S, E, H, D = 2, 8, 32, 4, 16   # batch, seq, embedding, heads, decoder_dim
    key = jax.random.PRNGKey(0)
    k_x, k_p = jax.random.split(key)

    x = jax.random.normal(k_x, (B, S, E), jnp.float32)
    mask = jnp.tril(jnp.ones((S, S), jnp.float32))   # causal 0/1 mask
    params = init_params(k_p, E, D)

    prep = prepare_decoder_params(params, mask, num_heads=H)   # one-time prep
    out = decoder_layer(x, prep)
    out = jax.block_until_ready(out)

    ref = reference(x, mask, params, num_heads=H)
    assert out.shape == (B, S, D)
    # bf16 MXU inputs + approx reciprocal + w2@wfr refactoring => loosened tol
    assert jnp.allclose(out, ref, atol=2e-2, rtol=2e-2), "mismatch vs reference"

    print("KERNEL_OK")
</pallas_src>

<mosaic_0001>
module attributes {stable_mosaic.version = 11 : i64} {
  func.func @decoder_layer_kernel(%arg0: i32, %arg1: memref<1x8x32xf32, #tpu.memory_space<vmem>>, %arg2: memref<8x8xf32, #tpu.memory_space<vmem>>, %arg3: memref<32x96xbf16, #tpu.memory_space<vmem>>, %arg4: memref<1x96xf32, #tpu.memory_space<vmem>>, %arg5: memref<32x32xbf16, #tpu.memory_space<vmem>>, %arg6: memref<1x32xf32, #tpu.memory_space<vmem>>, %arg7: memref<1x32xf32, #tpu.memory_space<vmem>>, %arg8: memref<1x32xf32, #tpu.memory_space<vmem>>, %arg9: memref<32x128xbf16, #tpu.memory_space<vmem>>, %arg10: memref<1x128xf32, #tpu.memory_space<vmem>>, %arg11: memref<32x128xbf16, #tpu.memory_space<vmem>>, %arg12: memref<1x128xf32, #tpu.memory_space<vmem>>, %arg13: memref<128x128xbf16, #tpu.memory_space<vmem>>, %arg14: memref<1x128xf32, #tpu.memory_space<vmem>>, %arg15: memref<1x8x128xf32, #tpu.memory_space<vmem>>, %arg16: memref<8x32xf32, #tpu.memory_space<vmem>>) attributes {dimension_semantics = [#tpu.dimension_semantics<parallel>], iteration_bounds = array<i64: 2>, scalar_prefetch = 0 : i64, scratch_operands = 1 : i64, tpu.core_type = #tpu.core_type<tc>, window_params = [{transform_indices = @transform_0, window_bounds = array<i64: 1, 8, 32>}, {pipeline_mode = #tpu.pipeline_mode<synchronous>, transform_indices = @transform_1, window_bounds = array<i64: 8, 8>}, {pipeline_mode = #tpu.pipeline_mode<synchronous>, transform_indices = @transform_2, window_bounds = array<i64: 32, 96>}, {pipeline_mode = #tpu.pipeline_mode<synchronous>, transform_indices = @transform_3, window_bounds = array<i64: 1, 96>}, {pipeline_mode = #tpu.pipeline_mode<synchronous>, transform_indices = @transform_4, window_bounds = array<i64: 32, 32>}, {pipeline_mode = #tpu.pipeline_mode<synchronous>, transform_indices = @transform_5, window_bounds = array<i64: 1, 32>}, {pipeline_mode = #tpu.pipeline_mode<synchronous>, transform_indices = @transform_6, window_bounds = array<i64: 1, 32>}, {pipeline_mode = #tpu.pipeline_mode<synchronous>, transform_indices = @transform_7, window_bounds = array<i64: 1, 32>}, {pipeline_mode = #tpu.pipeline_mode<synchronous>, transform_indices = @transform_8, window_bounds = array<i64: 32, 128>}, {pipeline_mode = #tpu.pipeline_mode<synchronous>, transform_indices = @transform_9, window_bounds = array<i64: 1, 128>}, {pipeline_mode = #tpu.pipeline_mode<synchronous>, transform_indices = @transform_10, window_bounds = array<i64: 32, 128>}, {pipeline_mode = #tpu.pipeline_mode<synchronous>, transform_indices = @transform_11, window_bounds = array<i64: 1, 128>}, {pipeline_mode = #tpu.pipeline_mode<synchronous>, transform_indices = @transform_12, window_bounds = array<i64: 128, 128>}, {pipeline_mode = #tpu.pipeline_mode<synchronous>, transform_indices = @transform_13, window_bounds = array<i64: 1, 128>}, {transform_indices = @transform_14, window_bounds = array<i64: 1, 8, 128>}]} {
    %c0 = arith.constant 0 : index
    %c0_0 = arith.constant 0 : index
    %c0_1 = arith.constant 0 : index
    %0 = vector.load %arg1[%c0, %c0_0, %c0_1] : memref<1x8x32xf32, #tpu.memory_space<vmem>>, vector<1x8x32xf32>
    %1 = vector.shape_cast %0 : vector<1x8x32xf32> to vector<8x32xf32>
    %2 = arith.truncf %1 : vector<8x32xf32> to vector<8x32xbf16>
    %c0_2 = arith.constant 0 : index
    %c0_3 = arith.constant 0 : index
    %3 = vector.load %arg2[%c0_2, %c0_3] : memref<8x8xf32, #tpu.memory_space<vmem>>, vector<8x8xf32>
    %4 = vector.shape_cast %3 : vector<8x8xf32> to vector<1x8x8xf32>
    %c0_4 = arith.constant 0 : index
    %c0_5 = arith.constant 0 : index
    %5 = vector.load %arg3[%c0_4, %c0_5] : memref<32x96xbf16, #tpu.memory_space<vmem>>, vector<32x96xbf16>
    %cst = arith.constant dense<0.000000e+00> : vector<8x96xf32>
    %6 = tpu.matmul %2, %5, %cst {dimension_numbers = #tpu.dot_dimension_numbers<[1], [0], [0], [1], [0, 0, 1, 1], [], []>} : vector<8x32xbf16>, vector<32x96xbf16>, vector<8x96xf32> -> vector<8x96xf32>
    %c0_6 = arith.constant 0 : index
    %c0_7 = arith.constant 0 : index
    %7 = vector.load %arg4[%c0_6, %c0_7] : memref<1x96xf32, #tpu.memory_space<vmem>>, vector<1x96xf32>
    %8 = vector.broadcast %7 : vector<1x96xf32> to vector<8x96xf32>
    %9 = arith.addf %6, %8 : vector<8x96xf32>
    %10 = vector.extract_strided_slice %9 {offsets = [0, 0], sizes = [8, 32], strides = [1, 1]} : vector<8x96xf32> to vector<8x32xf32>
    %11 = arith.truncf %10 : vector<8x32xf32> to vector<8x32xbf16>
    %12 = vector.extract_strided_slice %9 {offsets = [0, 32], sizes = [8, 32], strides = [1, 1]} : vector<8x96xf32> to vector<8x32xf32>
    %13 = arith.truncf %12 : vector<8x32xf32> to vector<8x32xbf16>
    %14 = vector.extract_strided_slice %9 {offsets = [0, 64], sizes = [8, 32], strides = [1, 1]} : vector<8x96xf32> to vector<8x32xf32>
    %15 = arith.truncf %14 : vector<8x32xf32> to vector<8x32xbf16>
    %16 = vector.extract_strided_slice %11 {offsets = [0, 0], sizes = [8, 8], strides = [1, 1]} : vector<8x32xbf16> to vector<8x8xbf16>
    %17 = vector.shape_cast %16 : vector<8x8xbf16> to vector<1x8x8xbf16>
    %18 = vector.extract_strided_slice %13 {offsets = [0, 0], sizes = [8, 8], strides = [1, 1]} : vector<8x32xbf16> to vector<8x8xbf16>
    %19 = vector.shape_cast %18 : vector<8x8xbf16> to vector<1x8x8xbf16>
    %20 = vector.extract_strided_slice %15 {offsets = [0, 0], sizes = [8, 8], strides = [1, 1]} : vector<8x32xbf16> to vector<8x8xbf16>
    %21 = vector.shape_cast %20 : vector<8x8xbf16> to vector<1x8x8xbf16>
    "tpu.trace_start"() <{level = 10 : i32, message = "bqd,bkd->bqk"}> : () -> ()
    %cst_8 = arith.constant dense<0.000000e+00> : vector<1x8x8xf32>
    %22 = tpu.matmul %17, %19, %cst_8 {dimension_numbers = #tpu.dot_dimension_numbers<[2], [2], [1], [1], [0, 0, 0, 1, 1, 1], [0], [0]>} : vector<1x8x8xbf16>, vector<1x8x8xbf16>, vector<1x8x8xf32> -> vector<1x8x8xf32>
    "tpu.trace_stop"() : () -> ()
    %23 = arith.addf %22, %4 : vector<1x8x8xf32>
    %cst_9 = arith.constant dense<0xFF800000> : vector<1x8xf32>
    %24 = vector.multi_reduction <maximumf>, %23, %cst_9 [2] : vector<1x8x8xf32> to vector<1x8xf32>
    %25 = vector.shape_cast %24 : vector<1x8xf32> to vector<1x8x1xf32>
    %26 = vector.broadcast %25 : vector<1x8x1xf32> to vector<1x8x8xf32>
    %27 = arith.subf %23, %26 : vector<1x8x8xf32>
    %28 = math.exp %27 : vector<1x8x8xf32>
    %cst_10 = arith.constant dense<0.000000e+00> : vector<1x8xf32>
    %29 = vector.multi_reduction <add>, %28, %cst_10 [2] : vector<1x8x8xf32> to vector<1x8xf32>
    %30 = vector.shape_cast %29 : vector<1x8xf32> to vector<1x8x1xf32>
    %31 = tpu.reciprocal %30 {approx = true} : vector<1x8x1xf32> -> vector<1x8x1xf32>
    %32 = vector.broadcast %31 : vector<1x8x1xf32> to vector<1x8x8xf32>
    %33 = arith.mulf %28, %32 : vector<1x8x8xf32>
    %34 = arith.truncf %33 : vector<1x8x8xf32> to vector<1x8x8xbf16>
    "tpu.trace_start"() <{level = 10 : i32, message = "bqk,bkd->bqd"}> : () -> ()
    %cst_11 = arith.constant dense<0.000000e+00> : vector<1x8x8xf32>
    %35 = tpu.matmul %34, %21, %cst_11 {dimension_numbers = #tpu.dot_dimension_numbers<[2], [1], [1], [2], [0, 0, 0, 1, 1, 2], [0], [0]>} : vector<1x8x8xbf16>, vector<1x8x8xbf16>, vector<1x8x8xf32> -> vector<1x8x8xf32>
    "tpu.trace_stop"() : () -> ()
    %36 = vector.shape_cast %35 : vector<1x8x8xf32> to vector<8x8xf32>
    %c0_12 = arith.constant 0 : index
    %c0_13 = arith.constant 0 : index
    %37 = vector.load %arg16[%c0_12, %c0_13] : memref<8x32xf32, #tpu.memory_space<vmem>>, vector<8x8xf32>
    tpu.vector_store %arg16[%c0_12, %c0_13], %36 {strides = array<i32>} : memref<8x32xf32, #tpu.memory_space<vmem>>, vector<8x8xf32>,
    %38 = vector.extract_strided_slice %11 {offsets = [0, 8], sizes = [8, 8], strides = [1, 1]} : vector<8x32xbf16> to vector<8x8xbf16>
    %39 = vector.shape_cast %38 : vector<8x8xbf16> to vector<1x8x8xbf16>
    %40 = vector.extract_strided_slice %13 {offsets = [0, 8], sizes = [8, 8], strides = [1, 1]} : vector<8x32xbf16> to vector<8x8xbf16>
    %41 = vector.shape_cast %40 : vector<8x8xbf16> to vector<1x8x8xbf16>
    %42 = vector.extract_strided_slice %15 {offsets = [0, 8], sizes = [8, 8], strides = [1, 1]} : vector<8x32xbf16> to vector<8x8xbf16>
    %43 = vector.shape_cast %42 : vector<8x8xbf16> to vector<1x8x8xbf16>
    "tpu.trace_start"() <{level = 10 : i32, message = "bqd,bkd->bqk"}> : () -> ()
    %cst_14 = arith.constant dense<0.000000e+00> : vector<1x8x8xf32>
    %44 = tpu.matmul %39, %41, %cst_14 {dimension_numbers = #tpu.dot_dimension_numbers<[2], [2], [1], [1], [0, 0, 0, 1, 1, 1], [0], [0]>} : vector<1x8x8xbf16>, vector<1x8x8xbf16>, vector<1x8x8xf32> -> vector<1x8x8xf32>
    "tpu.trace_stop"() : () -> ()
    %45 = arith.addf %44, %4 : vector<1x8x8xf32>
    %cst_15 = arith.constant dense<0xFF800000> : vector<1x8xf32>
    %46 = vector.multi_reduction <maximumf>, %45, %cst_15 [2] : vector<1x8x8xf32> to vector<1x8xf32>
    %47 = vector.shape_cast %46 : vector<1x8xf32> to vector<1x8x1xf32>
    %48 = vector.broadcast %47 : vector<1x8x1xf32> to vector<1x8x8xf32>
    %49 = arith.subf %45, %48 : vector<1x8x8xf32>
    %50 = math.exp %49 : vector<1x8x8xf32>
    %cst_16 = arith.constant dense<0.000000e+00> : vector<1x8xf32>
    %51 = vector.multi_reduction <add>, %50, %cst_16 [2] : vector<1x8x8xf32> to vector<1x8xf32>
    %52 = vector.shape_cast %51 : vector<1x8xf32> to vector<1x8x1xf32>
    %53 = tpu.reciprocal %52 {approx = true} : vector<1x8x1xf32> -> vector<1x8x1xf32>
    %54 = vector.broadcast %53 : vector<1x8x1xf32> to vector<1x8x8xf32>
    %55 = arith.mulf %50, %54 : vector<1x8x8xf32>
    %56 = arith.truncf %55 : vector<1x8x8xf32> to vector<1x8x8xbf16>
    "tpu.trace_start"() <{level = 10 : i32, message = "bqk,bkd->bqd"}> : () -> ()
    %cst_17 = arith.constant dense<0.000000e+00> : vector<1x8x8xf32>
    %57 = tpu.matmul %56, %43, %cst_17 {dimension_numbers = #tpu.dot_dimension_numbers<[2], [1], [1], [2], [0, 0, 0, 1, 1, 2], [0], [0]>} : vector<1x8x8xbf16>, vector<1x8x8xbf16>, vector<1x8x8xf32> -> vector<1x8x8xf32>
    "tpu.trace_stop"() : () -> ()
    %58 = vector.shape_cast %57 : vector<1x8x8xf32> to vector<8x8xf32>
    %c0_18 = arith.constant 0 : index
    %c8 = arith.constant 8 : index
    %59 = vector.load %arg16[%c0_18, %c8] : memref<8x32xf32, #tpu.memory_space<vmem>>, vector<8x8xf32>
    tpu.vector_store %arg16[%c0_18, %c8], %58 {strides = array<i32>} : memref<8x32xf32, #tpu.memory_space<vmem>>, vector<8x8xf32>,
    %60 = vector.extract_strided_slice %11 {offsets = [0, 16], sizes = [8, 8], strides = [1, 1]} : vector<8x32xbf16> to vector<8x8xbf16>
    %61 = vector.shape_cast %60 : vector<8x8xbf16> to vector<1x8x8xbf16>
    %62 = vector.extract_strided_slice %13 {offsets = [0, 16], sizes = [8, 8], strides = [1, 1]} : vector<8x32xbf16> to vector<8x8xbf16>
    %63 = vector.shape_cast %62 : vector<8x8xbf16> to vector<1x8x8xbf16>
    %64 = vector.extract_strided_slice %15 {offsets = [0, 16], sizes = [8, 8], strides = [1, 1]} : vector<8x32xbf16> to vector<8x8xbf16>
    %65 = vector.shape_cast %64 : vector<8x8xbf16> to vector<1x8x8xbf16>
    "tpu.trace_start"() <{level = 10 : i32, message = "bqd,bkd->bqk"}> : () -> ()
    %cst_19 = arith.constant dense<0.000000e+00> : vector<1x8x8xf32>
    %66 = tpu.matmul %61, %63, %cst_19 {dimension_numbers = #tpu.dot_dimension_numbers<[2], [2], [1], [1], [0, 0, 0, 1, 1, 1], [0], [0]>} : vector<1x8x8xbf16>, vector<1x8x8xbf16>, vector<1x8x8xf32> -> vector<1x8x8xf32>
    "tpu.trace_stop"() : () -> ()
    %67 = arith.addf %66, %4 : vector<1x8x8xf32>
    %cst_20 = arith.constant dense<0xFF800000> : vector<1x8xf32>
    %68 = vector.multi_reduction <maximumf>, %67, %cst_20 [2] : vector<1x8x8xf32> to vector<1x8xf32>
    %69 = vector.shape_cast %68 : vector<1x8xf32> to vector<1x8x1xf32>
    %70 = vector.broadcast %69 : vector<1x8x1xf32> to vector<1x8x8xf32>
    %71 = arith.subf %67, %70 : vector<1x8x8xf32>
    %72 = math.exp %71 : vector<1x8x8xf32>
    %cst_21 = arith.constant dense<0.000000e+00> : vector<1x8xf32>
    %73 = vector.multi_reduction <add>, %72, %cst_21 [2] : vector<1x8x8xf32> to vector<1x8xf32>
    %74 = vector.shape_cast %73 : vector<1x8xf32> to vector<1x8x1xf32>
    %75 = tpu.reciprocal %74 {approx = true} : vector<1x8x1xf32> -> vector<1x8x1xf32>
    %76 = vector.broadcast %75 : vector<1x8x1xf32> to vector<1x8x8xf32>
    %77 = arith.mulf %72, %76 : vector<1x8x8xf32>
    %78 = arith.truncf %77 : vector<1x8x8xf32> to vector<1x8x8xbf16>
    "tpu.trace_start"() <{level = 10 : i32, message = "bqk,bkd->bqd"}> : () -> ()
    %cst_22 = arith.constant dense<0.000000e+00> : vector<1x8x8xf32>
    %79 = tpu.matmul %78, %65, %cst_22 {dimension_numbers = #tpu.dot_dimension_numbers<[2], [1], [1], [2], [0, 0, 0, 1, 1, 2], [0], [0]>} : vector<1x8x8xbf16>, vector<1x8x8xbf16>, vector<1x8x8xf32> -> vector<1x8x8xf32>
    "tpu.trace_stop"() : () -> ()
    %80 = vector.shape_cast %79 : vector<1x8x8xf32> to vector<8x8xf32>
    %c0_23 = arith.constant 0 : index
    %c16 = arith.constant 16 : index
    %81 = vector.load %arg16[%c0_23, %c16] : memref<8x32xf32, #tpu.memory_space<vmem>>, vector<8x8xf32>
    tpu.vector_store %arg16[%c0_23, %c16], %80 {strides = array<i32>} : memref<8x32xf32, #tpu.memory_space<vmem>>, vector<8x8xf32>,
    %82 = vector.extract_strided_slice %11 {offsets = [0, 24], sizes = [8, 8], strides = [1, 1]} : vector<8x32xbf16> to vector<8x8xbf16>
    %83 = vector.shape_cast %82 : vector<8x8xbf16> to vector<1x8x8xbf16>
    %84 = vector.extract_strided_slice %13 {offsets = [0, 24], sizes = [8, 8], strides = [1, 1]} : vector<8x32xbf16> to vector<8x8xbf16>
    %85 = vector.shape_cast %84 : vector<8x8xbf16> to vector<1x8x8xbf16>
    %86 = vector.extract_strided_slice %15 {offsets = [0, 24], sizes = [8, 8], strides = [1, 1]} : vector<8x32xbf16> to vector<8x8xbf16>
    %87 = vector.shape_cast %86 : vector<8x8xbf16> to vector<1x8x8xbf16>
    "tpu.trace_start"() <{level = 10 : i32, message = "bqd,bkd->bqk"}> : () -> ()
    %cst_24 = arith.constant dense<0.000000e+00> : vector<1x8x8xf32>
    %88 = tpu.matmul %83, %85, %cst_24 {dimension_numbers = #tpu.dot_dimension_numbers<[2], [2], [1], [1], [0, 0, 0, 1, 1, 1], [0], [0]>} : vector<1x8x8xbf16>, vector<1x8x8xbf16>, vector<1x8x8xf32> -> vector<1x8x8xf32>
    "tpu.trace_stop"() : () -> ()
    %89 = arith.addf %88, %4 : vector<1x8x8xf32>
    %cst_25 = arith.constant dense<0xFF800000> : vector<1x8xf32>
    %90 = vector.multi_reduction <maximumf>, %89, %cst_25 [2] : vector<1x8x8xf32> to vector<1x8xf32>
    %91 = vector.shape_cast %90 : vector<1x8xf32> to vector<1x8x1xf32>
    %92 = vector.broadcast %91 : vector<1x8x1xf32> to vector<1x8x8xf32>
    %93 = arith.subf %89, %92 : vector<1x8x8xf32>
    %94 = math.exp %93 : vector<1x8x8xf32>
    %cst_26 = arith.constant dense<0.000000e+00> : vector<1x8xf32>
    %95 = vector.multi_reduction <add>, %94, %cst_26 [2] : vector<1x8x8xf32> to vector<1x8xf32>
    %96 = vector.shape_cast %95 : vector<1x8xf32> to vector<1x8x1xf32>
    %97 = tpu.reciprocal %96 {approx = true} : vector<1x8x1xf32> -> vector<1x8x1xf32>
    %98 = vector.broadcast %97 : vector<1x8x1xf32> to vector<1x8x8xf32>
    %99 = arith.mulf %94, %98 : vector<1x8x8xf32>
    %100 = arith.truncf %99 : vector<1x8x8xf32> to vector<1x8x8xbf16>
    "tpu.trace_start"() <{level = 10 : i32, message = "bqk,bkd->bqd"}> : () -> ()
    %cst_27 = arith.constant dense<0.000000e+00> : vector<1x8x8xf32>
    %101 = tpu.matmul %100, %87, %cst_27 {dimension_numbers = #tpu.dot_dimension_numbers<[2], [1], [1], [2], [0, 0, 0, 1, 1, 2], [0], [0]>} : vector<1x8x8xbf16>, vector<1x8x8xbf16>, vector<1x8x8xf32> -> vector<1x8x8xf32>
    "tpu.trace_stop"() : () -> ()
    %102 = vector.shape_cast %101 : vector<1x8x8xf32> to vector<8x8xf32>
    %c0_28 = arith.constant 0 : index
    %c24 = arith.constant 24 : index
    %103 = vector.load %arg16[%c0_28, %c24] : memref<8x32xf32, #tpu.memory_space<vmem>>, vector<8x8xf32>
    tpu.vector_store %arg16[%c0_28, %c24], %102 {strides = array<i32>} : memref<8x32xf32, #tpu.memory_space<vmem>>, vector<8x8xf32>,
    %c0_29 = arith.constant 0 : index
    %c0_30 = arith.constant 0 : index
    %104 = vector.load %arg16[%c0_29, %c0_30] : memref<8x32xf32, #tpu.memory_space<vmem>>, vector<8x32xf32>
    %105 = arith.truncf %104 : vector<8x32xf32> to vector<8x32xbf16>
    %c0_31 = arith.constant 0 : index
    %c0_32 = arith.constant 0 : index
    %106 = vector.load %arg5[%c0_31, %c0_32] : memref<32x32xbf16, #tpu.memory_space<vmem>>, vector<32x32xbf16>
    %cst_33 = arith.constant dense<0.000000e+00> : vector<8x32xf32>
    %107 = tpu.matmul %105, %106, %cst_33 {dimension_numbers = #tpu.dot_dimension_numbers<[1], [0], [0], [1], [0, 0, 1, 1], [], []>} : vector<8x32xbf16>, vector<32x32xbf16>, vector<8x32xf32> -> vector<8x32xf32>
    %c0_34 = arith.constant 0 : index
    %c0_35 = arith.constant 0 : index
    %108 = vector.load %arg6[%c0_34, %c0_35] : memref<1x32xf32, #tpu.memory_space<vmem>>, vector<1x32xf32>
    %109 = vector.broadcast %108 : vector<1x32xf32> to vector<8x32xf32>
    %110 = arith.addf %107, %109 : vector<8x32xf32>
    %111 = arith.addf %1, %110 : vector<8x32xf32>
    %cst_36 = arith.constant dense<0.000000e+00> : vector<8xf32>
    %112 = vector.multi_reduction <add>, %111, %cst_36 [1] : vector<8x32xf32> to vector<8xf32>
    %113 = vector.shape_cast %112 : vector<8xf32> to vector<8x1xf32>
    %cst_37 = arith.constant 3.200000e+01 : f32
    %114 = vector.broadcast %cst_37 : f32 to vector<8x1xf32>
    %115 = arith.divf %113, %114 : vector<8x1xf32>
    %116 = vector.broadcast %115 : vector<8x1xf32> to vector<8x32xf32>
    %117 = arith.subf %111, %116 : vector<8x32xf32>
    %118 = arith.mulf %117, %117 : vector<8x32xf32>
    %cst_38 = arith.constant dense<0.000000e+00> : vector<8xf32>
    %119 = vector.multi_reduction <add>, %118, %cst_38 [1] : vector<8x32xf32> to vector<8xf32>
    %120 = vector.shape_cast %119 : vector<8xf32> to vector<8x1xf32>
    %cst_39 = arith.constant 3.200000e+01 : f32
    %121 = vector.broadcast %cst_39 : f32 to vector<8x1xf32>
    %122 = arith.divf %120, %121 : vector<8x1xf32>
    %cst_40 = arith.constant 9.99999974E-6 : f32
    %123 = vector.broadcast %cst_40 : f32 to vector<8x1xf32>
    %124 = arith.addf %122, %123 : vector<8x1xf32>
    %125 = math.rsqrt %124 : vector<8x1xf32>
    %126 = vector.broadcast %125 : vector<8x1xf32> to vector<8x32xf32>
    %127 = arith.mulf %117, %126 : vector<8x32xf32>
    %c0_41 = arith.constant 0 : index
    %c0_42 = arith.constant 0 : index
    %128 = vector.load %arg7[%c0_41, %c0_42] : memref<1x32xf32, #tpu.memory_space<vmem>>, vector<1x32xf32>
    %129 = vector.broadcast %128 : vector<1x32xf32> to vector<8x32xf32>
    %130 = arith.mulf %127, %129 : vector<8x32xf32>
    %c0_43 = arith.constant 0 : index
    %c0_44 = arith.constant 0 : index
    %131 = vector.load %arg8[%c0_43, %c0_44] : memref<1x32xf32, #tpu.memory_space<vmem>>, vector<1x32xf32>
    %132 = vector.broadcast %131 : vector<1x32xf32> to vector<8x32xf32>
    %133 = arith.addf %130, %132 : vector<8x32xf32>
    %134 = arith.truncf %133 : vector<8x32xf32> to vector<8x32xbf16>
    %c0_45 = arith.constant 0 : index
    %c0_46 = arith.constant 0 : index
    %135 = vector.load %arg9[%c0_45, %c0_46] : memref<32x128xbf16, #tpu.memory_space<vmem>>, vector<32x128xbf16>
    %cst_47 = arith.constant dense<0.000000e+00> : vector<8x128xf32>
    %136 = tpu.matmul %134, %135, %cst_47 {dimension_numbers = #tpu.dot_dimension_numbers<[1], [0], [0], [1], [0, 0, 1, 1], [], []>} : vector<8x32xbf16>, vector<32x128xbf16>, vector<8x128xf32> -> vector<8x128xf32>
    %c0_48 = arith.constant 0 : index
    %c0_49 = arith.constant 0 : index
    %137 = vector.load %arg10[%c0_48, %c0_49] : memref<1x128xf32, #tpu.memory_space<vmem>>, vector<1x128xf32>
    %138 = vector.broadcast %137 : vector<1x128xf32> to vector<8x128xf32>
    %139 = arith.addf %136, %138 : vector<8x128xf32>
    %c0_50 = arith.constant 0 : index
    %c0_51 = arith.constant 0 : index
    %140 = vector.load %arg11[%c0_50, %c0_51] : memref<32x128xbf16, #tpu.memory_space<vmem>>, vector<32x128xbf16>
    %cst_52 = arith.constant dense<0.000000e+00> : vector<8x128xf32>
    %141 = tpu.matmul %134, %140, %cst_52 {dimension_numbers = #tpu.dot_dimension_numbers<[1], [0], [0], [1], [0, 0, 1, 1], [], []>} : vector<8x32xbf16>, vector<32x128xbf16>, vector<8x128xf32> -> vector<8x128xf32>
    %c0_53 = arith.constant 0 : index
    %c0_54 = arith.constant 0 : index
    %142 = vector.load %arg12[%c0_53, %c0_54] : memref<1x128xf32, #tpu.memory_space<vmem>>, vector<1x128xf32>
    %143 = vector.broadcast %142 : vector<1x128xf32> to vector<8x128xf32>
    %144 = arith.addf %141, %143 : vector<8x128xf32>
    %cst_55 = arith.constant 0.000000e+00 : f32
    %145 = vector.broadcast %cst_55 : f32 to vector<8x128xf32>
    %146 = arith.maximumf %144, %145 : vector<8x128xf32>
    %147 = arith.truncf %146 : vector<8x128xf32> to vector<8x128xbf16>
    %c0_56 = arith.constant 0 : index
    %c0_57 = arith.constant 0 : index
    %148 = vector.load %arg13[%c0_56, %c0_57] : memref<128x128xbf16, #tpu.memory_space<vmem>>, vector<128x128xbf16>
    %cst_58 = arith.constant dense<0.000000e+00> : vector<8x128xf32>
    %149 = tpu.matmul %147, %148, %cst_58 {dimension_numbers = #tpu.dot_dimension_numbers<[1], [0], [0], [1], [0, 0, 1, 1], [], []>} : vector<8x128xbf16>, vector<128x128xbf16>, vector<8x128xf32> -> vector<8x128xf32>
    %c0_59 = arith.constant 0 : index
    %c0_60 = arith.constant 0 : index
    %150 = vector.load %arg14[%c0_59, %c0_60] : memref<1x128xf32, #tpu.memory_space<vmem>>, vector<1x128xf32>
    %151 = vector.broadcast %150 : vector<1x128xf32> to vector<8x128xf32>
    %152 = arith.addf %149, %151 : vector<8x128xf32>
    %153 = arith.addf %139, %152 : vector<8x128xf32>
    %154 = vector.shape_cast %153 : vector<8x128xf32> to vector<1x8x128xf32>
    %c0_61 = arith.constant 0 : index
    %c0_62 = arith.constant 0 : index
    %c0_63 = arith.constant 0 : index
    %155 = vector.load %arg15[%c0_61, %c0_62, %c0_63] : memref<1x8x128xf32, #tpu.memory_space<vmem>>, vector<1x8x128xf32>
    tpu.vector_store %arg15[%c0_61, %c0_62, %c0_63], %154 {strides = array<i32>} : memref<1x8x128xf32, #tpu.memory_space<vmem>>, vector<1x8x128xf32>,
    return
  }
  func.func @transform_0(%arg0: i32) -> (i32, i32, i32) {
    %c0_i32 = arith.constant 0 : i32
    %c0_i32_0 = arith.constant 0 : i32
    %c0_i32_1 = arith.constant 0 : i32
    return %arg0, %c0_i32, %c0_i32_0 : i32, i32, i32
  }
  func.func @transform_1(%arg0: i32) -> (i32, i32) {
    %c0_i32 = arith.constant 0 : i32
    %c0_i32_0 = arith.constant 0 : i32
    %c0_i32_1 = arith.constant 0 : i32
    return %c0_i32, %c0_i32_0 : i32, i32
  }
  func.func @transform_2(%arg0: i32) -> (i32, i32) {
    %c0_i32 = arith.constant 0 : i32
    %c0_i32_0 = arith.constant 0 : i32
    %c0_i32_1 = arith.constant 0 : i32
    return %c0_i32, %c0_i32_0 : i32, i32
  }
  func.func @transform_3(%arg0: i32) -> (i32, i32) {
    %c0_i32 = arith.constant 0 : i32
    %c0_i32_0 = arith.constant 0 : i32
    %c0_i32_1 = arith.constant 0 : i32
    return %c0_i32, %c0_i32_0 : i32, i32
  }
  func.func @transform_4(%arg0: i32) -> (i32, i32) {
    %c0_i32 = arith.constant 0 : i32
    %c0_i32_0 = arith.constant 0 : i32
    %c0_i32_1 = arith.constant 0 : i32
    return %c0_i32, %c0_i32_0 : i32, i32
  }
  func.func @transform_5(%arg0: i32) -> (i32, i32) {
    %c0_i32 = arith.constant 0 : i32
    %c0_i32_0 = arith.constant 0 : i32
    %c0_i32_1 = arith.constant 0 : i32
    return %c0_i32, %c0_i32_0 : i32, i32
  }
  func.func @transform_6(%arg0: i32) -> (i32, i32) {
    %c0_i32 = arith.constant 0 : i32
    %c0_i32_0 = arith.constant 0 : i32
    %c0_i32_1 = arith.constant 0 : i32
    return %c0_i32, %c0_i32_0 : i32, i32
  }
  func.func @transform_7(%arg0: i32) -> (i32, i32) {
    %c0_i32 = arith.constant 0 : i32
    %c0_i32_0 = arith.constant 0 : i32
    %c0_i32_1 = arith.constant 0 : i32
    return %c0_i32, %c0_i32_0 : i32, i32
  }
  func.func @transform_8(%arg0: i32) -> (i32, i32) {
    %c0_i32 = arith.constant 0 : i32
    %c0_i32_0 = arith.constant 0 : i32
    %c0_i32_1 = arith.constant 0 : i32
    return %c0_i32, %c0_i32_0 : i32, i32
  }
  func.func @transform_9(%arg0: i32) -> (i32, i32) {
    %c0_i32 = arith.constant 0 : i32
    %c0_i32_0 = arith.constant 0 : i32
    %c0_i32_1 = arith.constant 0 : i32
    return %c0_i32, %c0_i32_0 : i32, i32
  }
  func.func @transform_10(%arg0: i32) -> (i32, i32) {
    %c0_i32 = arith.constant 0 : i32
    %c0_i32_0 = arith.constant 0 : i32
    %c0_i32_1 = arith.constant 0 : i32
    return %c0_i32, %c0_i32_0 : i32, i32
  }
  func.func @transform_11(%arg0: i32) -> (i32, i32) {
    %c0_i32 = arith.constant 0 : i32
    %c0_i32_0 = arith.constant 0 : i32
    %c0_i32_1 = arith.constant 0 : i32
    return %c0_i32, %c0_i32_0 : i32, i32
  }
  func.func @transform_12(%arg0: i32) -> (i32, i32) {
    %c0_i32 = arith.constant 0 : i32
    %c0_i32_0 = arith.constant 0 : i32
    %c0_i32_1 = arith.constant 0 : i32
    return %c0_i32, %c0_i32_0 : i32, i32
  }
  func.func @transform_13(%arg0: i32) -> (i32, i32) {
    %c0_i32 = arith.constant 0 : i32
    %c0_i32_0 = arith.constant 0 : i32
    %c0_i32_1 = arith.constant 0 : i32
    return %c0_i32, %c0_i32_0 : i32, i32
  }
  func.func @transform_14(%arg0: i32) -> (i32, i32, i32) {
    %c0_i32 = arith.constant 0 : i32
    %c0_i32_0 = arith.constant 0 : i32
    %c0_i32_1 = arith.constant 0 : i32
    return %arg0, %c0_i32, %c0_i32_0 : i32, i32, i32
  }
}

module attributes {stable_mosaic.version = 11 : i64} {
  func.func @decoder_layer_kernel(%arg0: i32, %arg1: memref<1x8x32xf32, #tpu.memory_space<vmem>>, %arg2: memref<8x8xf32, #tpu.memory_space<vmem>>, %arg3: memref<32x96xbf16, #tpu.memory_space<vmem>>, %arg4: memref<1x96xf32, #tpu.memory_space<vmem>>, %arg5: memref<32x32xbf16, #tpu.memory_space<vmem>>, %arg6: memref<1x32xf32, #tpu.memory_space<vmem>>, %arg7: memref<1x32xf32, #tpu.memory_space<vmem>>, %arg8: memref<1x32xf32, #tpu.memory_space<vmem>>, %arg9: memref<32x128xbf16, #tpu.memory_space<vmem>>, %arg10: memref<1x128xf32, #tpu.memory_space<vmem>>, %arg11: memref<32x128xbf16, #tpu.memory_space<vmem>>, %arg12: memref<1x128xf32, #tpu.memory_space<vmem>>, %arg13: memref<128x128xbf16, #tpu.memory_space<vmem>>, %arg14: memref<1x128xf32, #tpu.memory_space<vmem>>, %arg15: memref<1x8x128xf32, #tpu.memory_space<vmem>>, %arg16: memref<8x32xf32, #tpu.memory_space<vmem>>) attributes {dimension_semantics = [#tpu.dimension_semantics<parallel>], iteration_bounds = array<i64: 2>, scalar_prefetch = 0 : i64, scratch_operands = 1 : i64, tpu.core_type = #tpu.core_type<tc>, window_params = [{transform_indices = @transform_0, window_bounds = array<i64: 1, 8, 32>}, {pipeline_mode = #tpu.pipeline_mode<synchronous>, transform_indices = @transform_1, window_bounds = array<i64: 8, 8>}, {pipeline_mode = #tpu.pipeline_mode<synchronous>, transform_indices = @transform_2, window_bounds = array<i64: 32, 96>}, {pipeline_mode = #tpu.pipeline_mode<synchronous>, transform_indices = @transform_3, window_bounds = array<i64: 1, 96>}, {pipeline_mode = #tpu.pipeline_mode<synchronous>, transform_indices = @transform_4, window_bounds = array<i64: 32, 32>}, {pipeline_mode = #tpu.pipeline_mode<synchronous>, transform_indices = @transform_5, window_bounds = array<i64: 1, 32>}, {pipeline_mode = #tpu.pipeline_mode<synchronous>, transform_indices = @transform_6, window_bounds = array<i64: 1, 32>}, {pipeline_mode = #tpu.pipeline_mode<synchronous>, transform_indices = @transform_7, window_bounds = array<i64: 1, 32>}, {pipeline_mode = #tpu.pipeline_mode<synchronous>, transform_indices = @transform_8, window_bounds = array<i64: 32, 128>}, {pipeline_mode = #tpu.pipeline_mode<synchronous>, transform_indices = @transform_9, window_bounds = array<i64: 1, 128>}, {pipeline_mode = #tpu.pipeline_mode<synchronous>, transform_indices = @transform_10, window_bounds = array<i64: 32, 128>}, {pipeline_mode = #tpu.pipeline_mode<synchronous>, transform_indices = @transform_11, window_bounds = array<i64: 1, 128>}, {pipeline_mode = #tpu.pipeline_mode<synchronous>, transform_indices = @transform_12, window_bounds = array<i64: 128, 128>}, {pipeline_mode = #tpu.pipeline_mode<synchronous>, transform_indices = @transform_13, window_bounds = array<i64: 1, 128>}, {transform_indices = @transform_14, window_bounds = array<i64: 1, 8, 128>}]} {
    %c0 = arith.constant 0 : index
    %c0_0 = arith.constant 0 : index
    %c0_1 = arith.constant 0 : index
    %0 = vector.load %arg1[%c0, %c0_0, %c0_1] : memref<1x8x32xf32, #tpu.memory_space<vmem>>, vector<1x8x32xf32>
    %1 = vector.shape_cast %0 : vector<1x8x32xf32> to vector<8x32xf32>
    %2 = arith.truncf %1 : vector<8x32xf32> to vector<8x32xbf16>
    %c0_2 = arith.constant 0 : index
    %c0_3 = arith.constant 0 : index
    %3 = vector.load %arg2[%c0_2, %c0_3] : memref<8x8xf32, #tpu.memory_space<vmem>>, vector<8x8xf32>
    %4 = vector.shape_cast %3 : vector<8x8xf32> to vector<1x8x8xf32>
    %c0_4 = arith.constant 0 : index
    %c0_5 = arith.constant 0 : index
    %5 = vector.load %arg3[%c0_4, %c0_5] : memref<32x96xbf16, #tpu.memory_space<vmem>>, vector<32x96xbf16>
    %cst = arith.constant dense<0.000000e+00> : vector<8x96xf32>
    %6 = tpu.matmul %2, %5, %cst {dimension_numbers = #tpu.dot_dimension_numbers<[1], [0], [0], [1], [0, 0, 1, 1], [], []>} : vector<8x32xbf16>, vector<32x96xbf16>, vector<8x96xf32> -> vector<8x96xf32>
    %c0_6 = arith.constant 0 : index
    %c0_7 = arith.constant 0 : index
    %7 = vector.load %arg4[%c0_6, %c0_7] : memref<1x96xf32, #tpu.memory_space<vmem>>, vector<1x96xf32>
    %8 = vector.broadcast %7 : vector<1x96xf32> to vector<8x96xf32>
    %9 = arith.addf %6, %8 : vector<8x96xf32>
    %10 = vector.extract_strided_slice %9 {offsets = [0, 0], sizes = [8, 32], strides = [1, 1]} : vector<8x96xf32> to vector<8x32xf32>
    %11 = arith.truncf %10 : vector<8x32xf32> to vector<8x32xbf16>
    %12 = vector.extract_strided_slice %9 {offsets = [0, 32], sizes = [8, 32], strides = [1, 1]} : vector<8x96xf32> to vector<8x32xf32>
    %13 = arith.truncf %12 : vector<8x32xf32> to vector<8x32xbf16>
    %14 = vector.extract_strided_slice %9 {offsets = [0, 64], sizes = [8, 32], strides = [1, 1]} : vector<8x96xf32> to vector<8x32xf32>
    %15 = arith.truncf %14 : vector<8x32xf32> to vector<8x32xbf16>
    %16 = vector.extract_strided_slice %11 {offsets = [0, 0], sizes = [8, 8], strides = [1, 1]} : vector<8x32xbf16> to vector<8x8xbf16>
    %17 = vector.shape_cast %16 : vector<8x8xbf16> to vector<1x8x8xbf16>
    %18 = vector.extract_strided_slice %13 {offsets = [0, 0], sizes = [8, 8], strides = [1, 1]} : vector<8x32xbf16> to vector<8x8xbf16>
    %19 = vector.shape_cast %18 : vector<8x8xbf16> to vector<1x8x8xbf16>
    %20 = vector.extract_strided_slice %15 {offsets = [0, 0], sizes = [8, 8], strides = [1, 1]} : vector<8x32xbf16> to vector<8x8xbf16>
    %21 = vector.shape_cast %20 : vector<8x8xbf16> to vector<1x8x8xbf16>
    "tpu.trace_start"() <{level = 10 : i32, message = "bqd,bkd->bqk"}> : () -> ()
    %cst_8 = arith.constant dense<0.000000e+00> : vector<1x8x8xf32>
    %22 = tpu.matmul %17, %19, %cst_8 {dimension_numbers = #tpu.dot_dimension_numbers<[2], [2], [1], [1], [0, 0, 0, 1, 1, 1], [0], [0]>} : vector<1x8x8xbf16>, vector<1x8x8xbf16>, vector<1x8x8xf32> -> vector<1x8x8xf32>
    "tpu.trace_stop"() : () -> ()
    %23 = arith.addf %22, %4 : vector<1x8x8xf32>
    %cst_9 = arith.constant dense<0xFF800000> : vector<1x8xf32>
    %24 = vector.multi_reduction <maximumf>, %23, %cst_9 [2] : vector<1x8x8xf32> to vector<1x8xf32>
    %25 = vector.shape_cast %24 : vector<1x8xf32> to vector<1x8x1xf32>
    %26 = vector.broadcast %25 : vector<1x8x1xf32> to vector<1x8x8xf32>
    %27 = arith.subf %23, %26 : vector<1x8x8xf32>
    %28 = math.exp %27 : vector<1x8x8xf32>
    %cst_10 = arith.constant dense<0.000000e+00> : vector<1x8xf32>
    %29 = vector.multi_reduction <add>, %28, %cst_10 [2] : vector<1x8x8xf32> to vector<1x8xf32>
    %30 = vector.shape_cast %29 : vector<1x8xf32> to vector<1x8x1xf32>
    %31 = tpu.reciprocal %30 {approx = true} : vector<1x8x1xf32> -> vector<1x8x1xf32>
    %32 = vector.broadcast %31 : vector<1x8x1xf32> to vector<1x8x8xf32>
    %33 = arith.mulf %28, %32 : vector<1x8x8xf32>
    %34 = arith.truncf %33 : vector<1x8x8xf32> to vector<1x8x8xbf16>
    "tpu.trace_start"() <{level = 10 : i32, message = "bqk,bkd->bqd"}> : () -> ()
    %cst_11 = arith.constant dense<0.000000e+00> : vector<1x8x8xf32>
    %35 = tpu.matmul %34, %21, %cst_11 {dimension_numbers = #tpu.dot_dimension_numbers<[2], [1], [1], [2], [0, 0, 0, 1, 1, 2], [0], [0]>} : vector<1x8x8xbf16>, vector<1x8x8xbf16>, vector<1x8x8xf32> -> vector<1x8x8xf32>
    "tpu.trace_stop"() : () -> ()
    %36 = vector.shape_cast %35 : vector<1x8x8xf32> to vector<8x8xf32>
    %c0_12 = arith.constant 0 : index
    %c0_13 = arith.constant 0 : index
    %37 = vector.load %arg16[%c0_12, %c0_13] : memref<8x32xf32, #tpu.memory_space<vmem>>, vector<8x8xf32>
    tpu.vector_store %arg16[%c0_12, %c0_13], %36 {strides = array<i32>} : memref<8x32xf32, #tpu.memory_space<vmem>>, vector<8x8xf32>,
    %38 = vector.extract_strided_slice %11 {offsets = [0, 8], sizes = [8, 8], strides = [1, 1]} : vector<8x32xbf16> to vector<8x8xbf16>
    %39 = vector.shape_cast %38 : vector<8x8xbf16> to vector<1x8x8xbf16>
    %40 = vector.extract_strided_slice %13 {offsets = [0, 8], sizes = [8, 8], strides = [1, 1]} : vector<8x32xbf16> to vector<8x8xbf16>
    %41 = vector.shape_cast %40 : vector<8x8xbf16> to vector<1x8x8xbf16>
    %42 = vector.extract_strided_slice %15 {offsets = [0, 8], sizes = [8, 8], strides = [1, 1]} : vector<8x32xbf16> to vector<8x8xbf16>
    %43 = vector.shape_cast %42 : vector<8x8xbf16> to vector<1x8x8xbf16>
    "tpu.trace_start"() <{level = 10 : i32, message = "bqd,bkd->bqk"}> : () -> ()
    %cst_14 = arith.constant dense<0.000000e+00> : vector<1x8x8xf32>
    %44 = tpu.matmul %39, %41, %cst_14 {dimension_numbers = #tpu.dot_dimension_numbers<[2], [2], [1], [1], [0, 0, 0, 1, 1, 1], [0], [0]>} : vector<1x8x8xbf16>, vector<1x8x8xbf16>, vector<1x8x8xf32> -> vector<1x8x8xf32>
    "tpu.trace_stop"() : () -> ()
    %45 = arith.addf %44, %4 : vector<1x8x8xf32>
    %cst_15 = arith.constant dense<0xFF800000> : vector<1x8xf32>
    %46 = vector.multi_reduction <maximumf>, %45, %cst_15 [2] : vector<1x8x8xf32> to vector<1x8xf32>
    %47 = vector.shape_cast %46 : vector<1x8xf32> to vector<1x8x1xf32>
    %48 = vector.broadcast %47 : vector<1x8x1xf32> to vector<1x8x8xf32>
    %49 = arith.subf %45, %48 : vector<1x8x8xf32>
    %50 = math.exp %49 : vector<1x8x8xf32>
    %cst_16 = arith.constant dense<0.000000e+00> : vector<1x8xf32>
    %51 = vector.multi_reduction <add>, %50, %cst_16 [2] : vector<1x8x8xf32> to vector<1x8xf32>
    %52 = vector.shape_cast %51 : vector<1x8xf32> to vector<1x8x1xf32>
    %53 = tpu.reciprocal %52 {approx = true} : vector<1x8x1xf32> -> vector<1x8x1xf32>
    %54 = vector.broadcast %53 : vector<1x8x1xf32> to vector<1x8x8xf32>
    %55 = arith.mulf %50, %54 : vector<1x8x8xf32>
    %56 = arith.truncf %55 : vector<1x8x8xf32> to vector<1x8x8xbf16>
    "tpu.trace_start"() <{level = 10 : i32, message = "bqk,bkd->bqd"}> : () -> ()
    %cst_17 = arith.constant dense<0.000000e+00> : vector<1x8x8xf32>
    %57 = tpu.matmul %56, %43, %cst_17 {dimension_numbers = #tpu.dot_dimension_numbers<[2], [1], [1], [2], [0, 0, 0, 1, 1, 2], [0], [0]>} : vector<1x8x8xbf16>, vector<1x8x8xbf16>, vector<1x8x8xf32> -> vector<1x8x8xf32>
    "tpu.trace_stop"() : () -> ()
    %58 = vector.shape_cast %57 : vector<1x8x8xf32> to vector<8x8xf32>
    %c0_18 = arith.constant 0 : index
    %c8 = arith.constant 8 : index
    %59 = vector.load %arg16[%c0_18, %c8] : memref<8x32xf32, #tpu.memory_space<vmem>>, vector<8x8xf32>
    tpu.vector_store %arg16[%c0_18, %c8], %58 {strides = array<i32>} : memref<8x32xf32, #tpu.memory_space<vmem>>, vector<8x8xf32>,
    %60 = vector.extract_strided_slice %11 {offsets = [0, 16], sizes = [8, 8], strides = [1, 1]} : vector<8x32xbf16> to vector<8x8xbf16>
    %61 = vector.shape_cast %60 : vector<8x8xbf16> to vector<1x8x8xbf16>
    %62 = vector.extract_strided_slice %13 {offsets = [0, 16], sizes = [8, 8], strides = [1, 1]} : vector<8x32xbf16> to vector<8x8xbf16>
    %63 = vector.shape_cast %62 : vector<8x8xbf16> to vector<1x8x8xbf16>
    %64 = vector.extract_strided_slice %15 {offsets = [0, 16], sizes = [8, 8], strides = [1, 1]} : vector<8x32xbf16> to vector<8x8xbf16>
    %65 = vector.shape_cast %64 : vector<8x8xbf16> to vector<1x8x8xbf16>
    "tpu.trace_start"() <{level = 10 : i32, message = "bqd,bkd->bqk"}> : () -> ()
    %cst_19 = arith.constant dense<0.000000e+00> : vector<1x8x8xf32>
    %66 = tpu.matmul %61, %63, %cst_19 {dimension_numbers = #tpu.dot_dimension_numbers<[2], [2], [1], [1], [0, 0, 0, 1, 1, 1], [0], [0]>} : vector<1x8x8xbf16>, vector<1x8x8xbf16>, vector<1x8x8xf32> -> vector<1x8x8xf32>
    "tpu.trace_stop"() : () -> ()
    %67 = arith.addf %66, %4 : vector<1x8x8xf32>
    %cst_20 = arith.constant dense<0xFF800000> : vector<1x8xf32>
    %68 = vector.multi_reduction <maximumf>, %67, %cst_20 [2] : vector<1x8x8xf32> to vector<1x8xf32>
    %69 = vector.shape_cast %68 : vector<1x8xf32> to vector<1x8x1xf32>
    %70 = vector.broadcast %69 : vector<1x8x1xf32> to vector<1x8x8xf32>
    %71 = arith.subf %67, %70 : vector<1x8x8xf32>
    %72 = math.exp %71 : vector<1x8x8xf32>
    %cst_21 = arith.constant dense<0.000000e+00> : vector<1x8xf32>
    %73 = vector.multi_reduction <add>, %72, %cst_21 [2] : vector<1x8x8xf32> to vector<1x8xf32>
    %74 = vector.shape_cast %73 : vector<1x8xf32> to vector<1x8x1xf32>
    %75 = tpu.reciprocal %74 {approx = true} : vector<1x8x1xf32> -> vector<1x8x1xf32>
    %76 = vector.broadcast %75 : vector<1x8x1xf32> to vector<1x8x8xf32>
    %77 = arith.mulf %72, %76 : vector<1x8x8xf32>
    %78 = arith.truncf %77 : vector<1x8x8xf32> to vector<1x8x8xbf16>
    "tpu.trace_start"() <{level = 10 : i32, message = "bqk,bkd->bqd"}> : () -> ()
    %cst_22 = arith.constant dense<0.000000e+00> : vector<1x8x8xf32>
    %79 = tpu.matmul %78, %65, %cst_22 {dimension_numbers = #tpu.dot_dimension_numbers<[2], [1], [1], [2], [0, 0, 0, 1, 1, 2], [0], [0]>} : vector<1x8x8xbf16>, vector<1x8x8xbf16>, vector<1x8x8xf32> -> vector<1x8x8xf32>
    "tpu.trace_stop"() : () -> ()
    %80 = vector.shape_cast %79 : vector<1x8x8xf32> to vector<8x8xf32>
    %c0_23 = arith.constant 0 : index
    %c16 = arith.constant 16 : index
    %81 = vector.load %arg16[%c0_23, %c16] : memref<8x32xf32, #tpu.memory_space<vmem>>, vector<8x8xf32>
    tpu.vector_store %arg16[%c0_23, %c16], %80 {strides = array<i32>} : memref<8x32xf32, #tpu.memory_space<vmem>>, vector<8x8xf32>,
    %82 = vector.extract_strided_slice %11 {offsets = [0, 24], sizes = [8, 8], strides = [1, 1]} : vector<8x32xbf16> to vector<8x8xbf16>
    %83 = vector.shape_cast %82 : vector<8x8xbf16> to vector<1x8x8xbf16>
    %84 = vector.extract_strided_slice %13 {offsets = [0, 24], sizes = [8, 8], strides = [1, 1]} : vector<8x32xbf16> to vector<8x8xbf16>
    %85 = vector.shape_cast %84 : vector<8x8xbf16> to vector<1x8x8xbf16>
    %86 = vector.extract_strided_slice %15 {offsets = [0, 24], sizes = [8, 8], strides = [1, 1]} : vector<8x32xbf16> to vector<8x8xbf16>
    %87 = vector.shape_cast %86 : vector<8x8xbf16> to vector<1x8x8xbf16>
    "tpu.trace_start"() <{level = 10 : i32, message = "bqd,bkd->bqk"}> : () -> ()
    %cst_24 = arith.constant dense<0.000000e+00> : vector<1x8x8xf32>
    %88 = tpu.matmul %83, %85, %cst_24 {dimension_numbers = #tpu.dot_dimension_numbers<[2], [2], [1], [1], [0, 0, 0, 1, 1, 1], [0], [0]>} : vector<1x8x8xbf16>, vector<1x8x8xbf16>, vector<1x8x8xf32> -> vector<1x8x8xf32>
    "tpu.trace_stop"() : () -> ()
    %89 = arith.addf %88, %4 : vector<1x8x8xf32>
    %cst_25 = arith.constant dense<0xFF800000> : vector<1x8xf32>
    %90 = vector.multi_reduction <maximumf>, %89, %cst_25 [2] : vector<1x8x8xf32> to vector<1x8xf32>
    %91 = vector.shape_cast %90 : vector<1x8xf32> to vector<1x8x1xf32>
    %92 = vector.broadcast %91 : vector<1x8x1xf32> to vector<1x8x8xf32>
    %93 = arith.subf %89, %92 : vector<1x8x8xf32>
    %94 = math.exp %93 : vector<1x8x8xf32>
    %cst_26 = arith.constant dense<0.000000e+00> : vector<1x8xf32>
    %95 = vector.multi_reduction <add>, %94, %cst_26 [2] : vector<1x8x8xf32> to vector<1x8xf32>
    %96 = vector.shape_cast %95 : vector<1x8xf32> to vector<1x8x1xf32>
    %97 = tpu.reciprocal %96 {approx = true} : vector<1x8x1xf32> -> vector<1x8x1xf32>
    %98 = vector.broadcast %97 : vector<1x8x1xf32> to vector<1x8x8xf32>
    %99 = arith.mulf %94, %98 : vector<1x8x8xf32>
    %100 = arith.truncf %99 : vector<1x8x8xf32> to vector<1x8x8xbf16>
    "tpu.trace_start"() <{level = 10 : i32, message = "bqk,bkd->bqd"}> : () -> ()
    %cst_27 = arith.constant dense<0.000000e+00> : vector<1x8x8xf32>
    %101 = tpu.matmul %100, %87, %cst_27 {dimension_numbers = #tpu.dot_dimension_numbers<[2], [1], [1], [2], [0, 0, 0, 1, 1, 2], [0], [0]>} : vector<1x8x8xbf16>, vector<1x8x8xbf16>, vector<1x8x8xf32> -> vector<1x8x8xf32>
    "tpu.trace_stop"() : () -> ()
    %102 = vector.shape_cast %101 : vector<1x8x8xf32> to vector<8x8xf32>
    %c0_28 = arith.constant 0 : index
    %c24 = arith.constant 24 : index
    %103 = vector.load %arg16[%c0_28, %c24] : memref<8x32xf32, #tpu.memory_space<vmem>>, vector<8x8xf32>
    tpu.vector_store %arg16[%c0_28, %c24], %102 {strides = array<i32>} : memref<8x32xf32, #tpu.memory_space<vmem>>, vector<8x8xf32>,
    %c0_29 = arith.constant 0 : index
    %c0_30 = arith.constant 0 : index
    %104 = vector.load %arg16[%c0_29, %c0_30] : memref<8x32xf32, #tpu.memory_space<vmem>>, vector<8x32xf32>
    %105 = arith.truncf %104 : vector<8x32xf32> to vector<8x32xbf16>
    %c0_31 = arith.constant 0 : index
    %c0_32 = arith.constant 0 : index
    %106 = vector.load %arg5[%c0_31, %c0_32] : memref<32x32xbf16, #tpu.memory_space<vmem>>, vector<32x32xbf16>
    %cst_33 = arith.constant dense<0.000000e+00> : vector<8x32xf32>
    %107 = tpu.matmul %105, %106, %cst_33 {dimension_numbers = #tpu.dot_dimension_numbers<[1], [0], [0], [1], [0, 0, 1, 1], [], []>} : vector<8x32xbf16>, vector<32x32xbf16>, vector<8x32xf32> -> vector<8x32xf32>
    %c0_34 = arith.constant 0 : index
    %c0_35 = arith.constant 0 : index
    %108 = vector.load %arg6[%c0_34, %c0_35] : memref<1x32xf32, #tpu.memory_space<vmem>>, vector<1x32xf32>
    %109 = vector.broadcast %108 : vector<1x32xf32> to vector<8x32xf32>
    %110 = arith.addf %107, %109 : vector<8x32xf32>
    %111 = arith.addf %1, %110 : vector<8x32xf32>
    %cst_36 = arith.constant dense<0.000000e+00> : vector<8xf32>
    %112 = vector.multi_reduction <add>, %111, %cst_36 [1] : vector<8x32xf32> to vector<8xf32>
    %113 = vector.shape_cast %112 : vector<8xf32> to vector<8x1xf32>
    %cst_37 = arith.constant 3.200000e+01 : f32
    %114 = vector.broadcast %cst_37 : f32 to vector<8x1xf32>
    %115 = arith.divf %113, %114 : vector<8x1xf32>
    %116 = vector.broadcast %115 : vector<8x1xf32> to vector<8x32xf32>
    %117 = arith.subf %111, %116 : vector<8x32xf32>
    %118 = arith.mulf %117, %117 : vector<8x32xf32>
    %cst_38 = arith.constant dense<0.000000e+00> : vector<8xf32>
    %119 = vector.multi_reduction <add>, %118, %cst_38 [1] : vector<8x32xf32> to vector<8xf32>
    %120 = vector.shape_cast %119 : vector<8xf32> to vector<8x1xf32>
    %cst_39 = arith.constant 3.200000e+01 : f32
    %121 = vector.broadcast %cst_39 : f32 to vector<8x1xf32>
    %122 = arith.divf %120, %121 : vector<8x1xf32>
    %cst_40 = arith.constant 9.99999974E-6 : f32
    %123 = vector.broadcast %cst_40 : f32 to vector<8x1xf32>
    %124 = arith.addf %122, %123 : vector<8x1xf32>
    %125 = math.rsqrt %124 : vector<8x1xf32>
    %126 = vector.broadcast %125 : vector<8x1xf32> to vector<8x32xf32>
    %127 = arith.mulf %117, %126 : vector<8x32xf32>
    %c0_41 = arith.constant 0 : index
    %c0_42 = arith.constant 0 : index
    %128 = vector.load %arg7[%c0_41, %c0_42] : memref<1x32xf32, #tpu.memory_space<vmem>>, vector<1x32xf32>
    %129 = vector.broadcast %128 : vector<1x32xf32> to vector<8x32xf32>
    %130 = arith.mulf %127, %129 : vector<8x32xf32>
    %c0_43 = arith.constant 0 : index
    %c0_44 = arith.constant 0 : index
    %131 = vector.load %arg8[%c0_43, %c0_44] : memref<1x32xf32, #tpu.memory_space<vmem>>, vector<1x32xf32>
    %132 = vector.broadcast %131 : vector<1x32xf32> to vector<8x32xf32>
    %133 = arith.addf %130, %132 : vector<8x32xf32>
    %134 = arith.truncf %133 : vector<8x32xf32> to vector<8x32xbf16>
    %c0_45 = arith.constant 0 : index
    %c0_46 = arith.constant 0 : index
    %135 = vector.load %arg9[%c0_45, %c0_46] : memref<32x128xbf16, #tpu.memory_space<vmem>>, vector<32x128xbf16>
    %cst_47 = arith.constant dense<0.000000e+00> : vector<8x128xf32>
    %136 = tpu.matmul %134, %135, %cst_47 {dimension_numbers = #tpu.dot_dimension_numbers<[1], [0], [0], [1], [0, 0, 1, 1], [], []>} : vector<8x32xbf16>, vector<32x128xbf16>, vector<8x128xf32> -> vector<8x128xf32>
    %c0_48 = arith.constant 0 : index
    %c0_49 = arith.constant 0 : index
    %137 = vector.load %arg10[%c0_48, %c0_49] : memref<1x128xf32, #tpu.memory_space<vmem>>, vector<1x128xf32>
    %138 = vector.broadcast %137 : vector<1x128xf32> to vector<8x128xf32>
    %139 = arith.addf %136, %138 : vector<8x128xf32>
    %c0_50 = arith.constant 0 : index
    %c0_51 = arith.constant 0 : index
    %140 = vector.load %arg11[%c0_50, %c0_51] : memref<32x128xbf16, #tpu.memory_space<vmem>>, vector<32x128xbf16>
    %cst_52 = arith.constant dense<0.000000e+00> : vector<8x128xf32>
    %141 = tpu.matmul %134, %140, %cst_52 {dimension_numbers = #tpu.dot_dimension_numbers<[1], [0], [0], [1], [0, 0, 1, 1], [], []>} : vector<8x32xbf16>, vector<32x128xbf16>, vector<8x128xf32> -> vector<8x128xf32>
    %c0_53 = arith.constant 0 : index
    %c0_54 = arith.constant 0 : index
    %142 = vector.load %arg12[%c0_53, %c0_54] : memref<1x128xf32, #tpu.memory_space<vmem>>, vector<1x128xf32>
    %143 = vector.broadcast %142 : vector<1x128xf32> to vector<8x128xf32>
    %144 = arith.addf %141, %143 : vector<8x128xf32>
    %cst_55 = arith.constant 0.000000e+00 : f32
    %145 = vector.broadcast %cst_55 : f32 to vector<8x128xf32>
    %146 = arith.maximumf %144, %145 : vector<8x128xf32>
    %147 = arith.truncf %146 : vector<8x128xf32> to vector<8x128xbf16>
    %c0_56 = arith.constant 0 : index
    %c0_57 = arith.constant 0 : index
    %148 = vector.load %arg13[%c0_56, %c0_57] : memref<128x128xbf16, #tpu.memory_space<vmem>>, vector<128x128xbf16>
    %cst_58 = arith.constant dense<0.000000e+00> : vector<8x128xf32>
    %149 = tpu.matmul %147, %148, %cst_58 {dimension_numbers = #tpu.dot_dimension_numbers<[1], [0], [0], [1], [0, 0, 1, 1], [], []>} : vector<8x128xbf16>, vector<128x128xbf16>, vector<8x128xf32> -> vector<8x128xf32>
    %c0_59 = arith.constant 0 : index
    %c0_60 = arith.constant 0 : index
    %150 = vector.load %arg14[%c0_59, %c0_60] : memref<1x128xf32, #tpu.memory_space<vmem>>, vector<1x128xf32>
    %151 = vector.broadcast %150 : vector<1x128xf32> to vector<8x128xf32>
    %152 = arith.addf %149, %151 : vector<8x128xf32>
    %153 = arith.addf %139, %152 : vector<8x128xf32>
    %154 = vector.shape_cast %153 : vector<8x128xf32> to vector<1x8x128xf32>
    %c0_61 = arith.constant 0 : index
    %c0_62 = arith.constant 0 : index
    %c0_63 = arith.constant 0 : index
    %155 = vector.load %arg15[%c0_61, %c0_62, %c0_63] : memref<1x8x128xf32, #tpu.memory_space<vmem>>, vector<1x8x128xf32>
    tpu.vector_store %arg15[%c0_61, %c0_62, %c0_63], %154 {strides = array<i32>} : memref<1x8x128xf32, #tpu.memory_space<vmem>>, vector<1x8x128xf32>,
    return
  }
  func.func @transform_0(%arg0: i32) -> (i32, i32, i32) {
    %c0_i32 = arith.constant 0 : i32
    %c0_i32_0 = arith.constant 0 : i32
    %c0_i32_1 = arith.constant 0 : i32
    return %arg0, %c0_i32, %c0_i32_0 : i32, i32, i32
  }
  func.func @transform_1(%arg0: i32) -> (i32, i32) {
    %c0_i32 = arith.constant 0 : i32
    %c0_i32_0 = arith.constant 0 : i32
    %c0_i32_1 = arith.constant 0 : i32
    return %c0_i32, %c0_i32_0 : i32, i32
  }
  func.func @transform_2(%arg0: i32) -> (i32, i32) {
    %c0_i32 = arith.constant 0 : i32
    %c0_i32_0 = arith.constant 0 : i32
    %c0_i32_1 = arith.constant 0 : i32
    return %c0_i32, %c0_i32_0 : i32, i32
  }
  func.func @transform_3(%arg0: i32) -> (i32, i32) {
    %c0_i32 = arith.constant 0 : i32
    %c0_i32_0 = arith.constant 0 : i32
    %c0_i32_1 = arith.constant 0 : i32
    return %c0_i32, %c0_i32_0 : i32, i32
  }
  func.func @transform_4(%arg0: i32) -> (i32, i32) {
    %c0_i32 = arith.constant 0 : i32
    %c0_i32_0 = arith.constant 0 : i32
    %c0_i32_1 = arith.constant 0 : i32
    return %c0_i32, %c0_i32_0 : i32, i32
  }
  func.func @transform_5(%arg0: i32) -> (i32, i32) {
    %c0_i32 = arith.constant 0 : i32
    %c0_i32_0 = arith.constant 0 : i32
    %c0_i32_1 = arith.constant 0 : i32
    return %c0_i32, %c0_i32_0 : i32, i32
  }
  func.func @transform_6(%arg0: i32) -> (i32, i32) {
    %c0_i32 = arith.constant 0 : i32
    %c0_i32_0 = arith.constant 0 : i32
    %c0_i32_1 = arith.constant 0 : i32
    return %c0_i32, %c0_i32_0 : i32, i32
  }
  func.func @transform_7(%arg0: i32) -> (i32, i32) {
    %c0_i32 = arith.constant 0 : i32
    %c0_i32_0 = arith.constant 0 : i32
    %c0_i32_1 = arith.constant 0 : i32
    return %c0_i32, %c0_i32_0 : i32, i32
  }
  func.func @transform_8(%arg0: i32) -> (i32, i32) {
    %c0_i32 = arith.constant 0 : i32
    %c0_i32_0 = arith.constant 0 : i32
    %c0_i32_1 = arith.constant 0 : i32
    return %c0_i32, %c0_i32_0 : i32, i32
  }
  func.func @transform_9(%arg0: i32) -> (i32, i32) {
    %c0_i32 = arith.constant 0 : i32
    %c0_i32_0 = arith.constant 0 : i32
    %c0_i32_1 = arith.constant 0 : i32
    return %c0_i32, %c0_i32_0 : i32, i32
  }
  func.func @transform_10(%arg0: i32) -> (i32, i32) {
    %c0_i32 = arith.constant 0 : i32
    %c0_i32_0 = arith.constant 0 : i32
    %c0_i32_1 = arith.constant 0 : i32
    return %c0_i32, %c0_i32_0 : i32, i32
  }
  func.func @transform_11(%arg0: i32) -> (i32, i32) {
    %c0_i32 = arith.constant 0 : i32
    %c0_i32_0 = arith.constant 0 : i32
    %c0_i32_1 = arith.constant 0 : i32
    return %c0_i32, %c0_i32_0 : i32, i32
  }
  func.func @transform_12(%arg0: i32) -> (i32, i32) {
    %c0_i32 = arith.constant 0 : i32
    %c0_i32_0 = arith.constant 0 : i32
    %c0_i32_1 = arith.constant 0 : i32
    return %c0_i32, %c0_i32_0 : i32, i32
  }
  func.func @transform_13(%arg0: i32) -> (i32, i32) {
    %c0_i32 = arith.constant 0 : i32
    %c0_i32_0 = arith.constant 0 : i32
    %c0_i32_1 = arith.constant 0 : i32
    return %c0_i32, %c0_i32_0 : i32, i32
  }
  func.func @transform_14(%arg0: i32) -> (i32, i32, i32) {
    %c0_i32 = arith.constant 0 : i32
    %c0_i32_0 = arith.constant 0 : i32
    %c0_i32_1 = arith.constant 0 : i32
    return %arg0, %c0_i32, %c0_i32_0 : i32, i32, i32
  }
}

</mosaic_0001>

<bundles_post_ra>
// kernel: tpu_custom_call.1
= control target key start
LH: loop header
LB: loop body
LE: loop exit
PB: predicated region body
PF: predicated region fallthrough
CT: control target
= control target key end

     0   :  { %s2862_s0 = inlined_call_operand.hbm [shape: f32[2,8,32], index: 0, kind: input, shape index: {}]   ;;  %s2863_s1 = inlined_call_operand.hbm [shape: f32[8,8], index: 1, kind: input, shape index: {}]   ;;  %s2864_s2 = inlined_call_operand.hbm [shape: bf16[32,96], index: 2, kind: input, shape index: {}]   ;;  %s2865_s3 = inlined_call_operand.vmem [shape: f32[1,96], index: 3, kind: input, shape index: {}]   ;;  %s2866_s4 = inlined_call_operand.hbm [shape: bf16[32,32], index: 4, kind: input, shape index: {}]   ;;  %s2867_s5 = inlined_call_operand.vmem [shape: f32[1,32], index: 5, kind: input, shape index: {}]   ;;  %s2868_s6 = inlined_call_operand.hbm [shape: f32[1,32], index: 6, kind: input, shape index: {}]   ;;  %s2869_s7 = inlined_call_operand.hbm [shape: f32[1,32], index: 7, kind: input, shape index: {}]   ;;  %s2870_s8 = inlined_call_operand.vmem [shape: bf16[32,128], index: 8, kind: input, shape index: {}]   ;;  %s2871_s9 = inlined_call_operand.hbm [shape: f32[1,128], index: 9, kind: input, shape index: {}]   ;;  %s2872_s10 = inlined_call_operand.vmem [shape: bf16[32,128], index: 10, kind: input, shape index: {}]   ;;  %s2873_s11 = inlined_call_operand.vmem [shape: f32[1,128], index: 11, kind: input, shape index: {}]   ;;  %s2874_s12 = inlined_call_operand.hbm [shape: bf16[128,128], index: 12, kind: input, shape index: {}]   ;;  %s2875_s13 = inlined_call_operand.vmem [shape: f32[1,128], index: 13, kind: input, shape index: {}]   ;;  %s2876_s14 = inlined_call_operand.hbm [shape: f32[2,8,128], index: 14, kind: output, shape index: {}]  }
   0x1   :  { %2886 = sst [smem:[#allocation24_spill]] %s2863_s1 }
   0x2   :  { %2887 = sst [smem:[#allocation25_spill]] %s2864_s2 }
   0x3   :  { %2888 = sst [smem:[#allocation26_spill]] %s2866_s4 }
   0x4   :  { %2889 = sst [smem:[#allocation27_spill]] %s2872_s10 }
   0x5   :  { %2890 = sst [smem:[#allocation28_spill]] %s2873_s11 }
   0x6   :  { %2891 = sst [smem:[#allocation29_spill]] %s2875_s13 }
   0x7   :  { %2892 = sst [smem:[#allocation30_spill]] %s2876_s14 }
   0x8   :  { %19 = vsyncpa [#allocation4], 0 }
   0x9   :  { %21 = vsyncpa [#allocation4 + $0x1], 0 }
   0xa   :  { %22 = vsyncpa [#allocation7], 0 }
   0xb   :  { %23 = vsyncpa [#allocation10], 0 }
   0xc   :  { %24 = vsyncpa [#allocation13], 0 }
   0xd   :  { %25 = vsyncpa [#allocation16], 0 }
   0xe   :  { %26 = vsyncpa [#allocation5], 0 }
   0xf   :  { %28 = vsyncpa [#allocation5 + $0x1], 0  ;;  %s2389_s29 = smov 0   ;;  %s2391_s30 = smov 0  }
  0x10   :  { %s2393_s15 = smov 0   ;;  %s2395_s16 = smov 0  }
  0x11 LB: > { %s2287_s17 = smov [#allocation6]   ;;  %s2410_s19 = sadd.s32 4294967295, %s2285_s16   ;;  %s2285_s16 = sphi %s2395_s16, %s2925_s16   ;;  %s2281_s15 = sphi %s2393_s15, %s2924_s15   ;;  %s2277_s30 = sphi %s2391_s30, %s2923_s30   ;;  %s2273_s29 = sphi %s2389_s29, %s2922_s29  }
  0x12   : > { %s377_s18 = sshll.u32 %s2287_s17, 4  ;;  %p1605_p0 = scmp.ge.s32.totalorder %s2285_s16, 1  ;;  %s378_s18 = int_to_ptr.vmem [resolvable:$true] %s377_s18 }
  0x13   : > { %p2878_p1 = scmp.eq.s32.totalorder %s2410_s19, 0  ;;  %p364_p2 = scmp.lt.s32.totalorder %s2285_s16, 3 }
  0x14   : > { %s2288_s21 = smov [#allocation9]   ;;  %s2289_s24 = smov [#allocation12]  }
  0x15   : > { %p2415_p3 = pnand %p1605_p0, %p364_p2  ;;  %s403_s22 = sshll.u32 %s2288_s21, 4  ;;  %s2428_s22 = int_to_ptr.vmem [resolvable:$true] %s403_s22 }
  0x16   : > { %s431_s25 = sshll.u32 %s2289_s24, 4  ;;  %s2895_s1 = sld [smem:[#allocation24_spill]]  ;;  %s2430_s25 = int_to_ptr.vmem [resolvable:$true] %s431_s25 }
  0x17   : > { %s2893_s20 = scalar_select %p2415_p3, 1, 0 }
  0x18   : > { %p1840_p5 = pneg %p2415_p3 }
  0x1a   : > { %p2424_p6 = pnand %p1840_p5, %p2878_p1 }
  0x1c   : > { %s1977_s28 = scalar_lea.hbm %s2895_s1, 128  ;;  %p2440_p8 = pneg %p2424_p6 }
  0x1d   : > { %p1978_p7 = scmp.ne.s32.totalorder %s2895_s1, %s1977_s28  ;;  %p1984_p11 = scmp.lt.u32.totalorder %s1977_s28, %s2895_s1 }
  0x1f   : > { %p1980_p9 = pnand %p2440_p8, %p1978_p7 }
  0x21   : > { %p1981_p10 = pneg %p1980_p9 }
  0x23   : > { %p1986_p12 = pnand %p1984_p11, %p1981_p10 }
  0x25   : > { %1989 = shalt.err (!%p1986_p12)
}
  0x26   : > { %s1990_s26 = scalar_lea.vmem %s378_s18, 128  ;;  %p1998_p5 = scmp.lt.s32.totalorder %s378_s18, %s378_s18 }
  0x27   : > { %p1991_p13 = scmp.ne.s32.totalorder %s378_s18, %s1990_s26  ;;  %p1999_p4 = scmp.lt.s32.totalorder %s1990_s26, %s1990_s26 }
  0x29   : > { %p1993_p0 = pnand %p1991_p13, %p2440_p8  ;;  %p2000_p1 = por %p1999_p4, %p1998_p5 }
  0x2b   : > { %p1994_p2 = pneg %p1993_p0 }
  0x2d   : > { %p2001_p3 = pnand %p2000_p1, %p1994_p2 }
  0x2f   : > { %2004 = shalt.err (!%p2001_p3)
}
  0x30   : > { %1843 = dma.hbm_to_vmem [thread:$0]  (!%p2424_p6), %s2895_s1, 128, %s378_s18, [#allocation7]  }
  0x31   : > { %s2897_s4 = sld [smem:[#allocation26_spill]] }
  0x37   : > { %s2005_s17 = scalar_lea.hbm %s2897_s4, 256 }
  0x38   : > { %p2006_p7 = scmp.ne.s32.totalorder %s2897_s4, %s2005_s17  ;;  %p2012_p1 = scmp.lt.u32.totalorder %s2005_s17, %s2897_s4 }
  0x3a   : > { %p2008_p9 = pnand %p2006_p7, %p2440_p8 }
  0x3c   : > { %p2009_p4 = pneg %p2008_p9 }
  0x3e   : > { %p2014_p3 = pnand %p2012_p1, %p2009_p4 }
  0x40   : > { %2017 = shalt.err (!%p2014_p3)
}
  0x41   : > { %s2018_s18 = scalar_lea.vmem %s2428_s22, 256  ;;  %p2026_p13 = scmp.lt.s32.totalorder %s2428_s22, %s2428_s22 }
  0x42   : > { %p2019_p10 = scmp.ne.s32.totalorder %s2428_s22, %s2018_s18  ;;  %p2027_p0 = scmp.lt.s32.totalorder %s2018_s18, %s2018_s18 }
  0x44   : > { %p2021_p11 = pnand %p2019_p10, %p2440_p8  ;;  %p2028_p2 = por %p2027_p0, %p2026_p13 }
  0x46   : > { %p2022_p12 = pneg %p2021_p11 }
  0x48   : > { %p2029_p5 = pnand %p2028_p2, %p2022_p12 }
  0x4a   : > { %2032 = shalt.err (!%p2029_p5)
}
  0x4b   : > { %s2881_s11 = smov 64   ;;  %s2883_s10 = smov 4  }
  0x4c   : > { %1849 = dma.hbm_to_vmem [thread:$0]  (!%p2424_p6), %s2897_s4, 256, %s2428_s22, [#allocation10], %s2881_s11, %s2881_s11, %s2883_s10  }
  0x4d   : > { %s2033_s17 = scalar_lea.hbm %s2869_s7, 16 }
  0x4e   : > { %p2034_p7 = scmp.ne.s32.totalorder %s2869_s7, %s2033_s17  ;;  %p2040_p1 = scmp.lt.u32.totalorder %s2033_s17, %s2869_s7 }
  0x50   : > { %p2036_p9 = pnand %p2034_p7, %p2440_p8 }
  0x52   : > { %p2037_p4 = pneg %p2036_p9 }
  0x54   : > { %p2042_p3 = pnand %p2040_p1, %p2037_p4 }
  0x56   : > { %2045 = shalt.err (!%p2042_p3)
}
  0x57   : > { %s2046_s22 = scalar_lea.vmem %s2430_s25, 16  ;;  %s2053_s14 = scalar_lea.vmem %s2430_s25, 32 }
  0x58   : > { %p2047_p10 = scmp.ne.s32.totalorder %s2430_s25, %s2046_s22  ;;  %p2054_p13 = scmp.lt.s32.totalorder %s2430_s25, %s2430_s25 }
  0x59   : > { %p2055_p0 = scmp.lt.s32.totalorder %s2053_s14, %s2046_s22 }
  0x5a   : > { %p2049_p11 = pnand %p2047_p10, %p2440_p8 }
  0x5b   : > { %p2056_p2 = por %p2055_p0, %p2054_p13 }
  0x5c   : > { %p2050_p12 = pneg %p2049_p11 }
  0x5e   : > { %p2057_p5 = pnand %p2056_p2, %p2050_p12 }
  0x60   : > { %2060 = shalt.err (!%p2057_p5)
}
  0x61   : > { %1855 = dma.hbm_to_vmem [thread:$0]  (!%p2424_p6), %s2869_s7, 16, %s2430_s25, [#allocation13]  }
  0x62   : > { %s2292_s13 = smov [#allocation8]   ;;  %s2293_s17 = smov [#allocation11]  }
  0x63   : > { %s387_s28 = sshll.u32 %s2292_s13, 4  ;;  %s420_s24 = sshll.u32 %s2293_s17, 4  ;;  %s388_s28 = int_to_ptr.vmem [resolvable:$true] %s387_s28  ;;  %s421_s24 = int_to_ptr.vmem [resolvable:$true] %s420_s24 }
  0x64   : > { %s2898_s2 = sld [smem:[#allocation25_spill]] }
  0x6a   : > { %s2061_s22 = scalar_lea.hbm %s2898_s2, 256 }
  0x6b   : > { %p2062_p7 = scmp.ne.s32.totalorder %s2898_s2, %s2061_s22  ;;  %p2068_p1 = scmp.lt.u32.totalorder %s2061_s22, %s2898_s2 }
  0x6d   : > { %p2064_p9 = pnand %p2062_p7, %p2440_p8 }
  0x6f   : > { %p2065_p4 = pneg %p2064_p9 }
  0x71   : > { %p2070_p3 = pnand %p2068_p1, %p2065_p4 }
  0x73   : > { %2073 = shalt.err (!%p2070_p3)
}
  0x74   : > { %s2074_s25 = scalar_lea.vmem %s388_s28, 256  ;;  %p2082_p13 = scmp.lt.s32.totalorder %s388_s28, %s388_s28 }
  0x75   : > { %p2075_p10 = scmp.ne.s32.totalorder %s388_s28, %s2074_s25  ;;  %p2083_p0 = scmp.lt.s32.totalorder %s2074_s25, %s2074_s25 }
  0x77   : > { %p2077_p11 = pnand %p2075_p10, %p2440_p8  ;;  %p2084_p2 = por %p2083_p0, %p2082_p13 }
  0x79   : > { %p2078_p12 = pneg %p2077_p11 }
  0x7b   : > { %p2085_p5 = pnand %p2084_p2, %p2078_p12 }
  0x7d   : > { %2088 = shalt.err (!%p2085_p5)
}
  0x7e   : > { %s2899_s11 = smov 4   ;;  %s2900_s27 = smov 64  }
  0x7f   : > { %1846 = dma.hbm_to_vmem [thread:$0]  (!%p2424_p6), %s2898_s2, 256, %s388_s28, [#allocation7], %s2900_s27, %s2900_s27, %s2899_s11  }
  0x80   : > { %s2089_s18 = scalar_lea.hbm %s2868_s6, 16 }
  0x81   : > { %p2090_p7 = scmp.ne.s32.totalorder %s2868_s6, %s2089_s18  ;;  %p2096_p1 = scmp.lt.u32.totalorder %s2089_s18, %s2868_s6 }
  0x83   : > { %p2092_p9 = pnand %p2090_p7, %p2440_p8 }
  0x85   : > { %p2093_p4 = pneg %p2092_p9 }
  0x87   : > { %p2098_p3 = pnand %p2096_p1, %p2093_p4 }
  0x89   : > { %2101 = shalt.err (!%p2098_p3)
}
  0x8a   : > { %s2102_s10 = scalar_lea.vmem %s421_s24, 16  ;;  %s2109_s28 = scalar_lea.vmem %s421_s24, 32 }
  0x8b   : > { %p2103_p10 = scmp.ne.s32.totalorder %s421_s24, %s2102_s10  ;;  %p2110_p13 = scmp.lt.s32.totalorder %s421_s24, %s421_s24 }
  0x8c   : > { %p2111_p0 = scmp.lt.s32.totalorder %s2109_s28, %s2102_s10 }
  0x8d   : > { %p2105_p11 = pnand %p2103_p10, %p2440_p8 }
  0x8e   : > { %p2112_p2 = por %p2111_p0, %p2110_p13 }
  0x8f   : > { %p2106_p12 = pneg %p2105_p11 }
  0x91   : > { %p2113_p5 = pnand %p2112_p2, %p2106_p12 }
  0x93   : > { %2116 = shalt.err (!%p2113_p5)
}
  0x94   : > { %1852 = dma.hbm_to_vmem [thread:$0]  (!%p2424_p6), %s2868_s6, 16, %s421_s24, [#allocation10]  }
  0x95   : > { %s2294_s26 = smov [#allocation14]   ;;  %s2295_s22 = smov [#allocation15]  }
  0x96   : > { %s445_s18 = sshll.u32 %s2294_s26, 4  ;;  %s461_s14 = sshll.u32 %s2295_s22, 4  ;;  %s446_s18 = int_to_ptr.vmem [resolvable:$true] %s445_s18  ;;  %s462_s14 = int_to_ptr.vmem [resolvable:$true] %s461_s14 }
  0x97   : > { %s2117_s2 = scalar_lea.hbm %s2871_s9, 16 }
  0x98   : > { %p2118_p7 = scmp.ne.s32.totalorder %s2871_s9, %s2117_s2  ;;  %p2124_p1 = scmp.lt.u32.totalorder %s2117_s2, %s2871_s9 }
  0x9a   : > { %p2120_p9 = pnand %p2118_p7, %p2440_p8 }
  0x9c   : > { %p2121_p4 = pneg %p2120_p9 }
  0x9e   : > { %p2126_p3 = pnand %p2124_p1, %p2121_p4 }
  0xa0   : > { %2129 = shalt.err (!%p2126_p3)
}
  0xa1   : > { %s2130_s24 = scalar_lea.vmem %s446_s18, 16  ;;  %s2137_s17 = scalar_lea.vmem %s446_s18, 32 }
  0xa2   : > { %p2131_p10 = scmp.ne.s32.totalorder %s446_s18, %s2130_s24  ;;  %p2138_p13 = scmp.lt.s32.totalorder %s446_s18, %s446_s18 }
  0xa3   : > { %p2139_p0 = scmp.lt.s32.totalorder %s2137_s17, %s2130_s24 }
  0xa4   : > { %p2133_p11 = pnand %p2131_p10, %p2440_p8 }
  0xa5   : > { %p2140_p2 = por %p2139_p0, %p2138_p13 }
  0xa6   : > { %p2134_p12 = pneg %p2133_p11 }
  0xa8   : > { %p2141_p5 = pnand %p2140_p2, %p2134_p12 }
  0xaa   : > { %2144 = shalt.err (!%p2141_p5)
}
  0xab   : > { %1858 = dma.hbm_to_vmem [thread:$0]  (!%p2424_p6), %s2871_s9, 16, %s446_s18, [#allocation13]  }
  0xac   : > { %s2145_s1 = scalar_lea.hbm %s2874_s12, 1024 }
  0xad   : > { %p2146_p7 = scmp.ne.s32.totalorder %s2874_s12, %s2145_s1  ;;  %p2152_p1 = scmp.lt.u32.totalorder %s2145_s1, %s2874_s12 }
  0xaf   : > { %p2148_p9 = pnand %p2146_p7, %p2440_p8 }
  0xb1   : > { %p2149_p4 = pneg %p2148_p9 }
  0xb3   : > { %p2154_p3 = pnand %p2152_p1, %p2149_p4 }
  0xb5   : > { %2157 = shalt.err (!%p2154_p3)
}
  0xb6   : > { %s2158_s24 = scalar_lea.vmem %s462_s14, 1024  ;;  %p2166_p13 = scmp.lt.s32.totalorder %s462_s14, %s462_s14 }
  0xb7   : > { %p2159_p10 = scmp.ne.s32.totalorder %s462_s14, %s2158_s24  ;;  %p2167_p0 = scmp.lt.s32.totalorder %s2158_s24, %s2158_s24 }
  0xb9   : > { %p2161_p11 = pnand %p2159_p10, %p2440_p8  ;;  %p2168_p2 = por %p2167_p0, %p2166_p13 }
  0xbb   : > { %p2162_p12 = pneg %p2161_p11 }
  0xbd   : > { %p2169_p5 = pnand %p2168_p2, %p2162_p12 }
  0xbf   : > { %2172 = shalt.err (!%p2169_p5)
}
  0xc0   : > { %1861 = dma.hbm_to_vmem [thread:$0]  (!%p2424_p6), %s2874_s12, 1024, %s462_s14, [#allocation16], %s2900_s27, %s2900_s27, %s2899_s11  }
  0xc1   : > { %s1604_s23 = sadd.s32 4294967294, %s2285_s16   ;;  %s2586_s21 = sadd.s32 1, %s2285_s16  }
  0xc2   : > { %s41_s26 = sadd.s32 1, %s2281_s15  ;;  %s38_s22 = ssub.s32 %s2285_s16, %s2586_s21 }
  0xc3   : > { %p48_p8 = scmp.ne.s32.totalorder %s2281_s15, %s2277_s30  ;;  %p39_p7 = scmp.eq.s32.totalorder %s38_s22, 0 }
  0xc4   : > { %p49_p9 = scmp.eq.s32.totalorder %s2285_s16, 0  ;;  %p54_p4 = scmp.ne.s32.totalorder %s2277_s30, %s2273_s29 }
  0xc5   : > { %p351_p1 = scmp.eq.s32.totalorder %s2410_s19, 1  ;;  %p2901_p10 = scmp.eq.s32.totalorder %s2410_s19, 0 }
  0xc6   : > { %s2598_s2 = scalar_select %p39_p7, %s2281_s15, %s41_s26  }
  0xc7   : > { %p50_p3 = por %p49_p9, %p48_p8  ;;  %p2602_p11 = por %p2901_p10, %p54_p4 }
  0xc8   : > { %p2606_p6 = por %p351_p1, %p48_p8  ;;  %p357_p12 = scmp.eq.s32.totalorder %s1604_s23, 1 }
  0xc9   : > { %p1877_p13 = scmp.lt.s32.totalorder %s2285_s16, 2  ;;  %s478_s27 = sand.u32 1, %s2281_s15  }
  0xca   : > { %s2903_s11 = scalar_select %p2606_p6, 1, 0 }
  0xcb   : > { %p2612_p0 = por %p357_p12, %p54_p4  ;;  %s1614_s1 = sshll.u32 %s478_s27, 3 }
  0xcc   : > { %s1615_s25 = sshll.u32 %s2285_s16, 7  ;;  %s482_s24 = scalar_lea.vmem [#allocation3], %s1614_s1 }
  0xcd   : > { %s2904_s14 = scalar_select %p2612_p0, 1, 0 }
  0xce   : > { %s2620_s13 = scalar_lea.hbm %s2862_s0, %s1615_s25  ;;  %s489_s18 = sshll.u32 %s482_s24, 4  ;;  %s2626_s18 = int_to_ptr.vmem [resolvable:$true] %s489_s18 }
  0xcf   : > { %p2622_p2 = pnand %p1877_p13, %p50_p3  ;;  %s479_s23 = scalar_lea.sflag [#allocation4], %s478_s27 }
  0xd0   : > { %s2173_s26 = scalar_lea.hbm %s2620_s13, 128  ;;  %s2178_s25 = scalar_lea.hbm %s2862_s0, 256 }
  0xd1   : > { %p2174_p5 = scmp.ne.s32.totalorder %s2620_s13, %s2173_s26  ;;  %p2175_p8 = pneg %p2622_p2 }
  0xd2   : > { %p2179_p4 = scmp.lt.u32.totalorder %s2620_s13, %s2862_s0  ;;  %p2180_p1 = scmp.lt.u32.totalorder %s2178_s25, %s2173_s26 }
  0xd3   : > { %p2176_p7 = pnand %p2175_p8, %p2174_p5  ;;  %p2182_p10 = scmp.lt.u32.totalorder %s2173_s26, %s2620_s13 }
  0xd4   : > { %p2181_p3 = por %p2180_p1, %p2179_p4 }
  0xd5   : > { %p2177_p9 = pneg %p2176_p7 }
  0xd6   : > { %p2183_p12 = por %p2182_p10, %p2181_p3 }
  0xd8   : > { %p2184_p13 = pnand %p2183_p12, %p2177_p9 }
  0xda   : > { %2187 = shalt.err (!%p2184_p13)
}
  0xdb   : > { %s2188_s27 = scalar_lea.vmem %s2626_s18, 128  ;;  %s2296_s24 = smov [#allocation3]  }
  0xdc   : > { %p2189_p5 = scmp.ne.s32.totalorder %s2626_s18, %s2188_s27  ;;  %s2193_s22 = sshll.u32 %s2296_s24, 4  ;;  %s2194_s22 = int_to_ptr.vmem [resolvable:$false] %s2193_s22 }
  0xdd   : > { %s2195_s1 = scalar_lea.vmem %s2194_s22, 256  ;;  %p2196_p6 = scmp.lt.s32.totalorder %s2626_s18, %s2194_s22 }
  0xde   : > { %p2191_p7 = pnand %p2189_p5, %p2175_p8  ;;  %p2197_p4 = scmp.lt.s32.totalorder %s2195_s1, %s2188_s27 }
  0xe0   : > { %p2192_p0 = pneg %p2191_p7  ;;  %p2198_p1 = por %p2197_p4, %p2196_p6 }
  0xe2   : > { %p2199_p3 = pnand %p2198_p1, %p2192_p0 }
  0xe4   : > { %2202 = shalt.err (!%p2199_p3)
}
  0xe5   : > { %1865 = dma.hbm_to_vmem [thread:$0]  (!%p2622_p2), %s2620_s13, 128, %s2626_s18, %s479_s23  }
  0xe6   : > { %p2906_p9 = scmp.ne.s32.totalorder %s2893_s20, 0 }
  0xe7   : > { %s2656_s26 = sand.u32 (!%p2906_p9), 1, %s2277_s30  }
  0xe8   : > { %498 = sbr.rel (%p2906_p9) target bundleno = 3045 (0xbe5), region = 76  ;;  %s1617_s25 = sshll.u32 (!%p2906_p9), %s2656_s26, 3 }
  0xe9   : > { %s501_s10 = scalar_lea.sflag (!%p2906_p9), [#allocation4], %s2656_s26  ;;  %s504_s28 = scalar_lea.vmem (!%p2906_p9), [#allocation3], %s1617_s25 }
  0xef   : > { %2248 = dma.done.wait (%p2602_p11), %s501_s10, 128  }
  0xf0   : > { %2250 = vsyncadd (%p2602_p11), %s501_s10, 4294967168  ;;  %p2907_p6 = scmp.eq.s32.totalorder %s2410_s19, 0 }
  0xf2   : > { %2252 = dma.done.wait (%p2907_p6), [#allocation7], 384   ;;  %p2908_p0 = pmov %p2907_p6 }
  0xf4   : > { %2254 = vsyncadd (%p2908_p0), [#allocation7], 4294966912  ;;  %p2909_p2 = pmov %p2908_p0 }
  0xf5   : > { %p2910_p8 = pmov %p2908_p0 }
  0xf6   : > { %2256 = dma.done.wait (%p2909_p2), [#allocation10], 272  }
  0xf7   : > { %2258 = vsyncadd (%p2910_p8), [#allocation10], 4294967024  ;;  %p2911_p10 = pmov %p2908_p0 }
  0xf8   : > { %p2912_p12 = pmov %p2908_p0 }
  0xf9   : > { %2260 = dma.done.wait (%p2911_p10), [#allocation13], 32  }
  0xfa   : > { %2262 = vsyncadd (%p2912_p12), [#allocation13], 4294967264  ;;  %p2913_p11 = pmov %p2908_p0 }
  0xfb   : > { %p2914_p13 = pmov %p2908_p0 }
  0xfc   : > { %2264 = dma.done.wait (%p2913_p11), [#allocation16], 1024  }
  0xfd   : > { %2266 = vsyncadd (%p2914_p13), [#allocation16], 4294966272  ;;  %v2297_v0 = vmov 0.0   ;;  %vm2298_vm0 = vmmov 0   ;;  %v1943_v1 = vld [vmem:[#allocation8] sm:$0xff]   ;;  %v1944_v2 = vld [vmem:[#allocation8 + $0x8] sm:$0xff]  }
  0xfe   : > { %1702 = vmatprep.subr.bf16.mxu1 %v2297_v0  ;;  %1706 = vmatprep.mubr.msk.bf16.mxu1 %vm2298_vm0, %v2297_v0  ;;  %v2688_v3 = vld [vmem:[%s504_s28] sm:$0xff]  ;;  %vm604_vm1 = vcmask 261120   ;;  %v1626_v5 = vld [vmem:[%s2865_s3] ss:$0 sm:$0xff]  ;;  %s2299_s13 = smov 64   ;;  %s2300_s18 = smov 96  }
  0xff   : > { %1728 = vmatprep.subr.bf16.mxu0 %v2297_v0  ;;  %1730 = vmatprep.mubr.msk.bf16.mxu0 %vm2298_vm0, %v2297_v0  ;;  %v579_v4 = vpack.c.bf16 %v2688_v3, %v2688_v3  ;;  %s2301_s17 = smov 88   ;;  %vm652_vm2 = vcmask 64512   ;;  %vm716_vm3 = vcmask 1043456   ;;  %v2713_v16 = vld [vmem:[#allocation6] sm:$0xff]  ;;  %s2302_s23 = smov 72   ;;  %vm875_vm4 = vcmask 130112  }
 0x100   : > { %1703 = vmatpush3.bf16.msra.mxu1 %v1943_v1  ;;  %s2303_s27 = smov 120   ;;  %s2304_s24 = smov 80   ;;  %vm991_vm5 = vcmask 195712   ;;  %vm1107_vm6 = vcmask 261312  }
 0x101   : > { %1704 = vmatprep.subr.bf16.mxu1 %v2297_v0  ;;  %s2305_s22 = smov 112   ;;  %s2306_s1 = smov 104  }
 0x102   : > { %s2307_s10 = smov 56   ;;  %s2308_s28 = smov 48  }
 0x103   : > { %s2309_s20 = smov 40   ;;  %s2310_s4 = smov 8  }
 0x104   : > { %1705 = vmatpush3.bf16.msra.mxu1 %v1944_v2  ;;  %p2919_p7 = scmp.ne.s32.totalorder %s2903_s11, 0 }
 0x105   : > { %1710 = vmatprep.subr.bf16.mxu1 %v2297_v0 }
 0x107   : > { %1707 = vmatmul.mubr.msk.bf16.vlgmr.msra.gmra.mrb[0].mxu1 %vm604_vm1, %v579_v4 }
 0x108   : > { %1712 = vmatprep.mubr.msk.bf16.mxu1 %vm2298_vm0, %v2297_v0 }
 0x1da   : > { %v642_v6 = vpop.f32.mrb[0].mxu1 }
 0x1db   : > { %v643_v7 = vadd.f32 %v1626_v5, %v642_v6  ;;  %v1708_v8 = vpop.f32.mrb[1].mxu1 }
 0x1dc   : > { %v645_v9 = vpop.f32.mrb[2].mxu1 }
 0x1dd   : > { %v2700_v10 = vpack.c.bf16 %v643_v7, %v643_v7  ;;  %v1709_v11 = vpop.f32.mrb[3].mxu1 }
 0x1df   : > { %711 = vrot.lane.b32.xlu1 %v2700_v10, %s2299_s13  ;;  %650 = vrot.lane.b32.xlu0 %v2700_v10, %s2300_s18  ;;  %s2311_s13 = smov 16   ;;  %s2312_s18 = smov 24  }
 0x1e3   : > { %763 = vrot.lane.b32.xlu1 %v2700_v10, %s2301_s17 }
 0x251   : > { %v651_v12 = vpop.permute.xlu0 %650  ;;  %v712_v14 = vpop.permute.xlu1 %711 }
 0x252   : > { %v657_v13 = vsel %vm652_vm2, %v651_v12, 0  ;;  %v718_v15 = vsel %vm716_vm3, %v712_v14, 0 }
 0x253   : > { %1711 = vmatpush3.bf16.xpose.msra.mxu1 %v657_v13 }
 0x254   : > { %1716 = vmatprep.subr.bf16.mxu1 %v2297_v0 }
 0x255   : > { %v764_v28 = vpop.permute.xlu1 %763 }
 0x256   : > { %v769_v34 = vsel %vm652_vm2, %v764_v28, 0 }
 0x25a   : > { %1713 = vmatmul.mubr.msk.bf16.vlgmr.msra.gmra.mrb[4].mxu1 %vm652_vm2, %v2700_v10 }
 0x25b   : > { %1717 = vmatpush3.bf16.msra.mxu1 %v718_v15  ;;  %1718 = vmatprep.mubr.msk.bf16.mxu1 %vm2298_vm0, %v2297_v0 }
 0x25c   : > { %1722 = vmatprep.subr.bf16.mxu1 %v2297_v0 }
 0x32d   : > { %v693_v17 = vpop.f32.mrb[4].mxu1 }
 0x32e   : > { %v694_v18 = vadd.f32 %v693_v17, %v2713_v16  ;;  %v1714_v19 = vpop.f32.mrb[5].mxu1 }
 0x32f   : > { %v696_v20 = vpop.f32.mrb[6].mxu1 }
 0x330   : > { %v1715_v21 = vpop.f32.mrb[7].mxu1  ;;  %v699_v22 = vsel %vm652_vm2, %v694_v18, -inf }
 0x331   : > { %700 = vmax.xlane.f32.xlu0 %v699_v22 }
 0x347   : > { %995 = vrot.lane.b32.xlu0 %v2700_v10, %s2302_s23  ;;  %s2916_s23 = sld [smem:[#allocation28_spill]] }
 0x3be   : > { %v701_v23 = vpop.xlane.xlu0 %700 }
 0x3bf   : > { %v702_v24 = vsub.f32 %v694_v18, %v701_v23 }
 0x3c1   : > { %v703_v25 = vmul.f32 1.442695, %v702_v24 }
 0x3c2   : > { %v996_v37 = vpop.permute.xlu0 %995 }
 0x3c3   : > { %1959 = vpow2.f32 %v703_v25  ;;  %v1001_v39 = vsel %vm652_vm2, %v996_v37, 0 }
 0x3cd   : > { %v1960_v26 = vpop.eup %1959 }
 0x3ce   : > { %v705_v27 = vsel %vm652_vm2, %v1960_v26, 0.0 }
 0x3cf   : > { %706 = vadd.xlane.f32.xlu1 %v705_v27 }
 0x3e0   : > { %761 = vrot.lane.b32.xlu1 %v2700_v10, %s2303_s27 }
 0x3e4   : > { %879 = vrot.lane.b32.xlu1 %v2700_v10, %s2304_s24 }
 0x3e8   : > { %877 = vrot.lane.b32.xlu1 %v2700_v10, %s2305_s22  ;;  %s2917_s22 = sld [smem:[#allocation29_spill]] }
 0x3ec   : > { %993 = vrot.lane.b32.xlu1 %v2700_v10, %s2306_s1  ;;  %s1662_s1 = sshll.u32 %s2410_s19, 7  ;;  %s1454_s19 = scalar_lea.sflag [#allocation5], %s2656_s26 }
 0x45c   : > { %v707_v29 = vpop.xlane.xlu1 %706 }
 0x45d   : > { %1961 = vrcp.f32 %v707_v29 }
 0x460   : > { %v762_v33 = vpop.permute.xlu1 %761 }
 0x464   : > { %v880_v35 = vpop.permute.xlu1 %879 }
 0x465   : > { %v885_v36 = vsel %vm652_vm2, %v880_v35, 0 }
 0x467   : > { %v1962_v30 = vpop.eup %1961 }
 0x468   : > { %v709_v31 = vmul.f32 %v1962_v30, %v1960_v26  ;;  %v878_v38 = vpop.permute.xlu1 %877 }
 0x46a   : > { %v710_v32 = vpack.c.bf16 %v709_v31, %v709_v31 }
 0x46c   : > { %1719 = vmatmul.mubr.msk.bf16.vlgmr.msra.gmra.mrb[8].mxu1 %vm652_vm2, %v710_v32  ;;  %v994_v40 = vpop.permute.xlu1 %993 }
 0x46d   : > { %1723 = vmatpush3.bf16.xpose.msra.mxu1 %v769_v34  ;;  %1724 = vmatprep.mubr.msk.bf16.mxu1 %vm2298_vm0, %v2297_v0 }
 0x46e   : > { %1734 = vmatprep.subr.bf16.mxu1 %v2297_v0 }
 0x474   : > { %1725 = vmatmul.mubr.msk.bf16.vlgmr.msra.gmra.mrb[12].mxu1 %vm652_vm2, %v762_v33 }
 0x475   : > { %1735 = vmatpush3.bf16.xpose.msra.mxu1 %v885_v36  ;;  %1736 = vmatprep.mubr.msk.bf16.mxu1 %vm2298_vm0, %v2297_v0 }
 0x476   : > { %1746 = vmatprep.subr.bf16.mxu1 %v2297_v0 }
 0x47c   : > { %1737 = vmatmul.mubr.msk.bf16.vlgmr.msra.gmra.mrb[16].mxu1 %vm652_vm2, %v878_v38  ;;  %v1945_v38 = vld [vmem:[#allocation9] sm:$0xff]  }
 0x47d   : > { %1747 = vmatpush3.bf16.xpose.msra.mxu1 %v1001_v39  ;;  %1748 = vmatprep.mubr.msk.bf16.mxu1 %vm2298_vm0, %v2297_v0  ;;  %v1946_v39 = vld [vmem:[#allocation9 + $0x8] sm:$0xff]  }
 0x47e   : > { %1758 = vmatprep.subr.bf16.mxu1 %v2297_v0 }
 0x484   : > { %1749 = vmatmul.mubr.msk.bf16.vlgmr.msra.gmra.mrb[20].mxu1 %vm652_vm2, %v994_v40 }
 0x485   : > { %1762 = vmatprep.mubr.msk.bf16.mxu1 %vm2298_vm0, %v2297_v0  ;;  %1759 = vmatpush3.bf16.msra.mxu1 %v1945_v38 }
 0x486   : > { %1760 = vmatprep.subr.bf16.mxu1 %v2297_v0 }
 0x489   : > { %1761 = vmatpush3.bf16.msra.mxu1 %v1946_v39 }
 0x48a   : > { %1774 = vmatprep.subr.bf16.mxu1 %v2297_v0 }
 0x53f   : > { %v754_v41 = vpop.f32.mrb[8].mxu1 }
 0x540   : > { %760 = vst.msk [vmem:[#allocation2] sm:$0xff] %vm652_vm2, %v754_v41  ;;  %v1720_v42 = vpop.f32.mrb[9].mxu1 }
 0x541   : > { %v757_v43 = vpop.f32.mrb[10].mxu1 }
 0x542   : > { %v1721_v44 = vpop.f32.mrb[11].mxu1 }
 0x547   : > { %v805_v45 = vpop.f32.mrb[12].mxu1 }
 0x548   : > { %v806_v46 = vadd.f32 %v805_v45, %v2713_v16  ;;  %v1726_v47 = vpop.f32.mrb[13].mxu1 }
 0x549   : > { %v808_v48 = vpop.f32.mrb[14].mxu1 }
 0x54a   : > { %v1727_v49 = vpop.f32.mrb[15].mxu1  ;;  %v811_v50 = vsel %vm652_vm2, %v806_v46, -inf }
 0x54b   : > { %812 = vmax.xlane.f32.xlu1 %v811_v50 }
 0x54f   : > { %v921_v51 = vpop.f32.mrb[16].mxu1 }
 0x550   : > { %v922_v52 = vadd.f32 %v921_v51, %v2713_v16  ;;  %v1738_v53 = vpop.f32.mrb[17].mxu1 }
 0x551   : > { %v924_v54 = vpop.f32.mrb[18].mxu1  ;;  %v1638_v53 = vld [vmem:[%s2867_s5] ss:$0 sm:$0xff] }
 0x552   : > { %v1739_v55 = vpop.f32.mrb[19].mxu1  ;;  %v927_v56 = vsel %vm652_vm2, %v922_v52, -inf }
 0x553   : > { %928 = vmax.xlane.f32.xlu0 %v927_v56 }
 0x557   : > { %v1037_v57 = vpop.f32.mrb[20].mxu1 }
 0x558   : > { %v1038_v58 = vadd.f32 %v1037_v57, %v2713_v16  ;;  %v1750_v59 = vpop.f32.mrb[21].mxu1 }
 0x559   : > { %v1040_v60 = vpop.f32.mrb[22].mxu1 }
 0x55a   : > { %v1751_v61 = vpop.f32.mrb[23].mxu1  ;;  %v1043_v62 = vsel %vm652_vm2, %v1038_v58, -inf }
 0x55b   : > { %1044 = vmax.xlane.f32.xlu1 %v1043_v62 }
 0x5d8   : > { %v813_v63 = vpop.xlane.xlu1 %812 }
 0x5d9   : > { %v814_v1 = vsub.f32 %v806_v46, %v813_v63 }
 0x5db   : > { %v815_v2 = vmul.f32 1.442695, %v814_v1 }
 0x5dd   : > { %1963 = vpow2.f32 %v815_v2 }
 0x5e0   : > { %v929_v12 = vpop.xlane.xlu0 %928 }
 0x5e1   : > { %v930_v13 = vsub.f32 %v922_v52, %v929_v12  ;;  %v1642_v12 = vld [vmem:[#allocation11] ss:$0 sm:$0xff] }
 0x5e3   : > { %v931_v14 = vmul.f32 1.442695, %v930_v13 }
 0x5e7   : > { %v1964_v4 = vpop.eup %1963 }
 0x5e8   : > { %v1045_v5 = vpop.xlane.xlu1 %1044  ;;  %v817_v6 = vsel %vm652_vm2, %v1964_v4, 0.0 }
 0x5e9   : > { %v1046_v7 = vsub.f32 %v1038_v58, %v1045_v5  ;;  %818 = vadd.xlane.f32.xlu1 %v817_v6 }
 0x5eb   : > { %v1047_v8 = vmul.f32 1.442695, %v1046_v7 }
 0x5ed   : > { %1965 = vpow2.f32 %v1047_v8 }
 0x5ee   : > { %1967 = vpow2.f32 %v931_v14  ;;  %v1643_v14 = vld [vmem:[#allocation12] ss:$0 sm:$0xff] }
 0x5f7   : > { %v1966_v9 = vpop.eup %1965 }
 0x5f8   : > { %v1049_v11 = vsel %vm652_vm2, %v1966_v9, 0.0  ;;  %v1968_v15 = vpop.eup %1967 }
 0x5f9   : > { %1050 = vadd.xlane.f32.xlu0 %v1049_v11  ;;  %v933_v16 = vsel %vm652_vm2, %v1968_v15, 0.0 }
 0x5fa   : > { %823 = vrot.lane.b32.xlu1 %v2700_v10, %s2307_s10  ;;  %s2915_s10 = sld [smem:[#allocation27_spill]] }
 0x600   : > { %v1948_v5 = vld [vmem:[%s2915_s10] sm:$0xff]   ;;  %v1950_v6 = vld [vmem:[%s2915_s10 + $0x8] sm:$0xff]  }
 0x60f   : > { %939 = vrot.lane.b32.xlu0 %v2700_v10, %s2308_s28  ;;  %s576_s28 = scalar_lea.vmem [#allocation17], %s1617_s25  ;;  %s2313_s25 = smov [#allocation17]  }
 0x610   : > { %s2207_s27 = sshll.u32 %s2313_s25, 4  ;;  %s2208_s27 = int_to_ptr.vmem [resolvable:$false] %s2207_s27 }
 0x611   : > { %s2209_s24 = scalar_lea.vmem %s2208_s27, 256 }
 0x61e   : > { %934 = vadd.xlane.f32.xlu1 %v933_v16 }
 0x62f   : > { %1055 = vrot.lane.b32.xlu1 %v2700_v10, %s2309_s20  ;;  %s1467_s20 = sshll.u32 %s576_s28, 4  ;;  %s2820_s20 = int_to_ptr.vmem [resolvable:$true] %s1467_s20 }
 0x630   : > { %p2210_p3 = scmp.lt.s32.totalorder %s2820_s20, %s2208_s27 }
 0x676   : > { %v819_v17 = vpop.xlane.xlu1 %818 }
 0x677   : > { %1969 = vrcp.f32 %v819_v17  ;;  %v1951_v17 = vld [vmem:[#allocation15] sm:$0xff]  }
 0x67a   : > { %v824_v18 = vpop.permute.xlu1 %823 }
 0x67b   : > { %v829_v19 = vsel %vm716_vm3, %v824_v18, 0 }
 0x67c   : > { %1729 = vmatpush3.bf16.msra.mxu0 %v829_v19  ;;  %v1952_v19 = vld [vmem:[#allocation15 + $0x8] sm:$0xff]  }
 0x67d   : > { %1740 = vmatprep.subr.bf16.mxu0 %v2297_v0 }
 0x681   : > { %v1970_v20 = vpop.eup %1969 }
 0x682   : > { %v821_v21 = vmul.f32 %v1970_v20, %v1964_v4  ;;  %v1947_v4 = vld [vmem:[%s2870_s8] sm:$0xff]   ;;  %v1953_v20 = vld [vmem:[#allocation15 + $0x10] sm:$0xff]  }
 0x684   : > { %v822_v22 = vpack.c.bf16 %v821_v21, %v821_v21  ;;  %v1954_v21 = vld [vmem:[#allocation15 + $0x18] sm:$0xff]  }
 0x686   : > { %v1051_v23 = vpop.xlane.xlu0 %1050  ;;  %1731 = vmatmul.mubr.msk.bf16.vlgmr.msra.gmra.mrb[0].mxu0 %vm652_vm2, %v822_v22  ;;  %v1955_v22 = vld [vmem:[#allocation15 + $0x20] sm:$0xff]  }
 0x687   : > { %1742 = vmatprep.mubr.msk.bf16.mxu0 %vm2298_vm0, %v2297_v0 }
 0x68a   : > { %v940_v24 = vpop.permute.xlu0 %939 }
 0x68b   : > { %v945_v10 = vsel %vm716_vm3, %v940_v24, 0  ;;  %v1957_v24 = vld [vmem:[#allocation15 + $0x30] sm:$0xff]  }
 0x68c   : > { %1741 = vmatpush3.bf16.msra.mxu0 %v945_v10  ;;  %v1958_v10 = vld [vmem:[#allocation15 + $0x38] sm:$0xff]  }
 0x68d   : > { %1752 = vmatprep.subr.bf16.mxu0 %v2297_v0 }
 0x6ab   : > { %v935_v25 = vpop.xlane.xlu1 %934 }
 0x6ac   : > { %1971 = vrcp.f32 %v935_v25  ;;  %v1648_v25 = vld [vmem:[%s2916_s23] ss:$0 sm:$0xff]  ;;  %s2203_s23 = scalar_lea.vmem %s2820_s20, 128 }
 0x6ad   : > { %1973 = vrcp.f32 %v1051_v23  ;;  %v1956_v23 = vld [vmem:[#allocation15 + $0x28] sm:$0xff]   ;;  %p2204_p5 = scmp.ne.s32.totalorder %s2820_s20, %s2203_s23  ;;  %p2211_p9 = scmp.lt.s32.totalorder %s2209_s24, %s2203_s23 }
 0x6af   : > { %v1056_v28 = vpop.permute.xlu1 %1055  ;;  %p2205_p4 = pnand %p2204_p5, %p2919_p7  ;;  %p2212_p6 = por %p2211_p9, %p2210_p3 }
 0x6b0   : > { %v1061_v31 = vsel %vm716_vm3, %v1056_v28, 0 }
 0x6b1   : > { %p2206_p1 = pneg %p2205_p4 }
 0x6b3   : > { %p2213_p0 = pnand %p2212_p6, %p2206_p1 }
 0x6b6   : > { %v1972_v26 = vpop.eup %1971 }
 0x6b7   : > { %v937_v27 = vmul.f32 %v1972_v26, %v1968_v15  ;;  %v1974_v30 = vpop.eup %1973 }
 0x6b8   : > { %v1053_v32 = vmul.f32 %v1974_v30, %v1966_v9 }
 0x6b9   : > { %v938_v29 = vpack.c.bf16 %v937_v27, %v937_v27 }
 0x6ba   : > { %v1054_v33 = vpack.c.bf16 %v1053_v32, %v1053_v32 }
 0x6bb   : > { %1743 = vmatmul.mubr.msk.bf16.vlgmr.msra.gmra.mrb[4].mxu0 %vm652_vm2, %v938_v29 }
 0x6bc   : > { %1753 = vmatpush3.bf16.msra.mxu0 %v1061_v31  ;;  %1754 = vmatprep.mubr.msk.bf16.mxu0 %vm2298_vm0, %v2297_v0 }
 0x6bd   : > { %1766 = vmatprep.subr.bf16.mxu0 %v2297_v0 }
 0x6c3   : > { %1755 = vmatmul.mubr.msk.bf16.vlgmr.msra.gmra.mrb[8].mxu0 %vm652_vm2, %v1054_v33  ;;  %v1644_v33 = vld [vmem:[#allocation14] ss:$0 sm:$0xff] }
 0x6c4   : > { %1770 = vmatprep.mubr.msk.bf16.mxu0 %vm2298_vm0, %v2297_v0  ;;  %1767 = vmatpush3.bf16.msra.mxu0 %v1947_v4 }
 0x6c5   : > { %1768 = vmatprep.subr.bf16.mxu0 %v2297_v0 }
 0x759   : > { %v865_v34 = vpop.f32.mrb[0].mxu0 }
 0x75a   : > { %872 = vrot.lane.b32.xlu1 %v865_v34, %s2310_s4  ;;  %v1732_v35 = vpop.f32.mrb[1].mxu0 }
 0x75b   : > { %v868_v36 = vpop.f32.mrb[2].mxu0 }
 0x75c   : > { %v1733_v37 = vpop.f32.mrb[3].mxu0 }
 0x78e   : > { %v981_v40 = vpop.f32.mrb[4].mxu0 }
 0x78f   : > { %988 = vrot.lane.b32.xlu0 %v981_v40, %s2311_s13  ;;  %v1744_v41 = vpop.f32.mrb[5].mxu0 }
 0x790   : > { %v984_v42 = vpop.f32.mrb[6].mxu0 }
 0x791   : > { %v1745_v43 = vpop.f32.mrb[7].mxu0 }
 0x796   : > { %v1097_v44 = vpop.f32.mrb[8].mxu0 }
 0x797   : > { %1104 = vrot.lane.b32.xlu1 %v1097_v44, %s2312_s18  ;;  %v1756_v45 = vpop.f32.mrb[9].mxu0  ;;  %s2918_s18 = sld [smem:[#allocation30_spill]] }
 0x798   : > { %v1100_v46 = vpop.f32.mrb[10].mxu0 }
 0x799   : > { %v1757_v47 = vpop.f32.mrb[11].mxu0 }
 0x79d   : > { %s2818_s17 = scalar_lea.hbm %s2918_s18, %s1662_s1 }
 0x7cc   : > { %v873_v48 = vpop.permute.xlu1 %872 }
 0x7cd   : > { %876 = vst.msk [vmem:[#allocation2] sm:$0xff] %vm875_vm4, %v873_v48 }
 0x801   : > { %v989_v49 = vpop.permute.xlu0 %988 }
 0x802   : > { %992 = vst.msk [vmem:[#allocation2] sm:$0xff] %vm991_vm5, %v989_v49 }
 0x809   : > { %v1105_v50 = vpop.permute.xlu1 %1104 }
 0x80a   : > { %1108 = vst.msk [vmem:[#allocation2] sm:$0xff] %vm1107_vm6, %v1105_v50 }
 0x811   : > { %v1109_v51 = vld [vmem:[#allocation2] sm:$0xff] }
 0x812   : > { %v1110_v52 = vpack.c.bf16 %v1109_v51, %v1109_v51 }
 0x814   : > { %1763 = vmatmul.mubr.msk.bf16.vlgmr.msra.gmra.mrb[24].mxu1 %vm604_vm1, %v1110_v52 }
 0x815   : > { %1778 = vmatprep.mubr.msk.bf16.mxu1 %vm2298_vm0, %v2297_v0  ;;  %1775 = vmatpush3.bf16.msra.mxu1 %v1948_v5 }
 0x816   : > { %1776 = vmatprep.subr.bf16.mxu1 %v2297_v0 }
 0x819   : > { %1777 = vmatpush3.bf16.msra.mxu1 %v1950_v6 }
 0x8e7   : > { %v1171_v54 = vpop.f32.mrb[24].mxu1 }
 0x8e8   : > { %v1172_v55 = vadd.f32 %v1638_v53, %v1171_v54  ;;  %v1764_v56 = vpop.f32.mrb[25].mxu1 }
 0x8e9   : > { %v1174_v57 = vpop.f32.mrb[26].mxu1 }
 0x8ea   : > { %v1765_v58 = vpop.f32.mrb[27].mxu1  ;;  %v1177_v59 = vadd.f32 %v1172_v55, %v2688_v3  ;;  %v1949_v3 = vld [vmem:[%s2870_s8 + $0x8] sm:$0xff]  }
 0x8eb   : > { %1769 = vmatpush3.bf16.msra.mxu0 %v1949_v3 }
 0x8ec   : > { %v1178_v60 = vsel %vm604_vm1, %v1177_v59, 0.0  ;;  %1782 = vmatprep.subr.bf16.mxu0 %v2297_v0 }
 0x8ed   : > { %1179 = vadd.xlane.f32.xlu0 %v1178_v60 }
 0x97a   : > { %v1180_v61 = vpop.xlane.xlu0 %1179 }
 0x97b   : > { %v1182_v62 = vmul.f32 0.03125, %v1180_v61 }
 0x97d   : > { %v1183_v63 = vsub.f32 %v1177_v59, %v1182_v62 }
 0x97f   : > { %v1184_v1 = vmul.f32 %v1183_v63, %v1183_v63 }
 0x981   : > { %v1185_v2 = vsel %vm604_vm1, %v1184_v1, 0.0 }
 0x982   : > { %1186 = vadd.xlane.f32.xlu1 %v1185_v2 }
 0xa0f   : > { %v1187_v7 = vpop.xlane.xlu1 %1186 }
 0xa10   : > { %v1188_v8 = vmul.f32 0.03125, %v1187_v7 }
 0xa12   : > { %v1189_v9 = vadd.f32 1e-05, %v1188_v8 }
 0xa14   : > { %1975 = vrsqrt.f32 %v1189_v9 }
 0xa1e   : > { %v1976_v11 = vpop.eup %1975 }
 0xa1f   : > { %v1191_v13 = vmul.f32 %v1976_v11, %v1183_v63 }
 0xa21   : > { %v1199_v15 = vmul.f32 %v1642_v12, %v1191_v13 }
 0xa23   : > { %v1207_v16 = vadd.f32 %v1643_v14, %v1199_v15 }
 0xa25   : > { %v1208_v18 = vpack.c.bf16 %v1207_v16, %v1207_v16 }
 0xa27   : > { %1771 = vmatmul.mubr.msk.bf16.vlgmr.msra.gmra.mrb[12].mxu0 %vm604_vm1, %v1208_v18  ;;  %1779 = vmatmul.mubr.msk.bf16.vlgmr.msra.gmra.mrb[28].mxu1 %vm604_vm1, %v1208_v18 }
 0xa28   : > { %1783 = vmatpush3.bf16.msra.mxu0 %v1951_v17  ;;  %1798 = vmatprep.mubr.msk.bf16.mxu0 %vm2298_vm0, %v2297_v0 }
 0xa29   : > { %1784 = vmatprep.subr.bf16.mxu0 %v2297_v0 }
 0xa2c   : > { %1785 = vmatpush3.bf16.msra.mxu0 %v1952_v19 }
 0xa2d   : > { %1786 = vmatprep.subr.bf16.mxu0 %v2297_v0 }
 0xa30   : > { %1787 = vmatpush3.bf16.msra.mxu0 %v1953_v20 }
 0xa31   : > { %1788 = vmatprep.subr.bf16.mxu0 %v2297_v0 }
 0xa34   : > { %1789 = vmatpush3.bf16.msra.mxu0 %v1954_v21 }
 0xa35   : > { %1790 = vmatprep.subr.bf16.mxu0 %v2297_v0 }
 0xa38   : > { %1791 = vmatpush3.bf16.msra.mxu0 %v1955_v22 }
 0xa39   : > { %1792 = vmatprep.subr.bf16.mxu0 %v2297_v0 }
 0xa3c   : > { %1793 = vmatpush3.bf16.msra.mxu0 %v1956_v23 }
 0xa3d   : > { %1794 = vmatprep.subr.bf16.mxu0 %v2297_v0 }
 0xa40   : > { %1795 = vmatpush3.bf16.msra.mxu0 %v1957_v24 }
 0xa41   : > { %1796 = vmatprep.subr.bf16.mxu0 %v2297_v0  ;;  %v1652_v0 = vld [vmem:[%s2917_s22] ss:$0 sm:$0xff] }
 0xa42   : > { %v1802_v34 = vadd.f32 %v1652_v0, %v1644_v33 }
 0xa44   : > { %1797 = vmatpush3.bf16.msra.mxu0 %v1958_v10 }
 0xafa   : > { %v1332_v26 = vpop.f32.mrb[28].mxu1 }
 0xafb   : > { %v1333_v27 = vadd.f32 %v1648_v25, %v1332_v26  ;;  %v1780_v28 = vpop.f32.mrb[29].mxu1 }
 0xafc   : > { %v1335_v29 = vpop.f32.mrb[30].mxu1 }
 0xafd   : > { %v1338_v30 = vmax.f32 %v1333_v27, 0.0  ;;  %v1781_v31 = vpop.f32.mrb[31].mxu1 }
 0xaff   : > { %v1339_v32 = vpack.c.bf16 %v1338_v30, %v1338_v30 }
 0xb01   : > { %1799 = vmatmul.mubr.bf16.vlgmr.msra.gmra.mrb[12].mxu0 %v1339_v32 }
 0xbd4   : > { %v1445_v35 = vpop.f32.mrb[12].mxu0 }
 0xbd5   : > { %v1803_v36 = vadd.f32 %v1802_v34, %v1445_v35  ;;  %v1800_v37 = vpop.f32.mrb[13].mxu0 }
 0xbd6   : > { %v1448_v38 = vpop.f32.mrb[14].mxu0 }
 0xbd7   : > { %1452 = vst [vmem:[%s576_s28] sm:$0xff] %v1803_v36  ;;  %v1801_v39 = vpop.f32.mrb[15].mxu0 }
 0xbd8   : > { %2216 = shalt.err (!%p2213_p0)
}
 0xbd9   : > { %s2217_s26 = scalar_lea.hbm %s2818_s17, 128  ;;  %s2221_s28 = scalar_lea.hbm %s2918_s18, 256 }
 0xbda   : > { %p2218_p2 = scmp.ne.s32.totalorder %s2818_s17, %s2217_s26  ;;  %p2222_p12 = scmp.lt.u32.totalorder %s2818_s17, %s2918_s18 }
 0xbdb   : > { %p2223_p11 = scmp.lt.u32.totalorder %s2221_s28, %s2217_s26  ;;  %p2225_p5 = scmp.lt.u32.totalorder %s2217_s26, %s2818_s17 }
 0xbdc   : > { %p2219_p8 = pnand %p2218_p2, %p2919_p7 }
 0xbdd   : > { %p2224_p13 = por %p2223_p11, %p2222_p12 }
 0xbde   : > { %p2220_p10 = pneg %p2219_p8 }
 0xbdf   : > { %p2226_p4 = por %p2225_p5, %p2224_p13 }
 0xbe1   : > { %p2227_p1 = pnand %p2226_p4, %p2220_p10 }
 0xbe3   : > { %2230 = shalt.err (!%p2227_p1)
}
 0xbe4   : > { %1838 = dma.vmem_to_hbm [thread:$0]  (%p2919_p7), %s2820_s20, 128, %s2818_s17, %s1454_s19  }
 0xbe5 PF: > { %s1479_s23 = sand.u32 1, %s2273_s29   ;;  %p2920_p3 = scmp.ne.s32.totalorder %s2904_s14, 0 }
 0xbe6   : > { %p2921_p9 = scmp.ge.s32.totalorder %s2285_s16, 2  ;;  %s1480_s25 = scalar_lea.sflag [#allocation5], %s1479_s23 }
 0xbe8   : > { %p1867_p6 = pnand %p2921_p9, %p2920_p3 }
 0xbea   : > { %2268 = dma.done.wait (!%p1867_p6), %s1480_s25, 128  }
 0xbeb   : > { %2270 = vsyncadd (!%p1867_p6), %s1480_s25, 4294967168  ;;  %p31_p0 = scmp.ge.s32.totalorder %s2586_s21, 4   ;;  %s2922_s29 = smov %s2277_s30 }
 0xbec   : > { %s2923_s30 = smov %s2281_s15  ;;  %s2924_s15 = smov %s2598_s2 }
 0xbed   : > { %s2925_s16 = smov %s2586_s21  ;;  %33 = sbr.rel (!%p31_p0) target bundleno = 17 (0x11), region = 149 }
 0xbf4   :  { %1485 = vsyncpa [#allocation4], 1 }
 0xbf5   :  { %1487 = vsyncpa [#allocation4 + $0x1], 1 }
 0xbf6   :  { %1488 = vsyncpa [#allocation7], 1 }
 0xbf7   :  { %1489 = vsyncpa [#allocation10], 1 }
 0xbf8   :  { %1490 = vsyncpa [#allocation13], 1 }
 0xbf9   :  { %1491 = vsyncpa [#allocation16], 1 }
 0xbfa   :  { %1492 = vsyncpa [#allocation5], 1 }
 0xbfb   :  { %1494 = vsyncpa [#allocation5 + $0x1], 1 }

// kernel: tpu_custom_call.1
= control target key start
LH: loop header
LB: loop body
LE: loop exit
PB: predicated region body
PF: predicated region fallthrough
CT: control target
= control target key end

     0   :  { %s2862_s0 = inlined_call_operand.hbm [shape: f32[2,8,32], index: 0, kind: input, shape index: {}]   ;;  %s2863_s1 = inlined_call_operand.hbm [shape: f32[8,8], index: 1, kind: input, shape index: {}]   ;;  %s2864_s2 = inlined_call_operand.hbm [shape: bf16[32,96], index: 2, kind: input, shape index: {}]   ;;  %s2865_s3 = inlined_call_operand.vmem [shape: f32[1,96], index: 3, kind: input, shape index: {}]   ;;  %s2866_s4 = inlined_call_operand.hbm [shape: bf16[32,32], index: 4, kind: input, shape index: {}]   ;;  %s2867_s5 = inlined_call_operand.vmem [shape: f32[1,32], index: 5, kind: input, shape index: {}]   ;;  %s2868_s6 = inlined_call_operand.hbm [shape: f32[1,32], index: 6, kind: input, shape index: {}]   ;;  %s2869_s7 = inlined_call_operand.hbm [shape: f32[1,32], index: 7, kind: input, shape index: {}]   ;;  %s2870_s8 = inlined_call_operand.vmem [shape: bf16[32,128], index: 8, kind: input, shape index: {}]   ;;  %s2871_s9 = inlined_call_operand.hbm [shape: f32[1,128], index: 9, kind: input, shape index: {}]   ;;  %s2872_s10 = inlined_call_operand.vmem [shape: bf16[32,128], index: 10, kind: input, shape index: {}]   ;;  %s2873_s11 = inlined_call_operand.vmem [shape: f32[1,128], index: 11, kind: input, shape index: {}]   ;;  %s2874_s12 = inlined_call_operand.hbm [shape: bf16[128,128], index: 12, kind: input, shape index: {}]   ;;  %s2875_s13 = inlined_call_operand.vmem [shape: f32[1,128], index: 13, kind: input, shape index: {}]   ;;  %s2876_s14 = inlined_call_operand.hbm [shape: f32[2,8,128], index: 14, kind: output, shape index: {}]  }
   0x1   :  { %2886 = sst [smem:[#allocation24_spill]] %s2863_s1 }
   0x2   :  { %2887 = sst [smem:[#allocation25_spill]] %s2864_s2 }
   0x3   :  { %2888 = sst [smem:[#allocation26_spill]] %s2866_s4 }
   0x4   :  { %2889 = sst [smem:[#allocation27_spill]] %s2872_s10 }
   0x5   :  { %2890 = sst [smem:[#allocation28_spill]] %s2873_s11 }
   0x6   :  { %2891 = sst [smem:[#allocation29_spill]] %s2875_s13 }
   0x7   :  { %2892 = sst [smem:[#allocation30_spill]] %s2876_s14 }
   0x8   :  { %19 = vsyncpa [#allocation4], 0 }
   0x9   :  { %21 = vsyncpa [#allocation4 + $0x1], 0 }
   0xa   :  { %22 = vsyncpa [#allocation7], 0 }
   0xb   :  { %23 = vsyncpa [#allocation10], 0 }
   0xc   :  { %24 = vsyncpa [#allocation13], 0 }
   0xd   :  { %25 = vsyncpa [#allocation16], 0 }
   0xe   :  { %26 = vsyncpa [#allocation5], 0 }
   0xf   :  { %28 = vsyncpa [#allocation5 + $0x1], 0  ;;  %s2389_s29 = smov 0   ;;  %s2391_s30 = smov 0  }
  0x10   :  { %s2393_s15 = smov 0   ;;  %s2395_s16 = smov 0  }
  0x11 LB: > { %s2287_s17 = smov [#allocation6]   ;;  %s2410_s19 = sadd.s32 4294967295, %s2285_s16   ;;  %s2285_s16 = sphi %s2395_s16, %s2925_s16   ;;  %s2281_s15 = sphi %s2393_s15, %s2924_s15   ;;  %s2277_s30 = sphi %s2391_s30, %s2923_s30   ;;  %s2273_s29 = sphi %s2389_s29, %s2922_s29  }
  0x12   : > { %s377_s18 = sshll.u32 %s2287_s17, 4  ;;  %p1605_p0 = scmp.ge.s32.totalorder %s2285_s16, 1  ;;  %s378_s18 = int_to_ptr.vmem [resolvable:$true] %s377_s18 }
  0x13   : > { %p2878_p1 = scmp.eq.s32.totalorder %s2410_s19, 0  ;;  %p364_p2 = scmp.lt.s32.totalorder %s2285_s16, 3 }
  0x14   : > { %s2288_s21 = smov [#allocation9]   ;;  %s2289_s24 = smov [#allocation12]  }
  0x15   : > { %p2415_p3 = pnand %p1605_p0, %p364_p2  ;;  %s403_s22 = sshll.u32 %s2288_s21, 4  ;;  %s2428_s22 = int_to_ptr.vmem [resolvable:$true] %s403_s22 }
  0x16   : > { %s431_s25 = sshll.u32 %s2289_s24, 4  ;;  %s2895_s1 = sld [smem:[#allocation24_spill]]  ;;  %s2430_s25 = int_to_ptr.vmem [resolvable:$true] %s431_s25 }
  0x17   : > { %s2893_s20 = scalar_select %p2415_p3, 1, 0 }
  0x18   : > { %p1840_p5 = pneg %p2415_p3 }
  0x1a   : > { %p2424_p6 = pnand %p1840_p5, %p2878_p1 }
  0x1c   : > { %s1977_s28 = scalar_lea.hbm %s2895_s1, 128  ;;  %p2440_p8 = pneg %p2424_p6 }
  0x1d   : > { %p1978_p7 = scmp.ne.s32.totalorder %s2895_s1, %s1977_s28  ;;  %p1984_p11 = scmp.lt.u32.totalorder %s1977_s28, %s2895_s1 }
  0x1f   : > { %p1980_p9 = pnand %p2440_p8, %p1978_p7 }
  0x21   : > { %p1981_p10 = pneg %p1980_p9 }
  0x23   : > { %p1986_p12 = pnand %p1984_p11, %p1981_p10 }
  0x25   : > { %1989 = shalt.err (!%p1986_p12)
}
  0x26   : > { %s1990_s26 = scalar_lea.vmem %s378_s18, 128  ;;  %p1998_p5 = scmp.lt.s32.totalorder %s378_s18, %s378_s18 }
  0x27   : > { %p1991_p13 = scmp.ne.s32.totalorder %s378_s18, %s1990_s26  ;;  %p1999_p4 = scmp.lt.s32.totalorder %s1990_s26, %s1990_s26 }
  0x29   : > { %p1993_p0 = pnand %p1991_p13, %p2440_p8  ;;  %p2000_p1 = por %p1999_p4, %p1998_p5 }
  0x2b   : > { %p1994_p2 = pneg %p1993_p0 }
  0x2d   : > { %p2001_p3 = pnand %p2000_p1, %p1994_p2 }
  0x2f   : > { %2004 = shalt.err (!%p2001_p3)
}
  0x30   : > { %1843 = dma.hbm_to_vmem [thread:$0]  (!%p2424_p6), %s2895_s1, 128, %s378_s18, [#allocation7]  }
  0x31   : > { %s2897_s4 = sld [smem:[#allocation26_spill]] }
  0x37   : > { %s2005_s17 = scalar_lea.hbm %s2897_s4, 256 }
  0x38   : > { %p2006_p7 = scmp.ne.s32.totalorder %s2897_s4, %s2005_s17  ;;  %p2012_p1 = scmp.lt.u32.totalorder %s2005_s17, %s2897_s4 }
  0x3a   : > { %p2008_p9 = pnand %p2006_p7, %p2440_p8 }
  0x3c   : > { %p2009_p4 = pneg %p2008_p9 }
  0x3e   : > { %p2014_p3 = pnand %p2012_p1, %p2009_p4 }
  0x40   : > { %2017 = shalt.err (!%p2014_p3)
}
  0x41   : > { %s2018_s18 = scalar_lea.vmem %s2428_s22, 256  ;;  %p2026_p13 = scmp.lt.s32.totalorder %s2428_s22, %s2428_s22 }
  0x42   : > { %p2019_p10 = scmp.ne.s32.totalorder %s2428_s22, %s2018_s18  ;;  %p2027_p0 = scmp.lt.s32.totalorder %s2018_s18, %s2018_s18 }
  0x44   : > { %p2021_p11 = pnand %p2019_p10, %p2440_p8  ;;  %p2028_p2 = por %p2027_p0, %p2026_p13 }
  0x46   : > { %p2022_p12 = pneg %p2021_p11 }
  0x48   : > { %p2029_p5 = pnand %p2028_p2, %p2022_p12 }
  0x4a   : > { %2032 = shalt.err (!%p2029_p5)
}
  0x4b   : > { %s2881_s11 = smov 64   ;;  %s2883_s10 = smov 4  }
  0x4c   : > { %1849 = dma.hbm_to_vmem [thread:$0]  (!%p2424_p6), %s2897_s4, 256, %s2428_s22, [#allocation10], %s2881_s11, %s2881_s11, %s2883_s10  }
  0x4d   : > { %s2033_s17 = scalar_lea.hbm %s2869_s7, 16 }
  0x4e   : > { %p2034_p7 = scmp.ne.s32.totalorder %s2869_s7, %s2033_s17  ;;  %p2040_p1 = scmp.lt.u32.totalorder %s2033_s17, %s2869_s7 }
  0x50   : > { %p2036_p9 = pnand %p2034_p7, %p2440_p8 }
  0x52   : > { %p2037_p4 = pneg %p2036_p9 }
  0x54   : > { %p2042_p3 = pnand %p2040_p1, %p2037_p4 }
  0x56   : > { %2045 = shalt.err (!%p2042_p3)
}
  0x57   : > { %s2046_s22 = scalar_lea.vmem %s2430_s25, 16  ;;  %s2053_s14 = scalar_lea.vmem %s2430_s25, 32 }
  0x58   : > { %p2047_p10 = scmp.ne.s32.totalorder %s2430_s25, %s2046_s22  ;;  %p2054_p13 = scmp.lt.s32.totalorder %s2430_s25, %s2430_s25 }
  0x59   : > { %p2055_p0 = scmp.lt.s32.totalorder %s2053_s14, %s2046_s22 }
  0x5a   : > { %p2049_p11 = pnand %p2047_p10, %p2440_p8 }
  0x5b   : > { %p2056_p2 = por %p2055_p0, %p2054_p13 }
  0x5c   : > { %p2050_p12 = pneg %p2049_p11 }
  0x5e   : > { %p2057_p5 = pnand %p2056_p2, %p2050_p12 }
  0x60   : > { %2060 = shalt.err (!%p2057_p5)
}
  0x61   : > { %1855 = dma.hbm_to_vmem [thread:$0]  (!%p2424_p6), %s2869_s7, 16, %s2430_s25, [#allocation13]  }
  0x62   : > { %s2292_s13 = smov [#allocation8]   ;;  %s2293_s17 = smov [#allocation11]  }
  0x63   : > { %s387_s28 = sshll.u32 %s2292_s13, 4  ;;  %s420_s24 = sshll.u32 %s2293_s17, 4  ;;  %s388_s28 = int_to_ptr.vmem [resolvable:$true] %s387_s28  ;;  %s421_s24 = int_to_ptr.vmem [resolvable:$true] %s420_s24 }
  0x64   : > { %s2898_s2 = sld [smem:[#allocation25_spill]] }
  0x6a   : > { %s2061_s22 = scalar_lea.hbm %s2898_s2, 256 }
  0x6b   : > { %p2062_p7 = scmp.ne.s32.totalorder %s2898_s2, %s2061_s22  ;;  %p2068_p1 = scmp.lt.u32.totalorder %s2061_s22, %s2898_s2 }
  0x6d   : > { %p2064_p9 = pnand %p2062_p7, %p2440_p8 }
  0x6f   : > { %p2065_p4 = pneg %p2064_p9 }
  0x71   : > { %p2070_p3 = pnand %p2068_p1, %p2065_p4 }
  0x73   : > { %2073 = shalt.err (!%p2070_p3)
}
  0x74   : > { %s2074_s25 = scalar_lea.vmem %s388_s28, 256  ;;  %p2082_p13 = scmp.lt.s32.totalorder %s388_s28, %s388_s28 }
  0x75   : > { %p2075_p10 = scmp.ne.s32.totalorder %s388_s28, %s2074_s25  ;;  %p2083_p0 = scmp.lt.s32.totalorder %s2074_s25, %s2074_s25 }
  0x77   : > { %p2077_p11 = pnand %p2075_p10, %p2440_p8  ;;  %p2084_p2 = por %p2083_p0, %p2082_p13 }
  0x79   : > { %p2078_p12 = pneg %p2077_p11 }
  0x7b   : > { %p2085_p5 = pnand %p2084_p2, %p2078_p12 }
  0x7d   : > { %2088 = shalt.err (!%p2085_p5)
}
  0x7e   : > { %s2899_s11 = smov 4   ;;  %s2900_s27 = smov 64  }
  0x7f   : > { %1846 = dma.hbm_to_vmem [thread:$0]  (!%p2424_p6), %s2898_s2, 256, %s388_s28, [#allocation7], %s2900_s27, %s2900_s27, %s2899_s11  }
  0x80   : > { %s2089_s18 = scalar_lea.hbm %s2868_s6, 16 }
  0x81   : > { %p2090_p7 = scmp.ne.s32.totalorder %s2868_s6, %s2089_s18  ;;  %p2096_p1 = scmp.lt.u32.totalorder %s2089_s18, %s2868_s6 }
  0x83   : > { %p2092_p9 = pnand %p2090_p7, %p2440_p8 }
  0x85   : > { %p2093_p4 = pneg %p2092_p9 }
  0x87   : > { %p2098_p3 = pnand %p2096_p1, %p2093_p4 }
  0x89   : > { %2101 = shalt.err (!%p2098_p3)
}
  0x8a   : > { %s2102_s10 = scalar_lea.vmem %s421_s24, 16  ;;  %s2109_s28 = scalar_lea.vmem %s421_s24, 32 }
  0x8b   : > { %p2103_p10 = scmp.ne.s32.totalorder %s421_s24, %s2102_s10  ;;  %p2110_p13 = scmp.lt.s32.totalorder %s421_s24, %s421_s24 }
  0x8c   : > { %p2111_p0 = scmp.lt.s32.totalorder %s2109_s28, %s2102_s10 }
  0x8d   : > { %p2105_p11 = pnand %p2103_p10, %p2440_p8 }
  0x8e   : > { %p2112_p2 = por %p2111_p0, %p2110_p13 }
  0x8f   : > { %p2106_p12 = pneg %p2105_p11 }
  0x91   : > { %p2113_p5 = pnand %p2112_p2, %p2106_p12 }
  0x93   : > { %2116 = shalt.err (!%p2113_p5)
}
  0x94   : > { %1852 = dma.hbm_to_vmem [thread:$0]  (!%p2424_p6), %s2868_s6, 16, %s421_s24, [#allocation10]  }
  0x95   : > { %s2294_s26 = smov [#allocation14]   ;;  %s2295_s22 = smov [#allocation15]  }
  0x96   : > { %s445_s18 = sshll.u32 %s2294_s26, 4  ;;  %s461_s14 = sshll.u32 %s2295_s22, 4  ;;  %s446_s18 = int_to_ptr.vmem [resolvable:$true] %s445_s18  ;;  %s462_s14 = int_to_ptr.vmem [resolvable:$true] %s461_s14 }
  0x97   : > { %s2117_s2 = scalar_lea.hbm %s2871_s9, 16 }
  0x98   : > { %p2118_p7 = scmp.ne.s32.totalorder %s2871_s9, %s2117_s2  ;;  %p2124_p1 = scmp.lt.u32.totalorder %s2117_s2, %s2871_s9 }
  0x9a   : > { %p2120_p9 = pnand %p2118_p7, %p2440_p8 }
  0x9c   : > { %p2121_p4 = pneg %p2120_p9 }
  0x9e   : > { %p2126_p3 = pnand %p2124_p1, %p2121_p4 }
  0xa0   : > { %2129 = shalt.err (!%p2126_p3)
}
  0xa1   : > { %s2130_s24 = scalar_lea.vmem %s446_s18, 16  ;;  %s2137_s17 = scalar_lea.vmem %s446_s18, 32 }
  0xa2   : > { %p2131_p10 = scmp.ne.s32.totalorder %s446_s18, %s2130_s24  ;;  %p2138_p13 = scmp.lt.s32.totalorder %s446_s18, %s446_s18 }
  0xa3   : > { %p2139_p0 = scmp.lt.s32.totalorder %s2137_s17, %s2130_s24 }
  0xa4   : > { %p2133_p11 = pnand %p2131_p10, %p2440_p8 }
  0xa5   : > { %p2140_p2 = por %p2139_p0, %p2138_p13 }
  0xa6   : > { %p2134_p12 = pneg %p2133_p11 }
  0xa8   : > { %p2141_p5 = pnand %p2140_p2, %p2134_p12 }
  0xaa   : > { %2144 = shalt.err (!%p2141_p5)
}
  0xab   : > { %1858 = dma.hbm_to_vmem [thread:$0]  (!%p2424_p6), %s2871_s9, 16, %s446_s18, [#allocation13]  }
  0xac   : > { %s2145_s1 = scalar_lea.hbm %s2874_s12, 1024 }
  0xad   : > { %p2146_p7 = scmp.ne.s32.totalorder %s2874_s12, %s2145_s1  ;;  %p2152_p1 = scmp.lt.u32.totalorder %s2145_s1, %s2874_s12 }
  0xaf   : > { %p2148_p9 = pnand %p2146_p7, %p2440_p8 }
  0xb1   : > { %p2149_p4 = pneg %p2148_p9 }
  0xb3   : > { %p2154_p3 = pnand %p2152_p1, %p2149_p4 }
  0xb5   : > { %2157 = shalt.err (!%p2154_p3)
}
  0xb6   : > { %s2158_s24 = scalar_lea.vmem %s462_s14, 1024  ;;  %p2166_p13 = scmp.lt.s32.totalorder %s462_s14, %s462_s14 }
  0xb7   : > { %p2159_p10 = scmp.ne.s32.totalorder %s462_s14, %s2158_s24  ;;  %p2167_p0 = scmp.lt.s32.totalorder %s2158_s24, %s2158_s24 }
  0xb9   : > { %p2161_p11 = pnand %p2159_p10, %p2440_p8  ;;  %p2168_p2 = por %p2167_p0, %p2166_p13 }
  0xbb   : > { %p2162_p12 = pneg %p2161_p11 }
  0xbd   : > { %p2169_p5 = pnand %p2168_p2, %p2162_p12 }
  0xbf   : > { %2172 = shalt.err (!%p2169_p5)
}
  0xc0   : > { %1861 = dma.hbm_to_vmem [thread:$0]  (!%p2424_p6), %s2874_s12, 1024, %s462_s14, [#allocation16], %s2900_s27, %s2900_s27, %s2899_s11  }
  0xc1   : > { %s1604_s23 = sadd.s32 4294967294, %s2285_s16   ;;  %s2586_s21 = sadd.s32 1, %s2285_s16  }
  0xc2   : > { %s41_s26 = sadd.s32 1, %s2281_s15  ;;  %s38_s22 = ssub.s32 %s2285_s16, %s2586_s21 }
  0xc3   : > { %p48_p8 = scmp.ne.s32.totalorder %s2281_s15, %s2277_s30  ;;  %p39_p7 = scmp.eq.s32.totalorder %s38_s22, 0 }
  0xc4   : > { %p49_p9 = scmp.eq.s32.totalorder %s2285_s16, 0  ;;  %p54_p4 = scmp.ne.s32.totalorder %s2277_s30, %s2273_s29 }
  0xc5   : > { %p351_p1 = scmp.eq.s32.totalorder %s2410_s19, 1  ;;  %p2901_p10 = scmp.eq.s32.totalorder %s2410_s19, 0 }
  0xc6   : > { %s2598_s2 = scalar_select %p39_p7, %s2281_s15, %s41_s26  }
  0xc7   : > { %p50_p3 = por %p49_p9, %p48_p8  ;;  %p2602_p11 = por %p2901_p10, %p54_p4 }
  0xc8   : > { %p2606_p6 = por %p351_p1, %p48_p8  ;;  %p357_p12 = scmp.eq.s32.totalorder %s1604_s23, 1 }
  0xc9   : > { %p1877_p13 = scmp.lt.s32.totalorder %s2285_s16, 2  ;;  %s478_s27 = sand.u32 1, %s2281_s15  }
  0xca   : > { %s2903_s11 = scalar_select %p2606_p6, 1, 0 }
  0xcb   : > { %p2612_p0 = por %p357_p12, %p54_p4  ;;  %s1614_s1 = sshll.u32 %s478_s27, 3 }
  0xcc   : > { %s1615_s25 = sshll.u32 %s2285_s16, 7  ;;  %s482_s24 = scalar_lea.vmem [#allocation3], %s1614_s1 }
  0xcd   : > { %s2904_s14 = scalar_select %p2612_p0, 1, 0 }
  0xce   : > { %s2620_s13 = scalar_lea.hbm %s2862_s0, %s1615_s25  ;;  %s489_s18 = sshll.u32 %s482_s24, 4  ;;  %s2626_s18 = int_to_ptr.vmem [resolvable:$true] %s489_s18 }
  0xcf   : > { %p2622_p2 = pnand %p1877_p13, %p50_p3  ;;  %s479_s23 = scalar_lea.sflag [#allocation4], %s478_s27 }
  0xd0   : > { %s2173_s26 = scalar_lea.hbm %s2620_s13, 128  ;;  %s2178_s25 = scalar_lea.hbm %s2862_s0, 256 }
  0xd1   : > { %p2174_p5 = scmp.ne.s32.totalorder %s2620_s13, %s2173_s26  ;;  %p2175_p8 = pneg %p2622_p2 }
  0xd2   : > { %p2179_p4 = scmp.lt.u32.totalorder %s2620_s13, %s2862_s0  ;;  %p2180_p1 = scmp.lt.u32.totalorder %s2178_s25, %s2173_s26 }
  0xd3   : > { %p2176_p7 = pnand %p2175_p8, %p2174_p5  ;;  %p2182_p10 = scmp.lt.u32.totalorder %s2173_s26, %s2620_s13 }
  0xd4   : > { %p2181_p3 = por %p2180_p1, %p2179_p4 }
  0xd5   : > { %p2177_p9 = pneg %p2176_p7 }
  0xd6   : > { %p2183_p12 = por %p2182_p10, %p2181_p3 }
  0xd8   : > { %p2184_p13 = pnand %p2183_p12, %p2177_p9 }
  0xda   : > { %2187 = shalt.err (!%p2184_p13)
}
  0xdb   : > { %s2188_s27 = scalar_lea.vmem %s2626_s18, 128  ;;  %s2296_s24 = smov [#allocation3]  }
  0xdc   : > { %p2189_p5 = scmp.ne.s32.totalorder %s2626_s18, %s2188_s27  ;;  %s2193_s22 = sshll.u32 %s2296_s24, 4  ;;  %s2194_s22 = int_to_ptr.vmem [resolvable:$false] %s2193_s22 }
  0xdd   : > { %s2195_s1 = scalar_lea.vmem %s2194_s22, 256  ;;  %p2196_p6 = scmp.lt.s32.totalorder %s2626_s18, %s2194_s22 }
  0xde   : > { %p2191_p7 = pnand %p2189_p5, %p2175_p8  ;;  %p2197_p4 = scmp.lt.s32.totalorder %s2195_s1, %s2188_s27 }
  0xe0   : > { %p2192_p0 = pneg %p2191_p7  ;;  %p2198_p1 = por %p2197_p4, %p2196_p6 }
  0xe2   : > { %p2199_p3 = pnand %p2198_p1, %p2192_p0 }
  0xe4   : > { %2202 = shalt.err (!%p2199_p3)
}
  0xe5   : > { %1865 = dma.hbm_to_vmem [thread:$0]  (!%p2622_p2), %s2620_s13, 128, %s2626_s18, %s479_s23  }
  0xe6   : > { %p2906_p9 = scmp.ne.s32.totalorder %s2893_s20, 0 }
  0xe7   : > { %s2656_s26 = sand.u32 (!%p2906_p9), 1, %s2277_s30  }
  0xe8   : > { %498 = sbr.rel (%p2906_p9) target bundleno = 3045 (0xbe5), region = 76  ;;  %s1617_s25 = sshll.u32 (!%p2906_p9), %s2656_s26, 3 }
  0xe9   : > { %s501_s10 = scalar_lea.sflag (!%p2906_p9), [#allocation4], %s2656_s26  ;;  %s504_s28 = scalar_lea.vmem (!%p2906_p9), [#allocation3], %s1617_s25 }
  0xef   : > { %2248 = dma.done.wait (%p2602_p11), %s501_s10, 128  }
  0xf0   : > { %2250 = vsyncadd (%p2602_p11), %s501_s10, 4294967168  ;;  %p2907_p6 = scmp.eq.s32.totalorder %s2410_s19, 0 }
  0xf2   : > { %2252 = dma.done.wait (%p2907_p6), [#allocation7], 384   ;;  %p2908_p0 = pmov %p2907_p6 }
  0xf4   : > { %2254 = vsyncadd (%p2908_p0), [#allocation7], 4294966912  ;;  %p2909_p2 = pmov %p2908_p0 }
  0xf5   : > { %p2910_p8 = pmov %p2908_p0 }
  0xf6   : > { %2256 = dma.done.wait (%p2909_p2), [#allocation10], 272  }
  0xf7   : > { %2258 = vsyncadd (%p2910_p8), [#allocation10], 4294967024  ;;  %p2911_p10 = pmov %p2908_p0 }
  0xf8   : > { %p2912_p12 = pmov %p2908_p0 }
  0xf9   : > { %2260 = dma.done.wait (%p2911_p10), [#allocation13], 32  }
  0xfa   : > { %2262 = vsyncadd (%p2912_p12), [#allocation13], 4294967264  ;;  %p2913_p11 = pmov %p2908_p0 }
  0xfb   : > { %p2914_p13 = pmov %p2908_p0 }
  0xfc   : > { %2264 = dma.done.wait (%p2913_p11), [#allocation16], 1024  }
  0xfd   : > { %2266 = vsyncadd (%p2914_p13), [#allocation16], 4294966272  ;;  %v2297_v0 = vmov 0.0   ;;  %vm2298_vm0 = vmmov 0   ;;  %v1943_v1 = vld [vmem:[#allocation8] sm:$0xff]   ;;  %v1944_v2 = vld [vmem:[#allocation8 + $0x8] sm:$0xff]  }
  0xfe   : > { %1702 = vmatprep.subr.bf16.mxu1 %v2297_v0  ;;  %1706 = vmatprep.mubr.msk.bf16.mxu1 %vm2298_vm0, %v2297_v0  ;;  %v2688_v3 = vld [vmem:[%s504_s28] sm:$0xff]  ;;  %vm604_vm1 = vcmask 261120   ;;  %v1626_v5 = vld [vmem:[%s2865_s3] ss:$0 sm:$0xff]  ;;  %s2299_s13 = smov 64   ;;  %s2300_s18 = smov 96  }
  0xff   : > { %1728 = vmatprep.subr.bf16.mxu0 %v2297_v0  ;;  %1730 = vmatprep.mubr.msk.bf16.mxu0 %vm2298_vm0, %v2297_v0  ;;  %v579_v4 = vpack.c.bf16 %v2688_v3, %v2688_v3  ;;  %s2301_s17 = smov 88   ;;  %vm652_vm2 = vcmask 64512   ;;  %vm716_vm3 = vcmask 1043456   ;;  %v2713_v16 = vld [vmem:[#allocation6] sm:$0xff]  ;;  %s2302_s23 = smov 72   ;;  %vm875_vm4 = vcmask 130112  }
 0x100   : > { %1703 = vmatpush3.bf16.msra.mxu1 %v1943_v1  ;;  %s2303_s27 = smov 120   ;;  %s2304_s24 = smov 80   ;;  %vm991_vm5 = vcmask 195712   ;;  %vm1107_vm6 = vcmask 261312  }
 0x101   : > { %1704 = vmatprep.subr.bf16.mxu1 %v2297_v0  ;;  %s2305_s22 = smov 112   ;;  %s2306_s1 = smov 104  }
 0x102   : > { %s2307_s10 = smov 56   ;;  %s2308_s28 = smov 48  }
 0x103   : > { %s2309_s20 = smov 40   ;;  %s2310_s4 = smov 8  }
 0x104   : > { %1705 = vmatpush3.bf16.msra.mxu1 %v1944_v2  ;;  %p2919_p7 = scmp.ne.s32.totalorder %s2903_s11, 0 }
 0x105   : > { %1710 = vmatprep.subr.bf16.mxu1 %v2297_v0 }
 0x107   : > { %1707 = vmatmul.mubr.msk.bf16.vlgmr.msra.gmra.mrb[0].mxu1 %vm604_vm1, %v579_v4 }
 0x108   : > { %1712 = vmatprep.mubr.msk.bf16.mxu1 %vm2298_vm0, %v2297_v0 }
 0x1da   : > { %v642_v6 = vpop.f32.mrb[0].mxu1 }
 0x1db   : > { %v643_v7 = vadd.f32 %v1626_v5, %v642_v6  ;;  %v1708_v8 = vpop.f32.mrb[1].mxu1 }
 0x1dc   : > { %v645_v9 = vpop.f32.mrb[2].mxu1 }
 0x1dd   : > { %v2700_v10 = vpack.c.bf16 %v643_v7, %v643_v7  ;;  %v1709_v11 = vpop.f32.mrb[3].mxu1 }
 0x1df   : > { %711 = vrot.lane.b32.xlu1 %v2700_v10, %s2299_s13  ;;  %650 = vrot.lane.b32.xlu0 %v2700_v10, %s2300_s18  ;;  %s2311_s13 = smov 16   ;;  %s2312_s18 = smov 24  }
 0x1e3   : > { %763 = vrot.lane.b32.xlu1 %v2700_v10, %s2301_s17 }
 0x251   : > { %v651_v12 = vpop.permute.xlu0 %650  ;;  %v712_v14 = vpop.permute.xlu1 %711 }
 0x252   : > { %v657_v13 = vsel %vm652_vm2, %v651_v12, 0  ;;  %v718_v15 = vsel %vm716_vm3, %v712_v14, 0 }
 0x253   : > { %1711 = vmatpush3.bf16.xpose.msra.mxu1 %v657_v13 }
 0x254   : > { %1716 = vmatprep.subr.bf16.mxu1 %v2297_v0 }
 0x255   : > { %v764_v28 = vpop.permute.xlu1 %763 }
 0x256   : > { %v769_v34 = vsel %vm652_vm2, %v764_v28, 0 }
 0x25a   : > { %1713 = vmatmul.mubr.msk.bf16.vlgmr.msra.gmra.mrb[4].mxu1 %vm652_vm2, %v2700_v10 }
 0x25b   : > { %1717 = vmatpush3.bf16.msra.mxu1 %v718_v15  ;;  %1718 = vmatprep.mubr.msk.bf16.mxu1 %vm2298_vm0, %v2297_v0 }
 0x25c   : > { %1722 = vmatprep.subr.bf16.mxu1 %v2297_v0 }
 0x32d   : > { %v693_v17 = vpop.f32.mrb[4].mxu1 }
 0x32e   : > { %v694_v18 = vadd.f32 %v693_v17, %v2713_v16  ;;  %v1714_v19 = vpop.f32.mrb[5].mxu1 }
 0x32f   : > { %v696_v20 = vpop.f32.mrb[6].mxu1 }
 0x330   : > { %v1715_v21 = vpop.f32.mrb[7].mxu1  ;;  %v699_v22 = vsel %vm652_vm2, %v694_v18, -inf }
 0x331   : > { %700 = vmax.xlane.f32.xlu0 %v699_v22 }
 0x347   : > { %995 = vrot.lane.b32.xlu0 %v2700_v10, %s2302_s23  ;;  %s2916_s23 = sld [smem:[#allocation28_spill]] }
 0x3be   : > { %v701_v23 = vpop.xlane.xlu0 %700 }
 0x3bf   : > { %v702_v24 = vsub.f32 %v694_v18, %v701_v23 }
 0x3c1   : > { %v703_v25 = vmul.f32 1.442695, %v702_v24 }
 0x3c2   : > { %v996_v37 = vpop.permute.xlu0 %995 }
 0x3c3   : > { %1959 = vpow2.f32 %v703_v25  ;;  %v1001_v39 = vsel %vm652_vm2, %v996_v37, 0 }
 0x3cd   : > { %v1960_v26 = vpop.eup %1959 }
 0x3ce   : > { %v705_v27 = vsel %vm652_vm2, %v1960_v26, 0.0 }
 0x3cf   : > { %706 = vadd.xlane.f32.xlu1 %v705_v27 }
 0x3e0   : > { %761 = vrot.lane.b32.xlu1 %v2700_v10, %s2303_s27 }
 0x3e4   : > { %879 = vrot.lane.b32.xlu1 %v2700_v10, %s2304_s24 }
 0x3e8   : > { %877 = vrot.lane.b32.xlu1 %v2700_v10, %s2305_s22  ;;  %s2917_s22 = sld [smem:[#allocation29_spill]] }
 0x3ec   : > { %993 = vrot.lane.b32.xlu1 %v2700_v10, %s2306_s1  ;;  %s1662_s1 = sshll.u32 %s2410_s19, 7  ;;  %s1454_s19 = scalar_lea.sflag [#allocation5], %s2656_s26 }
 0x45c   : > { %v707_v29 = vpop.xlane.xlu1 %706 }
 0x45d   : > { %1961 = vrcp.f32 %v707_v29 }
 0x460   : > { %v762_v33 = vpop.permute.xlu1 %761 }
 0x464   : > { %v880_v35 = vpop.permute.xlu1 %879 }
 0x465   : > { %v885_v36 = vsel %vm652_vm2, %v880_v35, 0 }
 0x467   : > { %v1962_v30 = vpop.eup %1961 }
 0x468   : > { %v709_v31 = vmul.f32 %v1962_v30, %v1960_v26  ;;  %v878_v38 = vpop.permute.xlu1 %877 }
 0x46a   : > { %v710_v32 = vpack.c.bf16 %v709_v31, %v709_v31 }
 0x46c   : > { %1719 = vmatmul.mubr.msk.bf16.vlgmr.msra.gmra.mrb[8].mxu1 %vm652_vm2, %v710_v32  ;;  %v994_v40 = vpop.permute.xlu1 %993 }
 0x46d   : > { %1723 = vmatpush3.bf16.xpose.msra.mxu1 %v769_v34  ;;  %1724 = vmatprep.mubr.msk.bf16.mxu1 %vm2298_vm0, %v2297_v0 }
 0x46e   : > { %1734 = vmatprep.subr.bf16.mxu1 %v2297_v0 }
 0x474   : > { %1725 = vmatmul.mubr.msk.bf16.vlgmr.msra.gmra.mrb[12].mxu1 %vm652_vm2, %v762_v33 }
 0x475   : > { %1735 = vmatpush3.bf16.xpose.msra.mxu1 %v885_v36  ;;  %1736 = vmatprep.mubr.msk.bf16.mxu1 %vm2298_vm0, %v2297_v0 }
 0x476   : > { %1746 = vmatprep.subr.bf16.mxu1 %v2297_v0 }
 0x47c   : > { %1737 = vmatmul.mubr.msk.bf16.vlgmr.msra.gmra.mrb[16].mxu1 %vm652_vm2, %v878_v38  ;;  %v1945_v38 = vld [vmem:[#allocation9] sm:$0xff]  }
 0x47d   : > { %1747 = vmatpush3.bf16.xpose.msra.mxu1 %v1001_v39  ;;  %1748 = vmatprep.mubr.msk.bf16.mxu1 %vm2298_vm0, %v2297_v0  ;;  %v1946_v39 = vld [vmem:[#allocation9 + $0x8] sm:$0xff]  }
 0x47e   : > { %1758 = vmatprep.subr.bf16.mxu1 %v2297_v0 }
 0x484   : > { %1749 = vmatmul.mubr.msk.bf16.vlgmr.msra.gmra.mrb[20].mxu1 %vm652_vm2, %v994_v40 }
 0x485   : > { %1762 = vmatprep.mubr.msk.bf16.mxu1 %vm2298_vm0, %v2297_v0  ;;  %1759 = vmatpush3.bf16.msra.mxu1 %v1945_v38 }
 0x486   : > { %1760 = vmatprep.subr.bf16.mxu1 %v2297_v0 }
 0x489   : > { %1761 = vmatpush3.bf16.msra.mxu1 %v1946_v39 }
 0x48a   : > { %1774 = vmatprep.subr.bf16.mxu1 %v2297_v0 }
 0x53f   : > { %v754_v41 = vpop.f32.mrb[8].mxu1 }
 0x540   : > { %760 = vst.msk [vmem:[#allocation2] sm:$0xff] %vm652_vm2, %v754_v41  ;;  %v1720_v42 = vpop.f32.mrb[9].mxu1 }
 0x541   : > { %v757_v43 = vpop.f32.mrb[10].mxu1 }
 0x542   : > { %v1721_v44 = vpop.f32.mrb[11].mxu1 }
 0x547   : > { %v805_v45 = vpop.f32.mrb[12].mxu1 }
 0x548   : > { %v806_v46 = vadd.f32 %v805_v45, %v2713_v16  ;;  %v1726_v47 = vpop.f32.mrb[13].mxu1 }
 0x549   : > { %v808_v48 = vpop.f32.mrb[14].mxu1 }
 0x54a   : > { %v1727_v49 = vpop.f32.mrb[15].mxu1  ;;  %v811_v50 = vsel %vm652_vm2, %v806_v46, -inf }
 0x54b   : > { %812 = vmax.xlane.f32.xlu1 %v811_v50 }
 0x54f   : > { %v921_v51 = vpop.f32.mrb[16].mxu1 }
 0x550   : > { %v922_v52 = vadd.f32 %v921_v51, %v2713_v16  ;;  %v1738_v53 = vpop.f32.mrb[17].mxu1 }
 0x551   : > { %v924_v54 = vpop.f32.mrb[18].mxu1  ;;  %v1638_v53 = vld [vmem:[%s2867_s5] ss:$0 sm:$0xff] }
 0x552   : > { %v1739_v55 = vpop.f32.mrb[19].mxu1  ;;  %v927_v56 = vsel %vm652_vm2, %v922_v52, -inf }
 0x553   : > { %928 = vmax.xlane.f32.xlu0 %v927_v56 }
 0x557   : > { %v1037_v57 = vpop.f32.mrb[20].mxu1 }
 0x558   : > { %v1038_v58 = vadd.f32 %v1037_v57, %v2713_v16  ;;  %v1750_v59 = vpop.f32.mrb[21].mxu1 }
 0x559   : > { %v1040_v60 = vpop.f32.mrb[22].mxu1 }
 0x55a   : > { %v1751_v61 = vpop.f32.mrb[23].mxu1  ;;  %v1043_v62 = vsel %vm652_vm2, %v1038_v58, -inf }
 0x55b   : > { %1044 = vmax.xlane.f32.xlu1 %v1043_v62 }
 0x5d8   : > { %v813_v63 = vpop.xlane.xlu1 %812 }
 0x5d9   : > { %v814_v1 = vsub.f32 %v806_v46, %v813_v63 }
 0x5db   : > { %v815_v2 = vmul.f32 1.442695, %v814_v1 }
 0x5dd   : > { %1963 = vpow2.f32 %v815_v2 }
 0x5e0   : > { %v929_v12 = vpop.xlane.xlu0 %928 }
 0x5e1   : > { %v930_v13 = vsub.f32 %v922_v52, %v929_v12  ;;  %v1642_v12 = vld [vmem:[#allocation11] ss:$0 sm:$0xff] }
 0x5e3   : > { %v931_v14 = vmul.f32 1.442695, %v930_v13 }
 0x5e7   : > { %v1964_v4 = vpop.eup %1963 }
 0x5e8   : > { %v1045_v5 = vpop.xlane.xlu1 %1044  ;;  %v817_v6 = vsel %vm652_vm2, %v1964_v4, 0.0 }
 0x5e9   : > { %v1046_v7 = vsub.f32 %v1038_v58, %v1045_v5  ;;  %818 = vadd.xlane.f32.xlu1 %v817_v6 }
 0x5eb   : > { %v1047_v8 = vmul.f32 1.442695, %v1046_v7 }
 0x5ed   : > { %1965 = vpow2.f32 %v1047_v8 }
 0x5ee   : > { %1967 = vpow2.f32 %v931_v14  ;;  %v1643_v14 = vld [vmem:[#allocation12] ss:$0 sm:$0xff] }
 0x5f7   : > { %v1966_v9 = vpop.eup %1965 }
 0x5f8   : > { %v1049_v11 = vsel %vm652_vm2, %v1966_v9, 0.0  ;;  %v1968_v15 = vpop.eup %1967 }
 0x5f9   : > { %1050 = vadd.xlane.f32.xlu0 %v1049_v11  ;;  %v933_v16 = vsel %vm652_vm2, %v1968_v15, 0.0 }
 0x5fa   : > { %823 = vrot.lane.b32.xlu1 %v2700_v10, %s2307_s10  ;;  %s2915_s10 = sld [smem:[#allocation27_spill]] }
 0x600   : > { %v1948_v5 = vld [vmem:[%s2915_s10] sm:$0xff]   ;;  %v1950_v6 = vld [vmem:[%s2915_s10 + $0x8] sm:$0xff]  }
 0x60f   : > { %939 = vrot.lane.b32.xlu0 %v2700_v10, %s2308_s28  ;;  %s576_s28 = scalar_lea.vmem [#allocation17], %s1617_s25  ;;  %s2313_s25 = smov [#allocation17]  }
 0x610   : > { %s2207_s27 = sshll.u32 %s2313_s25, 4  ;;  %s2208_s27 = int_to_ptr.vmem [resolvable:$false] %s2207_s27 }
 0x611   : > { %s2209_s24 = scalar_lea.vmem %s2208_s27, 256 }
 0x61e   : > { %934 = vadd.xlane.f32.xlu1 %v933_v16 }
 0x62f   : > { %1055 = vrot.lane.b32.xlu1 %v2700_v10, %s2309_s20  ;;  %s1467_s20 = sshll.u32 %s576_s28, 4  ;;  %s2820_s20 = int_to_ptr.vmem [resolvable:$true] %s1467_s20 }
 0x630   : > { %p2210_p3 = scmp.lt.s32.totalorder %s2820_s20, %s2208_s27 }
 0x676   : > { %v819_v17 = vpop.xlane.xlu1 %818 }
 0x677   : > { %1969 = vrcp.f32 %v819_v17  ;;  %v1951_v17 = vld [vmem:[#allocation15] sm:$0xff]  }
 0x67a   : > { %v824_v18 = vpop.permute.xlu1 %823 }
 0x67b   : > { %v829_v19 = vsel %vm716_vm3, %v824_v18, 0 }
 0x67c   : > { %1729 = vmatpush3.bf16.msra.mxu0 %v829_v19  ;;  %v1952_v19 = vld [vmem:[#allocation15 + $0x8] sm:$0xff]  }
 0x67d   : > { %1740 = vmatprep.subr.bf16.mxu0 %v2297_v0 }
 0x681   : > { %v1970_v20 = vpop.eup %1969 }
 0x682   : > { %v821_v21 = vmul.f32 %v1970_v20, %v1964_v4  ;;  %v1947_v4 = vld [vmem:[%s2870_s8] sm:$0xff]   ;;  %v1953_v20 = vld [vmem:[#allocation15 + $0x10] sm:$0xff]  }
 0x684   : > { %v822_v22 = vpack.c.bf16 %v821_v21, %v821_v21  ;;  %v1954_v21 = vld [vmem:[#allocation15 + $0x18] sm:$0xff]  }
 0x686   : > { %v1051_v23 = vpop.xlane.xlu0 %1050  ;;  %1731 = vmatmul.mubr.msk.bf16.vlgmr.msra.gmra.mrb[0].mxu0 %vm652_vm2, %v822_v22  ;;  %v1955_v22 = vld [vmem:[#allocation15 + $0x20] sm:$0xff]  }
 0x687   : > { %1742 = vmatprep.mubr.msk.bf16.mxu0 %vm2298_vm0, %v2297_v0 }
 0x68a   : > { %v940_v24 = vpop.permute.xlu0 %939 }
 0x68b   : > { %v945_v10 = vsel %vm716_vm3, %v940_v24, 0  ;;  %v1957_v24 = vld [vmem:[#allocation15 + $0x30] sm:$0xff]  }
 0x68c   : > { %1741 = vmatpush3.bf16.msra.mxu0 %v945_v10  ;;  %v1958_v10 = vld [vmem:[#allocation15 + $0x38] sm:$0xff]  }
 0x68d   : > { %1752 = vmatprep.subr.bf16.mxu0 %v2297_v0 }
 0x6ab   : > { %v935_v25 = vpop.xlane.xlu1 %934 }
 0x6ac   : > { %1971 = vrcp.f32 %v935_v25  ;;  %v1648_v25 = vld [vmem:[%s2916_s23] ss:$0 sm:$0xff]  ;;  %s2203_s23 = scalar_lea.vmem %s2820_s20, 128 }
 0x6ad   : > { %1973 = vrcp.f32 %v1051_v23  ;;  %v1956_v23 = vld [vmem:[#allocation15 + $0x28] sm:$0xff]   ;;  %p2204_p5 = scmp.ne.s32.totalorder %s2820_s20, %s2203_s23  ;;  %p2211_p9 = scmp.lt.s32.totalorder %s2209_s24, %s2203_s23 }
 0x6af   : > { %v1056_v28 = vpop.permute.xlu1 %1055  ;;  %p2205_p4 = pnand %p2204_p5, %p2919_p7  ;;  %p2212_p6 = por %p2211_p9, %p2210_p3 }
 0x6b0   : > { %v1061_v31 = vsel %vm716_vm3, %v1056_v28, 0 }
 0x6b1   : > { %p2206_p1 = pneg %p2205_p4 }
 0x6b3   : > { %p2213_p0 = pnand %p2212_p6, %p2206_p1 }
 0x6b6   : > { %v1972_v26 = vpop.eup %1971 }
 0x6b7   : > { %v937_v27 = vmul.f32 %v1972_v26, %v1968_v15  ;;  %v1974_v30 = vpop.eup %1973 }
 0x6b8   : > { %v1053_v32 = vmul.f32 %v1974_v30, %v1966_v9 }
 0x6b9   : > { %v938_v29 = vpack.c.bf16 %v937_v27, %v937_v27 }
 0x6ba   : > { %v1054_v33 = vpack.c.bf16 %v1053_v32, %v1053_v32 }
 0x6bb   : > { %1743 = vmatmul.mubr.msk.bf16.vlgmr.msra.gmra.mrb[4].mxu0 %vm652_vm2, %v938_v29 }
 0x6bc   : > { %1753 = vmatpush3.bf16.msra.mxu0 %v1061_v31  ;;  %1754 = vmatprep.mubr.msk.bf16.mxu0 %vm2298_vm0, %v2297_v0 }
 0x6bd   : > { %1766 = vmatprep.subr.bf16.mxu0 %v2297_v0 }
 0x6c3   : > { %1755 = vmatmul.mubr.msk.bf16.vlgmr.msra.gmra.mrb[8].mxu0 %vm652_vm2, %v1054_v33  ;;  %v1644_v33 = vld [vmem:[#allocation14] ss:$0 sm:$0xff] }
 0x6c4   : > { %1770 = vmatprep.mubr.msk.bf16.mxu0 %vm2298_vm0, %v2297_v0  ;;  %1767 = vmatpush3.bf16.msra.mxu0 %v1947_v4 }
 0x6c5   : > { %1768 = vmatprep.subr.bf16.mxu0 %v2297_v0 }
 0x759   : > { %v865_v34 = vpop.f32.mrb[0].mxu0 }
 0x75a   : > { %872 = vrot.lane.b32.xlu1 %v865_v34, %s2310_s4  ;;  %v1732_v35 = vpop.f32.mrb[1].mxu0 }
 0x75b   : > { %v868_v36 = vpop.f32.mrb[2].mxu0 }
 0x75c   : > { %v1733_v37 = vpop.f32.mrb[3].mxu0 }
 0x78e   : > { %v981_v40 = vpop.f32.mrb[4].mxu0 }
 0x78f   : > { %988 = vrot.lane.b32.xlu0 %v981_v40, %s2311_s13  ;;  %v1744_v41 = vpop.f32.mrb[5].mxu0 }
 0x790   : > { %v984_v42 = vpop.f32.mrb[6].mxu0 }
 0x791   : > { %v1745_v43 = vpop.f32.mrb[7].mxu0 }
 0x796   : > { %v1097_v44 = vpop.f32.mrb[8].mxu0 }
 0x797   : > { %1104 = vrot.lane.b32.xlu1 %v1097_v44, %s2312_s18  ;;  %v1756_v45 = vpop.f32.mrb[9].mxu0  ;;  %s2918_s18 = sld [smem:[#allocation30_spill]] }
 0x798   : > { %v1100_v46 = vpop.f32.mrb[10].mxu0 }
 0x799   : > { %v1757_v47 = vpop.f32.mrb[11].mxu0 }
 0x79d   : > { %s2818_s17 = scalar_lea.hbm %s2918_s18, %s1662_s1 }
 0x7cc   : > { %v873_v48 = vpop.permute.xlu1 %872 }
 0x7cd   : > { %876 = vst.msk [vmem:[#allocation2] sm:$0xff] %vm875_vm4, %v873_v48 }
 0x801   : > { %v989_v49 = vpop.permute.xlu0 %988 }
 0x802   : > { %992 = vst.msk [vmem:[#allocation2] sm:$0xff] %vm991_vm5, %v989_v49 }
 0x809   : > { %v1105_v50 = vpop.permute.xlu1 %1104 }
 0x80a   : > { %1108 = vst.msk [vmem:[#allocation2] sm:$0xff] %vm1107_vm6, %v1105_v50 }
 0x811   : > { %v1109_v51 = vld [vmem:[#allocation2] sm:$0xff] }
 0x812   : > { %v1110_v52 = vpack.c.bf16 %v1109_v51, %v1109_v51 }
 0x814   : > { %1763 = vmatmul.mubr.msk.bf16.vlgmr.msra.gmra.mrb[24].mxu1 %vm604_vm1, %v1110_v52 }
 0x815   : > { %1778 = vmatprep.mubr.msk.bf16.mxu1 %vm2298_vm0, %v2297_v0  ;;  %1775 = vmatpush3.bf16.msra.mxu1 %v1948_v5 }
 0x816   : > { %1776 = vmatprep.subr.bf16.mxu1 %v2297_v0 }
 0x819   : > { %1777 = vmatpush3.bf16.msra.mxu1 %v1950_v6 }
 0x8e7   : > { %v1171_v54 = vpop.f32.mrb[24].mxu1 }
 0x8e8   : > { %v1172_v55 = vadd.f32 %v1638_v53, %v1171_v54  ;;  %v1764_v56 = vpop.f32.mrb[25].mxu1 }
 0x8e9   : > { %v1174_v57 = vpop.f32.mrb[26].mxu1 }
 0x8ea   : > { %v1765_v58 = vpop.f32.mrb[27].mxu1  ;;  %v1177_v59 = vadd.f32 %v1172_v55, %v2688_v3  ;;  %v1949_v3 = vld [vmem:[%s2870_s8 + $0x8] sm:$0xff]  }
 0x8eb   : > { %1769 = vmatpush3.bf16.msra.mxu0 %v1949_v3 }
 0x8ec   : > { %v1178_v60 = vsel %vm604_vm1, %v1177_v59, 0.0  ;;  %1782 = vmatprep.subr.bf16.mxu0 %v2297_v0 }
 0x8ed   : > { %1179 = vadd.xlane.f32.xlu0 %v1178_v60 }
 0x97a   : > { %v1180_v61 = vpop.xlane.xlu0 %1179 }
 0x97b   : > { %v1182_v62 = vmul.f32 0.03125, %v1180_v61 }
 0x97d   : > { %v1183_v63 = vsub.f32 %v1177_v59, %v1182_v62 }
 0x97f   : > { %v1184_v1 = vmul.f32 %v1183_v63, %v1183_v63 }
 0x981   : > { %v1185_v2 = vsel %vm604_vm1, %v1184_v1, 0.0 }
 0x982   : > { %1186 = vadd.xlane.f32.xlu1 %v1185_v2 }
 0xa0f   : > { %v1187_v7 = vpop.xlane.xlu1 %1186 }
 0xa10   : > { %v1188_v8 = vmul.f32 0.03125, %v1187_v7 }
 0xa12   : > { %v1189_v9 = vadd.f32 1e-05, %v1188_v8 }
 0xa14   : > { %1975 = vrsqrt.f32 %v1189_v9 }
 0xa1e   : > { %v1976_v11 = vpop.eup %1975 }
 0xa1f   : > { %v1191_v13 = vmul.f32 %v1976_v11, %v1183_v63 }
 0xa21   : > { %v1199_v15 = vmul.f32 %v1642_v12, %v1191_v13 }
 0xa23   : > { %v1207_v16 = vadd.f32 %v1643_v14, %v1199_v15 }
 0xa25   : > { %v1208_v18 = vpack.c.bf16 %v1207_v16, %v1207_v16 }
 0xa27   : > { %1771 = vmatmul.mubr.msk.bf16.vlgmr.msra.gmra.mrb[12].mxu0 %vm604_vm1, %v1208_v18  ;;  %1779 = vmatmul.mubr.msk.bf16.vlgmr.msra.gmra.mrb[28].mxu1 %vm604_vm1, %v1208_v18 }
 0xa28   : > { %1783 = vmatpush3.bf16.msra.mxu0 %v1951_v17  ;;  %1798 = vmatprep.mubr.msk.bf16.mxu0 %vm2298_vm0, %v2297_v0 }
 0xa29   : > { %1784 = vmatprep.subr.bf16.mxu0 %v2297_v0 }
 0xa2c   : > { %1785 = vmatpush3.bf16.msra.mxu0 %v1952_v19 }
 0xa2d   : > { %1786 = vmatprep.subr.bf16.mxu0 %v2297_v0 }
 0xa30   : > { %1787 = vmatpush3.bf16.msra.mxu0 %v1953_v20 }
 0xa31   : > { %1788 = vmatprep.subr.bf16.mxu0 %v2297_v0 }
 0xa34   : > { %1789 = vmatpush3.bf16.msra.mxu0 %v1954_v21 }
 0xa35   : > { %1790 = vmatprep.subr.bf16.mxu0 %v2297_v0 }
 0xa38   : > { %1791 = vmatpush3.bf16.msra.mxu0 %v1955_v22 }
 0xa39   : > { %1792 = vmatprep.subr.bf16.mxu0 %v2297_v0 }
 0xa3c   : > { %1793 = vmatpush3.bf16.msra.mxu0 %v1956_v23 }
 0xa3d   : > { %1794 = vmatprep.subr.bf16.mxu0 %v2297_v0 }
 0xa40   : > { %1795 = vmatpush3.bf16.msra.mxu0 %v1957_v24 }
 0xa41   : > { %1796 = vmatprep.subr.bf16.mxu0 %v2297_v0  ;;  %v1652_v0 = vld [vmem:[%s2917_s22] ss:$0 sm:$0xff] }
 0xa42   : > { %v1802_v34 = vadd.f32 %v1652_v0, %v1644_v33 }
 0xa44   : > { %1797 = vmatpush3.bf16.msra.mxu0 %v1958_v10 }
 0xafa   : > { %v1332_v26 = vpop.f32.mrb[28].mxu1 }
 0xafb   : > { %v1333_v27 = vadd.f32 %v1648_v25, %v1332_v26  ;;  %v1780_v28 = vpop.f32.mrb[29].mxu1 }
 0xafc   : > { %v1335_v29 = vpop.f32.mrb[30].mxu1 }
 0xafd   : > { %v1338_v30 = vmax.f32 %v1333_v27, 0.0  ;;  %v1781_v31 = vpop.f32.mrb[31].mxu1 }
 0xaff   : > { %v1339_v32 = vpack.c.bf16 %v1338_v30, %v1338_v30 }
 0xb01   : > { %1799 = vmatmul.mubr.bf16.vlgmr.msra.gmra.mrb[12].mxu0 %v1339_v32 }
 0xbd4   : > { %v1445_v35 = vpop.f32.mrb[12].mxu0 }
 0xbd5   : > { %v1803_v36 = vadd.f32 %v1802_v34, %v1445_v35  ;;  %v1800_v37 = vpop.f32.mrb[13].mxu0 }
 0xbd6   : > { %v1448_v38 = vpop.f32.mrb[14].mxu0 }
 0xbd7   : > { %1452 = vst [vmem:[%s576_s28] sm:$0xff] %v1803_v36  ;;  %v1801_v39 = vpop.f32.mrb[15].mxu0 }
 0xbd8   : > { %2216 = shalt.err (!%p2213_p0)
}
 0xbd9   : > { %s2217_s26 = scalar_lea.hbm %s2818_s17, 128  ;;  %s2221_s28 = scalar_lea.hbm %s2918_s18, 256 }
 0xbda   : > { %p2218_p2 = scmp.ne.s32.totalorder %s2818_s17, %s2217_s26  ;;  %p2222_p12 = scmp.lt.u32.totalorder %s2818_s17, %s2918_s18 }
 0xbdb   : > { %p2223_p11 = scmp.lt.u32.totalorder %s2221_s28, %s2217_s26  ;;  %p2225_p5 = scmp.lt.u32.totalorder %s2217_s26, %s2818_s17 }
 0xbdc   : > { %p2219_p8 = pnand %p2218_p2, %p2919_p7 }
 0xbdd   : > { %p2224_p13 = por %p2223_p11, %p2222_p12 }
 0xbde   : > { %p2220_p10 = pneg %p2219_p8 }
 0xbdf   : > { %p2226_p4 = por %p2225_p5, %p2224_p13 }
 0xbe1   : > { %p2227_p1 = pnand %p2226_p4, %p2220_p10 }
 0xbe3   : > { %2230 = shalt.err (!%p2227_p1)
}
 0xbe4   : > { %1838 = dma.vmem_to_hbm [thread:$0]  (%p2919_p7), %s2820_s20, 128, %s2818_s17, %s1454_s19  }
 0xbe5 PF: > { %s1479_s23 = sand.u32 1, %s2273_s29   ;;  %p2920_p3 = scmp.ne.s32.totalorder %s2904_s14, 0 }
 0xbe6   : > { %p2921_p9 = scmp.ge.s32.totalorder %s2285_s16, 2  ;;  %s1480_s25 = scalar_lea.sflag [#allocation5], %s1479_s23 }
 0xbe8   : > { %p1867_p6 = pnand %p2921_p9, %p2920_p3 }
 0xbea   : > { %2268 = dma.done.wait (!%p1867_p6), %s1480_s25, 128  }
 0xbeb   : > { %2270 = vsyncadd (!%p1867_p6), %s1480_s25, 4294967168  ;;  %p31_p0 = scmp.ge.s32.totalorder %s2586_s21, 4   ;;  %s2922_s29 = smov %s2277_s30 }
 0xbec   : > { %s2923_s30 = smov %s2281_s15  ;;  %s2924_s15 = smov %s2598_s2 }
 0xbed   : > { %s2925_s16 = smov %s2586_s21  ;;  %33 = sbr.rel (!%p31_p0) target bundleno = 17 (0x11), region = 149 }
 0xbf4   :  { %1485 = vsyncpa [#allocation4], 1 }
 0xbf5   :  { %1487 = vsyncpa [#allocation4 + $0x1], 1 }
 0xbf6   :  { %1488 = vsyncpa [#allocation7], 1 }
 0xbf7   :  { %1489 = vsyncpa [#allocation10], 1 }
 0xbf8   :  { %1490 = vsyncpa [#allocation13], 1 }
 0xbf9   :  { %1491 = vsyncpa [#allocation16], 1 }
 0xbfa   :  { %1492 = vsyncpa [#allocation5], 1 }
 0xbfb   :  { %1494 = vsyncpa [#allocation5 + $0x1], 1 }

</bundles_post_ra>
